<compile_context>
chip_gen: v5e
topology: v5e:2x2
jax: 0.10.0
libtpu: 0.0.40
codegen_flags: <defaults>
</compile_context>

<pallas_src>
import functools

import numpy as np
import jax
import jax.numpy as jnp
from jax import lax
from jax.experimental import pallas as pl
from jax.experimental.pallas import tpu as pltpu

BN_EPS = 1e-5
LN_EPS = 1e-5


# ----------------------------------------------------------------------------
# Static (trace-time numpy) helpers
# ----------------------------------------------------------------------------
def _out_hw(h, w, k, s, p):
    return (h + 2 * p - k) // s + 1, (w + 2 * p - k) // s + 1


def _conv_row_map(h_in, w_in, stride, pad=1, k=3):
    """Per-image map (M_out, k*k): flat input-row index per output row & tap; -1 = zero pad."""
    ho, wo = _out_hw(h_in, w_in, k, stride, pad)
    qm = np.full((ho * wo, k * k), -1, dtype=np.int64)
    for i in range(ho):
        for j in range(wo):
            m = i * wo + j
            for di in range(k):
                for dj in range(k):
                    hi = i * stride + di - pad
                    wi = j * stride + dj - pad
                    if 0 <= hi < h_in and 0 <= wi < w_in:
                        qm[m, di * k + dj] = hi * w_in + wi
    return qm


def _gather_stack(h_in, w_in, stride):
    """(9*M_out, M_in) bf16 one-hot gather matrix; row block t = tap t, -1 taps => zero rows."""
    qm = _conv_row_map(h_in, w_in, stride)
    m_out, m_in = qm.shape[0], h_in * w_in
    g = np.zeros((9, m_out, m_in), np.float32)
    rows = np.arange(m_out)
    for t in range(9):
        valid = qm[:, t] >= 0
        g[t, rows[valid], qm[valid, t]] = 1.0
    return jnp.asarray(g.reshape(9 * m_out, m_in), dtype=jnp.bfloat16)


def _im2col(x, kh, kw, stride, pad):
    """x: (N,H,W,C) -> (N,Ho,Wo,kh*kw*C) patches, tap-major (matches weight reshape)."""
    n, h, w, c = x.shape
    xp = jnp.pad(x, ((0, 0), (pad, pad), (pad, pad), (0, 0)))
    ho, wo = _out_hw(h, w, kh, stride, pad)
    cols = []
    for i in range(kh):
        for j in range(kw):
            cols.append(xp[:, i:i + stride * ho:stride, j:j + stride * wo:stride, :])
    return jnp.concatenate(cols, axis=-1), ho, wo


# ----------------------------------------------------------------------------
# In-kernel helpers
# ----------------------------------------------------------------------------
def _conv3x3(x, g_ref, w_ref, pat_ref, m_out, cin):
    """3x3 conv: one stacked gather matmul + one big-K weight matmul (bf16 MXU, f32 acc)."""
    xb = x.astype(jnp.bfloat16)
    # all 9 taps gathered with a single MXU push: (9*m_out, m_in) @ (m_in, cin)
    p_all = jnp.dot(g_ref[...], xb, preferred_element_type=jnp.float32)
    # rearrange tap-major rows into (m_out, 9*cin) column slabs in VMEM scratch
    for t in range(9):
        pat_ref[0:m_out, t * cin:(t + 1) * cin] = p_all[t * m_out:(t + 1) * m_out, :]
    patches = pat_ref[0:m_out, :].astype(jnp.bfloat16)            # (m_out, 9*cin)
    return jnp.dot(patches, w_ref[...], preferred_element_type=jnp.float32)


def _resblock(x, ga_ref, gb_ref, wa, ba, wb, bb, wd, bd, pa_ref, pb_ref,
              m_out, cin, cout):
    """relu(bn2(conv2(relu(bn1(conv1 x)))) + bn_d(conv_d x)) with BN folded into weights."""
    y = _conv3x3(x, ga_ref, wa, pa_ref, m_out, cin)               # conv1 (stride 2)
    # downsample identity: 1x1 stride-2 conv == tap 4 of the stride-2 patch buffer
    ident = jnp.dot(pa_ref[0:m_out, 4 * cin:5 * cin].astype(jnp.bfloat16), wd[...],
                    preferred_element_type=jnp.float32) + bd[...]
    y = jnp.maximum(y + ba[...], 0.0)
    z = _conv3x3(y, gb_ref, wb, pb_ref, m_out, cout) + bb[...] + ident
    return jnp.maximum(z, 0.0)


# ----------------------------------------------------------------------------
# Fused whole-network kernel (one image per grid step)
# ----------------------------------------------------------------------------
def _fused_kernel(dims,
                  p0, w0, b0,
                  g1a, g1b, g2a, g2b, g3a, g3b,
                  w1a, b1a, w1b, b1b, w1d, b1d,
                  w2a, b2a, w2b, b2b, w2d, b2d,
                  w3a, b3a, w3b, b3b, w3d, b3d,
                  hw1, hb1, lng, lnb, blk, hw2, hb2,
                  o_ref,
                  pat1a, pat1b, pat2a, pat2b, pat3a, pat3b):
    m1, m2, m3 = dims
    # initial 3x3 conv (wrapper im2col patches) + folded BN + ReLU
    x0 = jnp.dot(p0[...].astype(jnp.bfloat16), w0[...],
                 preferred_element_type=jnp.float32)
    x0 = jnp.maximum(x0 + b0[...], 0.0)                           # (H*W, 8)

    x1 = _resblock(x0, g1a, g1b, w1a, b1a, w1b, b1b, w1d, b1d, pat1a, pat1b, m1, 8, 16)
    x2 = _resblock(x1, g2a, g2b, w2a, b2a, w2b, b2b, w2d, b2d, pat2a, pat2b, m2, 16, 32)
    x3 = _resblock(x2, g3a, g3b, w3a, b3a, w3b, b3b, w3d, b3d, pat3a, pat3b, m3, 32, 128)

    # heads: AdaptiveAvgPool -> Linear -> LayerNorm(32 per head) -> ReLU -> Linear
    feat = jnp.mean(x3, axis=0, keepdims=True)                    # (1, 128) [age|gender]
    h = jnp.dot(feat, hw1[...], preferred_element_type=jnp.float32) + hb1[...]   # (1, 64)
    mu = jnp.dot(h, blk[...], preferred_element_type=jnp.float32)
    d = h - mu
    var = jnp.dot(d * d, blk[...], preferred_element_type=jnp.float32)
    hn = d * lax.rsqrt(var + LN_EPS) * lng[...] + lnb[...]
    hn = jnp.maximum(hn, 0.0)                 # ReLU; Dropout(0.3) is identity in eval
    out = jnp.dot(hn, hw2[...], preferred_element_type=jnp.float32) + hb2[...]
    o_ref[...] = out.reshape(1, 1, 2)


# ----------------------------------------------------------------------------
# Wrapper
# ----------------------------------------------------------------------------
@jax.jit
def binary_resnet_forward(kparams, x_nchw):
    n, _, h, w = x_nchw.shape
    x = jnp.transpose(x_nchw, (0, 2, 3, 1)).astype(jnp.float32)   # NCHW -> NHWC
    patches, h0, w0_ = _im2col(x, 3, 3, 1, 1)
    patches = patches.reshape(n * h0 * w0_, 9)                    # (N*H*W, 9)

    h1, w1 = _out_hw(h, w, 3, 2, 1)
    h2, w2 = _out_hw(h1, w1, 3, 2, 1)
    h3, w3 = _out_hw(h2, w2, 3, 2, 1)
    m0, m1, m2, m3 = h * w, h1 * w1, h2 * w2, h3 * w3

    # per-image gather constants (batch handled by the grid)
    g1a = _gather_stack(h, w, 2)
    g1b = _gather_stack(h1, w1, 1)
    g2a = _gather_stack(h1, w1, 2)
    g2b = _gather_stack(h2, w2, 1)
    g3a = _gather_stack(h2, w2, 2)
    g3b = _gather_stack(h3, w3, 1)

    # LayerNorm(32) block-averaging matrix for the two stacked heads
    blk_np = np.zeros((64, 64), np.float32)
    blk_np[:32, :32] = 1.0 / 32.0
    blk_np[32:, 32:] = 1.0 / 32.0
    blk = jnp.asarray(blk_np)

    l1, l2, l3, hd = kparams["l1"], kparams["l2"], kparams["l3"], kparams["head"]
    const_args = [
        kparams["w0"], kparams["b0"],
        g1a, g1b, g2a, g2b, g3a, g3b,
        l1["wa"], l1["ba"], l1["wb"], l1["bb"], l1["wd"], l1["bd"],
        l2["wa"], l2["ba"], l2["wb"], l2["bb"], l2["wd"], l2["bd"],
        l3["wa"], l3["ba"], l3["wb"], l3["bb"], l3["wd"], l3["bd"],
        hd["hw1"], hd["hb1"], hd["lng"], hd["lnb"], blk, hd["hw2"], hd["hb2"],
    ]

    def _full(a):
        nd = a.ndim
        shp = a.shape
        return pl.BlockSpec(shp, lambda b: (0,) * nd)

    in_specs = [pl.BlockSpec((m0, 9), lambda b: (b, 0))] + [_full(a) for a in const_args]
    out_spec = pl.BlockSpec((1, 1, 2), lambda b: (b, 0, 0))

    scratch = [
        pltpu.VMEM((max(m1, 8), 9 * 8), jnp.float32),
        pltpu.VMEM((max(m1, 8), 9 * 16), jnp.float32),
        pltpu.VMEM((max(m2, 8), 9 * 16), jnp.float32),
        pltpu.VMEM((max(m2, 8), 9 * 32), jnp.float32),
        pltpu.VMEM((max(m3, 8), 9 * 32), jnp.float32),
        pltpu.VMEM((max(m3, 8), 9 * 128), jnp.float32),
    ]

    out = pl.pallas_call(
        functools.partial(_fused_kernel, (m1, m2, m3)),
        grid=(n,),
        in_specs=in_specs,
        out_specs=out_spec,
        out_shape=jax.ShapeDtypeStruct((n, 1, 2), jnp.float32),
        scratch_shapes=scratch,
        compiler_params=pltpu.CompilerParams(dimension_semantics=("parallel",)),
    )(patches, *const_args)
    out = out[:, 0, :]
    return {"age": out[:, 0], "gender": out[:, 1]}


# ----------------------------------------------------------------------------
# Parameter initialization (PyTorch-default-like) and kernel-ready prep
# ----------------------------------------------------------------------------
def _init_conv(key, kh, kw, cin, cout):
    fan_in = cin * kh * kw
    bound = (1.0 / fan_in) ** 0.5
    return jax.random.uniform(key, (kh, kw, cin, cout), jnp.float32, -bound, bound)


def _init_bn(cout):
    return dict(gamma=jnp.ones((cout,), jnp.float32), beta=jnp.zeros((cout,), jnp.float32),
                mean=jnp.zeros((cout,), jnp.float32), var=jnp.ones((cout,), jnp.float32))


def _init_linear(key, cin, cout):
    kw_, kb_ = jax.random.split(key)
    bound = (1.0 / cin) ** 0.5
    wgt = jax.random.uniform(kw_, (cin, cout), jnp.float32, -bound, bound)
    b = jax.random.uniform(kb_, (cout,), jnp.float32, -bound, bound)
    return wgt, b


def _init_resblock(key, cin, cout):
    k1, k2, k3 = jax.random.split(key, 3)
    return dict(conv1=_init_conv(k1, 3, 3, cin, cout), bn1=_init_bn(cout),
                conv2=_init_conv(k2, 3, 3, cout, cout), bn2=_init_bn(cout),
                dconv=_init_conv(k3, 1, 1, cin, cout), dbn=_init_bn(cout))


def _init_head(key):
    k1, k2 = jax.random.split(key)
    w1, b1 = _init_linear(k1, 64, 32)
    w2, b2 = _init_linear(k2, 32, 1)
    return dict(w1=w1, b1=b1, gamma=jnp.ones((32,), jnp.float32),
                beta=jnp.zeros((32,), jnp.float32), w2=w2, b2=b2)


def init_params(seed=42):
    keys = jax.random.split(jax.random.PRNGKey(seed), 8)
    return dict(
        init_conv=_init_conv(keys[0], 3, 3, 1, 8), init_bn=_init_bn(8),
        layer1=_init_resblock(keys[1], 8, 16),
        layer2=_init_resblock(keys[2], 16, 32),
        layer3_age=_init_resblock(keys[3], 32, 64),
        layer3_gender=_init_resblock(keys[4], 32, 64),
        age_head=_init_head(keys[5]),
        gender_head=_init_head(keys[6]),
    )


def _fold_bn(w, bn):
    """Fold inference BN into conv: (kh*kw*cin, cout) bf16 weight, (1, cout) f32 bias."""
    scale = bn["gamma"] / jnp.sqrt(bn["var"] + BN_EPS)
    wf = (w * scale).reshape(-1, w.shape[-1]).astype(jnp.bfloat16)
    bf = (bn["beta"] - bn["mean"] * scale).reshape(1, -1).astype(jnp.float32)
    return wf, bf


def _prep_resblock(p):
    wa, ba = _fold_bn(p["conv1"], p["bn1"])
    wb, bb = _fold_bn(p["conv2"], p["bn2"])
    wd, bd = _fold_bn(p["dconv"], p["dbn"])
    return dict(wa=wa, ba=ba, wb=wb, bb=bb, wd=wd, bd=bd)


def _prep_layer3(p_age, p_gen):
    """Concatenate the two independent layer3 blocks along Cout (64 + 64 = 128)."""
    a, g = _prep_resblock(p_age), _prep_resblock(p_gen)
    wa = jnp.concatenate([a["wa"], g["wa"]], axis=1)              # (9*32, 128)
    ba = jnp.concatenate([a["ba"], g["ba"]], axis=1)
    wd = jnp.concatenate([a["wd"], g["wd"]], axis=1)              # (32, 128)
    bd = jnp.concatenate([a["bd"], g["bd"]], axis=1)
    # conv2 is block-diagonal per tap so the two branches stay independent
    wb = jnp.zeros((9 * 128, 128), jnp.bfloat16)
    for t in range(9):
        wb = wb.at[t * 128:t * 128 + 64, :64].set(a["wb"][t * 64:(t + 1) * 64, :])
        wb = wb.at[t * 128 + 64:(t + 1) * 128, 64:].set(g["wb"][t * 64:(t + 1) * 64, :])
    bb = jnp.concatenate([a["bb"], g["bb"]], axis=1)
    return dict(wa=wa, ba=ba, wb=wb, bb=bb, wd=wd, bd=bd)


def _prep_heads(age, gen):
    hw1 = jnp.zeros((128, 64), jnp.float32)
    hw1 = hw1.at[:64, :32].set(age["w1"]).at[64:, 32:].set(gen["w1"])
    hb1 = jnp.concatenate([age["b1"], gen["b1"]]).reshape(1, 64)
    lng = jnp.concatenate([age["gamma"], gen["gamma"]]).reshape(1, 64)
    lnb = jnp.concatenate([age["beta"], gen["beta"]]).reshape(1, 64)
    hw2 = jnp.zeros((64, 2), jnp.float32)
    hw2 = hw2.at[:32, 0:1].set(age["w2"]).at[32:, 1:2].set(gen["w2"])
    hb2 = jnp.stack([age["b2"], gen["b2"]]).reshape(1, 2)
    return dict(hw1=hw1, hb1=hb1, lng=lng, lnb=lnb, hw2=hw2, hb2=hb2)


def prepare_kernel_params(p):
    w0, b0 = _fold_bn(p["init_conv"], p["init_bn"])
    return dict(w0=w0, b0=b0,
                l1=_prep_resblock(p["layer1"]),
                l2=_prep_resblock(p["layer2"]),
                l3=_prep_layer3(p["layer3_age"], p["layer3_gender"]),
                head=_prep_heads(p["age_head"], p["gender_head"]))


# ----------------------------------------------------------------------------
# Plain-JAX f32 reference (structural correctness check of the fused kernel)
# ----------------------------------------------------------------------------
_mm = functools.partial(jnp.matmul, precision=jax.lax.Precision.HIGHEST)


def _ref_conv_bn(x, w, bn, stride, pad, relu, residual=None):
    kh, kw, cin, cout = w.shape
    patches, ho, wo = _im2col(x, kh, kw, stride, pad)
    y = _mm(patches, w.reshape(kh * kw * cin, cout))
    scale = bn["gamma"] / jnp.sqrt(bn["var"] + BN_EPS)
    y = y * scale + (bn["beta"] - bn["mean"] * scale)
    if residual is not None:
        y = y + residual
    if relu:
        y = jnp.maximum(y, 0.0)
    return y


def _ref_resblock(x, p, stride):
    ident = _ref_conv_bn(x, p["dconv"], p["dbn"], stride, 0, relu=False)
    y = _ref_conv_bn(x, p["conv1"], p["bn1"], stride, 1, relu=True)
    return _ref_conv_bn(y, p["conv2"], p["bn2"], 1, 1, relu=True, residual=ident)


def _ref_head(x, hp):
    feat = jnp.mean(x, axis=(1, 2))
    hh = _mm(feat, hp["w1"]) + hp["b1"]
    mu = jnp.mean(hh, axis=-1, keepdims=True)
    var = jnp.mean((hh - mu) ** 2, axis=-1, keepdims=True)
    hh = (hh - mu) * jax.lax.rsqrt(var + LN_EPS) * hp["gamma"] + hp["beta"]
    hh = jnp.maximum(hh, 0.0)
    return (_mm(hh, hp["w2"]) + hp["b2"])[:, 0]


@jax.jit
def reference_forward(params, x_nchw):
    x = jnp.transpose(x_nchw, (0, 2, 3, 1)).astype(jnp.float32)
    x = _ref_conv_bn(x, params["init_conv"], params["init_bn"], 1, 1, relu=True)
    x = _ref_resblock(x, params["layer1"], 2)
    x = _ref_resblock(x, params["layer2"], 2)
    xa = _ref_resblock(x, params["layer3_age"], 2)
    xg = _ref_resblock(x, params["layer3_gender"], 2)
    return {"age": _ref_head(xa, params["age_head"]),
            "gender": _ref_head(xg, params["gender_head"])}


# ----------------------------------------------------------------------------
if __name__ == "__main__":
    key = jax.random.PRNGKey(0)
    # BinaryResNet expects 1-channel images, NCHW.
    x = jax.random.normal(key, (2, 1, 16, 16), dtype=jnp.float32)

    raw_params = init_params(seed=42)
    kparams = prepare_kernel_params(raw_params)

    out = binary_resnet_forward(kparams, x)
    out = jax.tree_util.tree_map(jax.block_until_ready, out)

    ref = reference_forward(raw_params, x)
    ref = jax.tree_util.tree_map(jax.block_until_ready, ref)

    assert out["age"].shape == (2,) and out["gender"].shape == (2,)
    for name in ("age", "gender"):
        assert bool(jnp.all(jnp.isfinite(out[name])))
        err = float(jnp.max(jnp.abs(out[name] - ref[name])))
        # bf16 MXU operands with f32 accumulation vs f32-HIGHEST reference
        assert err < 3e-2, f"{name} mismatch vs plain-JAX reference: {err}"
    print("KERNEL_OK")
</pallas_src>

<mosaic_0001>
module attributes {stable_mosaic.version = 11 : i64} {
  func.func @_fused_kernel(%arg0: i32, %arg1: memref<256x9xf32, #tpu.memory_space<vmem>>, %arg2: memref<9x8xbf16, #tpu.memory_space<vmem>>, %arg3: memref<1x8xf32, #tpu.memory_space<vmem>>, %arg4: memref<576x256xbf16, #tpu.memory_space<vmem>>, %arg5: memref<576x64xbf16, #tpu.memory_space<vmem>>, %arg6: memref<144x64xbf16, #tpu.memory_space<vmem>>, %arg7: memref<144x16xbf16, #tpu.memory_space<vmem>>, %arg8: memref<36x16xbf16, #tpu.memory_space<vmem>>, %arg9: memref<36x4xbf16, #tpu.memory_space<vmem>>, %arg10: memref<72x16xbf16, #tpu.memory_space<vmem>>, %arg11: memref<1x16xf32, #tpu.memory_space<vmem>>, %arg12: memref<144x16xbf16, #tpu.memory_space<vmem>>, %arg13: memref<1x16xf32, #tpu.memory_space<vmem>>, %arg14: memref<8x16xbf16, #tpu.memory_space<vmem>>, %arg15: memref<1x16xf32, #tpu.memory_space<vmem>>, %arg16: memref<144x32xbf16, #tpu.memory_space<vmem>>, %arg17: memref<1x32xf32, #tpu.memory_space<vmem>>, %arg18: memref<288x32xbf16, #tpu.memory_space<vmem>>, %arg19: memref<1x32xf32, #tpu.memory_space<vmem>>, %arg20: memref<16x32xbf16, #tpu.memory_space<vmem>>, %arg21: memref<1x32xf32, #tpu.memory_space<vmem>>, %arg22: memref<288x128xbf16, #tpu.memory_space<vmem>>, %arg23: memref<1x128xf32, #tpu.memory_space<vmem>>, %arg24: memref<1152x128xbf16, #tpu.memory_space<vmem>>, %arg25: memref<1x128xf32, #tpu.memory_space<vmem>>, %arg26: memref<32x128xbf16, #tpu.memory_space<vmem>>, %arg27: memref<1x128xf32, #tpu.memory_space<vmem>>, %arg28: memref<128x64xf32, #tpu.memory_space<vmem>>, %arg29: memref<1x64xf32, #tpu.memory_space<vmem>>, %arg30: memref<1x64xf32, #tpu.memory_space<vmem>>, %arg31: memref<1x64xf32, #tpu.memory_space<vmem>>, %arg32: memref<64x64xf32, #tpu.memory_space<vmem>>, %arg33: memref<64x2xf32, #tpu.memory_space<vmem>>, %arg34: memref<1x2xf32, #tpu.memory_space<vmem>>, %arg35: memref<1x1x2xf32, #tpu.memory_space<vmem>>, %arg36: memref<64x72xf32, #tpu.memory_space<vmem>>, %arg37: memref<64x144xf32, #tpu.memory_space<vmem>>, %arg38: memref<16x144xf32, #tpu.memory_space<vmem>>, %arg39: memref<16x288xf32, #tpu.memory_space<vmem>>, %arg40: memref<8x288xf32, #tpu.memory_space<vmem>>, %arg41: memref<8x1152xf32, #tpu.memory_space<vmem>>) attributes {dimension_semantics = [#tpu.dimension_semantics<parallel>], iteration_bounds = array<i64: 2>, scalar_prefetch = 0 : i64, scratch_operands = 6 : i64, tpu.core_type = #tpu.core_type<tc>, window_params = [{transform_indices = @transform_0, window_bounds = array<i64: 256, 9>}, {pipeline_mode = #tpu.pipeline_mode<synchronous>, transform_indices = @transform_1, window_bounds = array<i64: 9, 8>}, {pipeline_mode = #tpu.pipeline_mode<synchronous>, transform_indices = @transform_2, window_bounds = array<i64: 1, 8>}, {pipeline_mode = #tpu.pipeline_mode<synchronous>, transform_indices = @transform_3, window_bounds = array<i64: 576, 256>}, {pipeline_mode = #tpu.pipeline_mode<synchronous>, transform_indices = @transform_4, window_bounds = array<i64: 576, 64>}, {pipeline_mode = #tpu.pipeline_mode<synchronous>, transform_indices = @transform_5, window_bounds = array<i64: 144, 64>}, {pipeline_mode = #tpu.pipeline_mode<synchronous>, transform_indices = @transform_6, window_bounds = array<i64: 144, 16>}, {pipeline_mode = #tpu.pipeline_mode<synchronous>, transform_indices = @transform_7, window_bounds = array<i64: 36, 16>}, {pipeline_mode = #tpu.pipeline_mode<synchronous>, transform_indices = @transform_8, window_bounds = array<i64: 36, 4>}, {pipeline_mode = #tpu.pipeline_mode<synchronous>, transform_indices = @transform_9, window_bounds = array<i64: 72, 16>}, {pipeline_mode = #tpu.pipeline_mode<synchronous>, transform_indices = @transform_10, window_bounds = array<i64: 1, 16>}, {pipeline_mode = #tpu.pipeline_mode<synchronous>, transform_indices = @transform_11, window_bounds = array<i64: 144, 16>}, {pipeline_mode = #tpu.pipeline_mode<synchronous>, transform_indices = @transform_12, window_bounds = array<i64: 1, 16>}, {pipeline_mode = #tpu.pipeline_mode<synchronous>, transform_indices = @transform_13, window_bounds = array<i64: 8, 16>}, {pipeline_mode = #tpu.pipeline_mode<synchronous>, transform_indices = @transform_14, window_bounds = array<i64: 1, 16>}, {pipeline_mode = #tpu.pipeline_mode<synchronous>, transform_indices = @transform_15, window_bounds = array<i64: 144, 32>}, {pipeline_mode = #tpu.pipeline_mode<synchronous>, transform_indices = @transform_16, window_bounds = array<i64: 1, 32>}, {pipeline_mode = #tpu.pipeline_mode<synchronous>, transform_indices = @transform_17, window_bounds = array<i64: 288, 32>}, {pipeline_mode = #tpu.pipeline_mode<synchronous>, transform_indices = @transform_18, window_bounds = array<i64: 1, 32>}, {pipeline_mode = #tpu.pipeline_mode<synchronous>, transform_indices = @transform_19, window_bounds = array<i64: 16, 32>}, {pipeline_mode = #tpu.pipeline_mode<synchronous>, transform_indices = @transform_20, window_bounds = array<i64: 1, 32>}, {pipeline_mode = #tpu.pipeline_mode<synchronous>, transform_indices = @transform_21, window_bounds = array<i64: 288, 128>}, {pipeline_mode = #tpu.pipeline_mode<synchronous>, transform_indices = @transform_22, window_bounds = array<i64: 1, 128>}, {pipeline_mode = #tpu.pipeline_mode<synchronous>, transform_indices = @transform_23, window_bounds = array<i64: 1152, 128>}, {pipeline_mode = #tpu.pipeline_mode<synchronous>, transform_indices = @transform_24, window_bounds = array<i64: 1, 128>}, {pipeline_mode = #tpu.pipeline_mode<synchronous>, transform_indices = @transform_25, window_bounds = array<i64: 32, 128>}, {pipeline_mode = #tpu.pipeline_mode<synchronous>, transform_indices = @transform_26, window_bounds = array<i64: 1, 128>}, {pipeline_mode = #tpu.pipeline_mode<synchronous>, transform_indices = @transform_27, window_bounds = array<i64: 128, 64>}, {pipeline_mode = #tpu.pipeline_mode<synchronous>, transform_indices = @transform_28, window_bounds = array<i64: 1, 64>}, {pipeline_mode = #tpu.pipeline_mode<synchronous>, transform_indices = @transform_29, window_bounds = array<i64: 1, 64>}, {pipeline_mode = #tpu.pipeline_mode<synchronous>, transform_indices = @transform_30, window_bounds = array<i64: 1, 64>}, {pipeline_mode = #tpu.pipeline_mode<synchronous>, transform_indices = @transform_31, window_bounds = array<i64: 64, 64>}, {pipeline_mode = #tpu.pipeline_mode<synchronous>, transform_indices = @transform_32, window_bounds = array<i64: 64, 2>}, {pipeline_mode = #tpu.pipeline_mode<synchronous>, transform_indices = @transform_33, window_bounds = array<i64: 1, 2>}, {transform_indices = @transform_34, window_bounds = array<i64: 1, 1, 2>}]} {
    %c0 = arith.constant 0 : index
    %c0_0 = arith.constant 0 : index
    %0 = vector.load %arg1[%c0, %c0_0] : memref<256x9xf32, #tpu.memory_space<vmem>>, vector<256x9xf32>
    %1 = arith.truncf %0 : vector<256x9xf32> to vector<256x9xbf16>
    %c0_1 = arith.constant 0 : index
    %c0_2 = arith.constant 0 : index
    %2 = vector.load %arg2[%c0_1, %c0_2] : memref<9x8xbf16, #tpu.memory_space<vmem>>, vector<9x8xbf16>
    %cst = arith.constant dense<0.000000e+00> : vector<256x8xf32>
    %3 = tpu.matmul %1, %2, %cst {dimension_numbers = #tpu.dot_dimension_numbers<[1], [0], [0], [1], [0, 0, 1, 1], [], []>} : vector<256x9xbf16>, vector<9x8xbf16>, vector<256x8xf32> -> vector<256x8xf32>
    %c0_3 = arith.constant 0 : index
    %c0_4 = arith.constant 0 : index
    %4 = vector.load %arg3[%c0_3, %c0_4] : memref<1x8xf32, #tpu.memory_space<vmem>>, vector<1x8xf32>
    %5 = vector.broadcast %4 : vector<1x8xf32> to vector<256x8xf32>
    %6 = arith.addf %3, %5 : vector<256x8xf32>
    %cst_5 = arith.constant 0.000000e+00 : f32
    %7 = vector.broadcast %cst_5 : f32 to vector<256x8xf32>
    %8 = arith.maximumf %6, %7 : vector<256x8xf32>
    %9 = arith.truncf %8 : vector<256x8xf32> to vector<256x8xbf16>
    %c0_6 = arith.constant 0 : index
    %c0_7 = arith.constant 0 : index
    %10 = vector.load %arg4[%c0_6, %c0_7] : memref<576x256xbf16, #tpu.memory_space<vmem>>, vector<576x256xbf16>
    %cst_8 = arith.constant dense<0.000000e+00> : vector<576x8xf32>
    %11 = tpu.matmul %10, %9, %cst_8 {dimension_numbers = #tpu.dot_dimension_numbers<[1], [0], [0], [1], [0, 0, 1, 1], [], []>} : vector<576x256xbf16>, vector<256x8xbf16>, vector<576x8xf32> -> vector<576x8xf32>
    %12 = vector.extract_strided_slice %11 {offsets = [0, 0], sizes = [64, 8], strides = [1, 1]} : vector<576x8xf32> to vector<64x8xf32>
    %c0_9 = arith.constant 0 : index
    %c0_10 = arith.constant 0 : index
    %13 = vector.load %arg36[%c0_9, %c0_10] : memref<64x72xf32, #tpu.memory_space<vmem>>, vector<64x8xf32>
    tpu.vector_store %arg36[%c0_9, %c0_10], %12 {strides = array<i32>} : memref<64x72xf32, #tpu.memory_space<vmem>>, vector<64x8xf32>,
    %14 = vector.extract_strided_slice %11 {offsets = [64, 0], sizes = [64, 8], strides = [1, 1]} : vector<576x8xf32> to vector<64x8xf32>
    %c0_11 = arith.constant 0 : index
    %c8 = arith.constant 8 : index
    %15 = vector.load %arg36[%c0_11, %c8] : memref<64x72xf32, #tpu.memory_space<vmem>>, vector<64x8xf32>
    tpu.vector_store %arg36[%c0_11, %c8], %14 {strides = array<i32>} : memref<64x72xf32, #tpu.memory_space<vmem>>, vector<64x8xf32>,
    %16 = vector.extract_strided_slice %11 {offsets = [128, 0], sizes = [64, 8], strides = [1, 1]} : vector<576x8xf32> to vector<64x8xf32>
    %c0_12 = arith.constant 0 : index
    %c16 = arith.constant 16 : index
    %17 = vector.load %arg36[%c0_12, %c16] : memref<64x72xf32, #tpu.memory_space<vmem>>, vector<64x8xf32>
    tpu.vector_store %arg36[%c0_12, %c16], %16 {strides = array<i32>} : memref<64x72xf32, #tpu.memory_space<vmem>>, vector<64x8xf32>,
    %18 = vector.extract_strided_slice %11 {offsets = [192, 0], sizes = [64, 8], strides = [1, 1]} : vector<576x8xf32> to vector<64x8xf32>
    %c0_13 = arith.constant 0 : index
    %c24 = arith.constant 24 : index
    %19 = vector.load %arg36[%c0_13, %c24] : memref<64x72xf32, #tpu.memory_space<vmem>>, vector<64x8xf32>
    tpu.vector_store %arg36[%c0_13, %c24], %18 {strides = array<i32>} : memref<64x72xf32, #tpu.memory_space<vmem>>, vector<64x8xf32>,
    %20 = vector.extract_strided_slice %11 {offsets = [256, 0], sizes = [64, 8], strides = [1, 1]} : vector<576x8xf32> to vector<64x8xf32>
    %c0_14 = arith.constant 0 : index
    %c32 = arith.constant 32 : index
    %21 = vector.load %arg36[%c0_14, %c32] : memref<64x72xf32, #tpu.memory_space<vmem>>, vector<64x8xf32>
    tpu.vector_store %arg36[%c0_14, %c32], %20 {strides = array<i32>} : memref<64x72xf32, #tpu.memory_space<vmem>>, vector<64x8xf32>,
    %22 = vector.extract_strided_slice %11 {offsets = [320, 0], sizes = [64, 8], strides = [1, 1]} : vector<576x8xf32> to vector<64x8xf32>
    %c0_15 = arith.constant 0 : index
    %c40 = arith.constant 40 : index
    %23 = vector.load %arg36[%c0_15, %c40] : memref<64x72xf32, #tpu.memory_space<vmem>>, vector<64x8xf32>
    tpu.vector_store %arg36[%c0_15, %c40], %22 {strides = array<i32>} : memref<64x72xf32, #tpu.memory_space<vmem>>, vector<64x8xf32>,
    %24 = vector.extract_strided_slice %11 {offsets = [384, 0], sizes = [64, 8], strides = [1, 1]} : vector<576x8xf32> to vector<64x8xf32>
    %c0_16 = arith.constant 0 : index
    %c48 = arith.constant 48 : index
    %25 = vector.load %arg36[%c0_16, %c48] : memref<64x72xf32, #tpu.memory_space<vmem>>, vector<64x8xf32>
    tpu.vector_store %arg36[%c0_16, %c48], %24 {strides = array<i32>} : memref<64x72xf32, #tpu.memory_space<vmem>>, vector<64x8xf32>,
    %26 = vector.extract_strided_slice %11 {offsets = [448, 0], sizes = [64, 8], strides = [1, 1]} : vector<576x8xf32> to vector<64x8xf32>
    %c0_17 = arith.constant 0 : index
    %c56 = arith.constant 56 : index
    %27 = vector.load %arg36[%c0_17, %c56] : memref<64x72xf32, #tpu.memory_space<vmem>>, vector<64x8xf32>
    tpu.vector_store %arg36[%c0_17, %c56], %26 {strides = array<i32>} : memref<64x72xf32, #tpu.memory_space<vmem>>, vector<64x8xf32>,
    %28 = vector.extract_strided_slice %11 {offsets = [512, 0], sizes = [64, 8], strides = [1, 1]} : vector<576x8xf32> to vector<64x8xf32>
    %c0_18 = arith.constant 0 : index
    %c64 = arith.constant 64 : index
    %29 = vector.load %arg36[%c0_18, %c64] : memref<64x72xf32, #tpu.memory_space<vmem>>, vector<64x8xf32>
    tpu.vector_store %arg36[%c0_18, %c64], %28 {strides = array<i32>} : memref<64x72xf32, #tpu.memory_space<vmem>>, vector<64x8xf32>,
    %c0_19 = arith.constant 0 : index
    %c0_20 = arith.constant 0 : index
    %30 = vector.load %arg36[%c0_19, %c0_20] : memref<64x72xf32, #tpu.memory_space<vmem>>, vector<64x72xf32>
    %31 = arith.truncf %30 : vector<64x72xf32> to vector<64x72xbf16>
    %c0_21 = arith.constant 0 : index
    %c0_22 = arith.constant 0 : index
    %32 = vector.load %arg10[%c0_21, %c0_22] : memref<72x16xbf16, #tpu.memory_space<vmem>>, vector<72x16xbf16>
    %cst_23 = arith.constant dense<0.000000e+00> : vector<64x16xf32>
    %33 = tpu.matmul %31, %32, %cst_23 {dimension_numbers = #tpu.dot_dimension_numbers<[1], [0], [0], [1], [0, 0, 1, 1], [], []>} : vector<64x72xbf16>, vector<72x16xbf16>, vector<64x16xf32> -> vector<64x16xf32>
    %c0_24 = arith.constant 0 : index
    %c32_25 = arith.constant 32 : index
    %34 = vector.load %arg36[%c0_24, %c32_25] : memref<64x72xf32, #tpu.memory_space<vmem>>, vector<64x8xf32>
    %35 = arith.truncf %34 : vector<64x8xf32> to vector<64x8xbf16>
    %c0_26 = arith.constant 0 : index
    %c0_27 = arith.constant 0 : index
    %36 = vector.load %arg14[%c0_26, %c0_27] : memref<8x16xbf16, #tpu.memory_space<vmem>>, vector<8x16xbf16>
    %cst_28 = arith.constant dense<0.000000e+00> : vector<64x16xf32>
    %37 = tpu.matmul %35, %36, %cst_28 {dimension_numbers = #tpu.dot_dimension_numbers<[1], [0], [0], [1], [0, 0, 1, 1], [], []>} : vector<64x8xbf16>, vector<8x16xbf16>, vector<64x16xf32> -> vector<64x16xf32>
    %c0_29 = arith.constant 0 : index
    %c0_30 = arith.constant 0 : index
    %38 = vector.load %arg15[%c0_29, %c0_30] : memref<1x16xf32, #tpu.memory_space<vmem>>, vector<1x16xf32>
    %39 = vector.broadcast %38 : vector<1x16xf32> to vector<64x16xf32>
    %40 = arith.addf %37, %39 : vector<64x16xf32>
    %c0_31 = arith.constant 0 : index
    %c0_32 = arith.constant 0 : index
    %41 = vector.load %arg11[%c0_31, %c0_32] : memref<1x16xf32, #tpu.memory_space<vmem>>, vector<1x16xf32>
    %42 = vector.broadcast %41 : vector<1x16xf32> to vector<64x16xf32>
    %43 = arith.addf %33, %42 : vector<64x16xf32>
    %cst_33 = arith.constant 0.000000e+00 : f32
    %44 = vector.broadcast %cst_33 : f32 to vector<64x16xf32>
    %45 = arith.maximumf %43, %44 : vector<64x16xf32>
    %46 = arith.truncf %45 : vector<64x16xf32> to vector<64x16xbf16>
    %c0_34 = arith.constant 0 : index
    %c0_35 = arith.constant 0 : index
    %47 = vector.load %arg5[%c0_34, %c0_35] : memref<576x64xbf16, #tpu.memory_space<vmem>>, vector<576x64xbf16>
    %cst_36 = arith.constant dense<0.000000e+00> : vector<576x16xf32>
    %48 = tpu.matmul %47, %46, %cst_36 {dimension_numbers = #tpu.dot_dimension_numbers<[1], [0], [0], [1], [0, 0, 1, 1], [], []>} : vector<576x64xbf16>, vector<64x16xbf16>, vector<576x16xf32> -> vector<576x16xf32>
    %49 = vector.extract_strided_slice %48 {offsets = [0, 0], sizes = [64, 16], strides = [1, 1]} : vector<576x16xf32> to vector<64x16xf32>
    %c0_37 = arith.constant 0 : index
    %c0_38 = arith.constant 0 : index
    %50 = vector.load %arg37[%c0_37, %c0_38] : memref<64x144xf32, #tpu.memory_space<vmem>>, vector<64x16xf32>
    tpu.vector_store %arg37[%c0_37, %c0_38], %49 {strides = array<i32>} : memref<64x144xf32, #tpu.memory_space<vmem>>, vector<64x16xf32>,
    %51 = vector.extract_strided_slice %48 {offsets = [64, 0], sizes = [64, 16], strides = [1, 1]} : vector<576x16xf32> to vector<64x16xf32>
    %c0_39 = arith.constant 0 : index
    %c16_40 = arith.constant 16 : index
    %52 = vector.load %arg37[%c0_39, %c16_40] : memref<64x144xf32, #tpu.memory_space<vmem>>, vector<64x16xf32>
    tpu.vector_store %arg37[%c0_39, %c16_40], %51 {strides = array<i32>} : memref<64x144xf32, #tpu.memory_space<vmem>>, vector<64x16xf32>,
    %53 = vector.extract_strided_slice %48 {offsets = [128, 0], sizes = [64, 16], strides = [1, 1]} : vector<576x16xf32> to vector<64x16xf32>
    %c0_41 = arith.constant 0 : index
    %c32_42 = arith.constant 32 : index
    %54 = vector.load %arg37[%c0_41, %c32_42] : memref<64x144xf32, #tpu.memory_space<vmem>>, vector<64x16xf32>
    tpu.vector_store %arg37[%c0_41, %c32_42], %53 {strides = array<i32>} : memref<64x144xf32, #tpu.memory_space<vmem>>, vector<64x16xf32>,
    %55 = vector.extract_strided_slice %48 {offsets = [192, 0], sizes = [64, 16], strides = [1, 1]} : vector<576x16xf32> to vector<64x16xf32>
    %c0_43 = arith.constant 0 : index
    %c48_44 = arith.constant 48 : index
    %56 = vector.load %arg37[%c0_43, %c48_44] : memref<64x144xf32, #tpu.memory_space<vmem>>, vector<64x16xf32>
    tpu.vector_store %arg37[%c0_43, %c48_44], %55 {strides = array<i32>} : memref<64x144xf32, #tpu.memory_space<vmem>>, vector<64x16xf32>,
    %57 = vector.extract_strided_slice %48 {offsets = [256, 0], sizes = [64, 16], strides = [1, 1]} : vector<576x16xf32> to vector<64x16xf32>
    %c0_45 = arith.constant 0 : index
    %c64_46 = arith.constant 64 : index
    %58 = vector.load %arg37[%c0_45, %c64_46] : memref<64x144xf32, #tpu.memory_space<vmem>>, vector<64x16xf32>
    tpu.vector_store %arg37[%c0_45, %c64_46], %57 {strides = array<i32>} : memref<64x144xf32, #tpu.memory_space<vmem>>, vector<64x16xf32>,
    %59 = vector.extract_strided_slice %48 {offsets = [320, 0], sizes = [64, 16], strides = [1, 1]} : vector<576x16xf32> to vector<64x16xf32>
    %c0_47 = arith.constant 0 : index
    %c80 = arith.constant 80 : index
    %60 = vector.load %arg37[%c0_47, %c80] : memref<64x144xf32, #tpu.memory_space<vmem>>, vector<64x16xf32>
    tpu.vector_store %arg37[%c0_47, %c80], %59 {strides = array<i32>} : memref<64x144xf32, #tpu.memory_space<vmem>>, vector<64x16xf32>,
    %61 = vector.extract_strided_slice %48 {offsets = [384, 0], sizes = [64, 16], strides = [1, 1]} : vector<576x16xf32> to vector<64x16xf32>
    %c0_48 = arith.constant 0 : index
    %c96 = arith.constant 96 : index
    %62 = vector.load %arg37[%c0_48, %c96] : memref<64x144xf32, #tpu.memory_space<vmem>>, vector<64x16xf32>
    tpu.vector_store %arg37[%c0_48, %c96], %61 {strides = array<i32>} : memref<64x144xf32, #tpu.memory_space<vmem>>, vector<64x16xf32>,
    %63 = vector.extract_strided_slice %48 {offsets = [448, 0], sizes = [64, 16], strides = [1, 1]} : vector<576x16xf32> to vector<64x16xf32>
    %c0_49 = arith.constant 0 : index
    %c112 = arith.constant 112 : index
    %64 = vector.load %arg37[%c0_49, %c112] : memref<64x144xf32, #tpu.memory_space<vmem>>, vector<64x16xf32>
    tpu.vector_store %arg37[%c0_49, %c112], %63 {strides = array<i32>} : memref<64x144xf32, #tpu.memory_space<vmem>>, vector<64x16xf32>,
    %65 = vector.extract_strided_slice %48 {offsets = [512, 0], sizes = [64, 16], strides = [1, 1]} : vector<576x16xf32> to vector<64x16xf32>
    %c0_50 = arith.constant 0 : index
    %c128 = arith.constant 128 : index
    %66 = vector.load %arg37[%c0_50, %c128] : memref<64x144xf32, #tpu.memory_space<vmem>>, vector<64x16xf32>
    tpu.vector_store %arg37[%c0_50, %c128], %65 {strides = array<i32>} : memref<64x144xf32, #tpu.memory_space<vmem>>, vector<64x16xf32>,
    %c0_51 = arith.constant 0 : index
    %c0_52 = arith.constant 0 : index
    %67 = vector.load %arg37[%c0_51, %c0_52] : memref<64x144xf32, #tpu.memory_space<vmem>>, vector<64x144xf32>
    %68 = arith.truncf %67 : vector<64x144xf32> to vector<64x144xbf16>
    %c0_53 = arith.constant 0 : index
    %c0_54 = arith.constant 0 : index
    %69 = vector.load %arg12[%c0_53, %c0_54] : memref<144x16xbf16, #tpu.memory_space<vmem>>, vector<144x16xbf16>
    %cst_55 = arith.constant dense<0.000000e+00> : vector<64x16xf32>
    %70 = tpu.matmul %68, %69, %cst_55 {dimension_numbers = #tpu.dot_dimension_numbers<[1], [0], [0], [1], [0, 0, 1, 1], [], []>} : vector<64x144xbf16>, vector<144x16xbf16>, vector<64x16xf32> -> vector<64x16xf32>
    %c0_56 = arith.constant 0 : index
    %c0_57 = arith.constant 0 : index
    %71 = vector.load %arg13[%c0_56, %c0_57] : memref<1x16xf32, #tpu.memory_space<vmem>>, vector<1x16xf32>
    %72 = vector.broadcast %71 : vector<1x16xf32> to vector<64x16xf32>
    %73 = arith.addf %70, %72 : vector<64x16xf32>
    %74 = arith.addf %73, %40 : vector<64x16xf32>
    %cst_58 = arith.constant 0.000000e+00 : f32
    %75 = vector.broadcast %cst_58 : f32 to vector<64x16xf32>
    %76 = arith.maximumf %74, %75 : vector<64x16xf32>
    %77 = arith.truncf %76 : vector<64x16xf32> to vector<64x16xbf16>
    %c0_59 = arith.constant 0 : index
    %c0_60 = arith.constant 0 : index
    %78 = vector.load %arg6[%c0_59, %c0_60] : memref<144x64xbf16, #tpu.memory_space<vmem>>, vector<144x64xbf16>
    %cst_61 = arith.constant dense<0.000000e+00> : vector<144x16xf32>
    %79 = tpu.matmul %78, %77, %cst_61 {dimension_numbers = #tpu.dot_dimension_numbers<[1], [0], [0], [1], [0, 0, 1, 1], [], []>} : vector<144x64xbf16>, vector<64x16xbf16>, vector<144x16xf32> -> vector<144x16xf32>
    %80 = vector.extract_strided_slice %79 {offsets = [0, 0], sizes = [16, 16], strides = [1, 1]} : vector<144x16xf32> to vector<16x16xf32>
    %c0_62 = arith.constant 0 : index
    %c0_63 = arith.constant 0 : index
    %81 = vector.load %arg38[%c0_62, %c0_63] : memref<16x144xf32, #tpu.memory_space<vmem>>, vector<16x16xf32>
    tpu.vector_store %arg38[%c0_62, %c0_63], %80 {strides = array<i32>} : memref<16x144xf32, #tpu.memory_space<vmem>>, vector<16x16xf32>,
    %82 = vector.extract_strided_slice %79 {offsets = [16, 0], sizes = [16, 16], strides = [1, 1]} : vector<144x16xf32> to vector<16x16xf32>
    %c0_64 = arith.constant 0 : index
    %c16_65 = arith.constant 16 : index
    %83 = vector.load %arg38[%c0_64, %c16_65] : memref<16x144xf32, #tpu.memory_space<vmem>>, vector<16x16xf32>
    tpu.vector_store %arg38[%c0_64, %c16_65], %82 {strides = array<i32>} : memref<16x144xf32, #tpu.memory_space<vmem>>, vector<16x16xf32>,
    %84 = vector.extract_strided_slice %79 {offsets = [32, 0], sizes = [16, 16], strides = [1, 1]} : vector<144x16xf32> to vector<16x16xf32>
    %c0_66 = arith.constant 0 : index
    %c32_67 = arith.constant 32 : index
    %85 = vector.load %arg38[%c0_66, %c32_67] : memref<16x144xf32, #tpu.memory_space<vmem>>, vector<16x16xf32>
    tpu.vector_store %arg38[%c0_66, %c32_67], %84 {strides = array<i32>} : memref<16x144xf32, #tpu.memory_space<vmem>>, vector<16x16xf32>,
    %86 = vector.extract_strided_slice %79 {offsets = [48, 0], sizes = [16, 16], strides = [1, 1]} : vector<144x16xf32> to vector<16x16xf32>
    %c0_68 = arith.constant 0 : index
    %c48_69 = arith.constant 48 : index
    %87 = vector.load %arg38[%c0_68, %c48_69] : memref<16x144xf32, #tpu.memory_space<vmem>>, vector<16x16xf32>
    tpu.vector_store %arg38[%c0_68, %c48_69], %86 {strides = array<i32>} : memref<16x144xf32, #tpu.memory_space<vmem>>, vector<16x16xf32>,
    %88 = vector.extract_strided_slice %79 {offsets = [64, 0], sizes = [16, 16], strides = [1, 1]} : vector<144x16xf32> to vector<16x16xf32>
    %c0_70 = arith.constant 0 : index
    %c64_71 = arith.constant 64 : index
    %89 = vector.load %arg38[%c0_70, %c64_71] : memref<16x144xf32, #tpu.memory_space<vmem>>, vector<16x16xf32>
    tpu.vector_store %arg38[%c0_70, %c64_71], %88 {strides = array<i32>} : memref<16x144xf32, #tpu.memory_space<vmem>>, vector<16x16xf32>,
    %90 = vector.extract_strided_slice %79 {offsets = [80, 0], sizes = [16, 16], strides = [1, 1]} : vector<144x16xf32> to vector<16x16xf32>
    %c0_72 = arith.constant 0 : index
    %c80_73 = arith.constant 80 : index
    %91 = vector.load %arg38[%c0_72, %c80_73] : memref<16x144xf32, #tpu.memory_space<vmem>>, vector<16x16xf32>
    tpu.vector_store %arg38[%c0_72, %c80_73], %90 {strides = array<i32>} : memref<16x144xf32, #tpu.memory_space<vmem>>, vector<16x16xf32>,
    %92 = vector.extract_strided_slice %79 {offsets = [96, 0], sizes = [16, 16], strides = [1, 1]} : vector<144x16xf32> to vector<16x16xf32>
    %c0_74 = arith.constant 0 : index
    %c96_75 = arith.constant 96 : index
    %93 = vector.load %arg38[%c0_74, %c96_75] : memref<16x144xf32, #tpu.memory_space<vmem>>, vector<16x16xf32>
    tpu.vector_store %arg38[%c0_74, %c96_75], %92 {strides = array<i32>} : memref<16x144xf32, #tpu.memory_space<vmem>>, vector<16x16xf32>,
    %94 = vector.extract_strided_slice %79 {offsets = [112, 0], sizes = [16, 16], strides = [1, 1]} : vector<144x16xf32> to vector<16x16xf32>
    %c0_76 = arith.constant 0 : index
    %c112_77 = arith.constant 112 : index
    %95 = vector.load %arg38[%c0_76, %c112_77] : memref<16x144xf32, #tpu.memory_space<vmem>>, vector<16x16xf32>
    tpu.vector_store %arg38[%c0_76, %c112_77], %94 {strides = array<i32>} : memref<16x144xf32, #tpu.memory_space<vmem>>, vector<16x16xf32>,
    %96 = vector.extract_strided_slice %79 {offsets = [128, 0], sizes = [16, 16], strides = [1, 1]} : vector<144x16xf32> to vector<16x16xf32>
    %c0_78 = arith.constant 0 : index
    %c128_79 = arith.constant 128 : index
    %97 = vector.load %arg38[%c0_78, %c128_79] : memref<16x144xf32, #tpu.memory_space<vmem>>, vector<16x16xf32>
    tpu.vector_store %arg38[%c0_78, %c128_79], %96 {strides = array<i32>} : memref<16x144xf32, #tpu.memory_space<vmem>>, vector<16x16xf32>,
    %c0_80 = arith.constant 0 : index
    %c0_81 = arith.constant 0 : index
    %98 = vector.load %arg38[%c0_80, %c0_81] : memref<16x144xf32, #tpu.memory_space<vmem>>, vector<16x144xf32>
    %99 = arith.truncf %98 : vector<16x144xf32> to vector<16x144xbf16>
    %c0_82 = arith.constant 0 : index
    %c0_83 = arith.constant 0 : index
    %100 = vector.load %arg16[%c0_82, %c0_83] : memref<144x32xbf16, #tpu.memory_space<vmem>>, vector<144x32xbf16>
    %cst_84 = arith.constant dense<0.000000e+00> : vector<16x32xf32>
    %101 = tpu.matmul %99, %100, %cst_84 {dimension_numbers = #tpu.dot_dimension_numbers<[1], [0], [0], [1], [0, 0, 1, 1], [], []>} : vector<16x144xbf16>, vector<144x32xbf16>, vector<16x32xf32> -> vector<16x32xf32>
    %c0_85 = arith.constant 0 : index
    %c64_86 = arith.constant 64 : index
    %102 = vector.load %arg38[%c0_85, %c64_86] : memref<16x144xf32, #tpu.memory_space<vmem>>, vector<16x16xf32>
    %103 = arith.truncf %102 : vector<16x16xf32> to vector<16x16xbf16>
    %c0_87 = arith.constant 0 : index
    %c0_88 = arith.constant 0 : index
    %104 = vector.load %arg20[%c0_87, %c0_88] : memref<16x32xbf16, #tpu.memory_space<vmem>>, vector<16x32xbf16>
    %cst_89 = arith.constant dense<0.000000e+00> : vector<16x32xf32>
    %105 = tpu.matmul %103, %104, %cst_89 {dimension_numbers = #tpu.dot_dimension_numbers<[1], [0], [0], [1], [0, 0, 1, 1], [], []>} : vector<16x16xbf16>, vector<16x32xbf16>, vector<16x32xf32> -> vector<16x32xf32>
    %c0_90 = arith.constant 0 : index
    %c0_91 = arith.constant 0 : index
    %106 = vector.load %arg21[%c0_90, %c0_91] : memref<1x32xf32, #tpu.memory_space<vmem>>, vector<1x32xf32>
    %107 = vector.broadcast %106 : vector<1x32xf32> to vector<16x32xf32>
    %108 = arith.addf %105, %107 : vector<16x32xf32>
    %c0_92 = arith.constant 0 : index
    %c0_93 = arith.constant 0 : index
    %109 = vector.load %arg17[%c0_92, %c0_93] : memref<1x32xf32, #tpu.memory_space<vmem>>, vector<1x32xf32>
    %110 = vector.broadcast %109 : vector<1x32xf32> to vector<16x32xf32>
    %111 = arith.addf %101, %110 : vector<16x32xf32>
    %cst_94 = arith.constant 0.000000e+00 : f32
    %112 = vector.broadcast %cst_94 : f32 to vector<16x32xf32>
    %113 = arith.maximumf %111, %112 : vector<16x32xf32>
    %114 = arith.truncf %113 : vector<16x32xf32> to vector<16x32xbf16>
    %c0_95 = arith.constant 0 : index
    %c0_96 = arith.constant 0 : index
    %115 = vector.load %arg7[%c0_95, %c0_96] : memref<144x16xbf16, #tpu.memory_space<vmem>>, vector<144x16xbf16>
    %cst_97 = arith.constant dense<0.000000e+00> : vector<144x32xf32>
    %116 = tpu.matmul %115, %114, %cst_97 {dimension_numbers = #tpu.dot_dimension_numbers<[1], [0], [0], [1], [0, 0, 1, 1], [], []>} : vector<144x16xbf16>, vector<16x32xbf16>, vector<144x32xf32> -> vector<144x32xf32>
    %117 = vector.extract_strided_slice %116 {offsets = [0, 0], sizes = [16, 32], strides = [1, 1]} : vector<144x32xf32> to vector<16x32xf32>
    %c0_98 = arith.constant 0 : index
    %c0_99 = arith.constant 0 : index
    %118 = vector.load %arg39[%c0_98, %c0_99] : memref<16x288xf32, #tpu.memory_space<vmem>>, vector<16x32xf32>
    tpu.vector_store %arg39[%c0_98, %c0_99], %117 {strides = array<i32>} : memref<16x288xf32, #tpu.memory_space<vmem>>, vector<16x32xf32>,
    %119 = vector.extract_strided_slice %116 {offsets = [16, 0], sizes = [16, 32], strides = [1, 1]} : vector<144x32xf32> to vector<16x32xf32>
    %c0_100 = arith.constant 0 : index
    %c32_101 = arith.constant 32 : index
    %120 = vector.load %arg39[%c0_100, %c32_101] : memref<16x288xf32, #tpu.memory_space<vmem>>, vector<16x32xf32>
    tpu.vector_store %arg39[%c0_100, %c32_101], %119 {strides = array<i32>} : memref<16x288xf32, #tpu.memory_space<vmem>>, vector<16x32xf32>,
    %121 = vector.extract_strided_slice %116 {offsets = [32, 0], sizes = [16, 32], strides = [1, 1]} : vector<144x32xf32> to vector<16x32xf32>
    %c0_102 = arith.constant 0 : index
    %c64_103 = arith.constant 64 : index
    %122 = vector.load %arg39[%c0_102, %c64_103] : memref<16x288xf32, #tpu.memory_space<vmem>>, vector<16x32xf32>
    tpu.vector_store %arg39[%c0_102, %c64_103], %121 {strides = array<i32>} : memref<16x288xf32, #tpu.memory_space<vmem>>, vector<16x32xf32>,
    %123 = vector.extract_strided_slice %116 {offsets = [48, 0], sizes = [16, 32], strides = [1, 1]} : vector<144x32xf32> to vector<16x32xf32>
    %c0_104 = arith.constant 0 : index
    %c96_105 = arith.constant 96 : index
    %124 = vector.load %arg39[%c0_104, %c96_105] : memref<16x288xf32, #tpu.memory_space<vmem>>, vector<16x32xf32>
    tpu.vector_store %arg39[%c0_104, %c96_105], %123 {strides = array<i32>} : memref<16x288xf32, #tpu.memory_space<vmem>>, vector<16x32xf32>,
    %125 = vector.extract_strided_slice %116 {offsets = [64, 0], sizes = [16, 32], strides = [1, 1]} : vector<144x32xf32> to vector<16x32xf32>
    %c0_106 = arith.constant 0 : index
    %c128_107 = arith.constant 128 : index
    %126 = vector.load %arg39[%c0_106, %c128_107] : memref<16x288xf32, #tpu.memory_space<vmem>>, vector<16x32xf32>
    tpu.vector_store %arg39[%c0_106, %c128_107], %125 {strides = array<i32>} : memref<16x288xf32, #tpu.memory_space<vmem>>, vector<16x32xf32>,
    %127 = vector.extract_strided_slice %116 {offsets = [80, 0], sizes = [16, 32], strides = [1, 1]} : vector<144x32xf32> to vector<16x32xf32>
    %c0_108 = arith.constant 0 : index
    %c160 = arith.constant 160 : index
    %128 = vector.load %arg39[%c0_108, %c160] : memref<16x288xf32, #tpu.memory_space<vmem>>, vector<16x32xf32>
    tpu.vector_store %arg39[%c0_108, %c160], %127 {strides = array<i32>} : memref<16x288xf32, #tpu.memory_space<vmem>>, vector<16x32xf32>,
    %129 = vector.extract_strided_slice %116 {offsets = [96, 0], sizes = [16, 32], strides = [1, 1]} : vector<144x32xf32> to vector<16x32xf32>
    %c0_109 = arith.constant 0 : index
    %c192 = arith.constant 192 : index
    %130 = vector.load %arg39[%c0_109, %c192] : memref<16x288xf32, #tpu.memory_space<vmem>>, vector<16x32xf32>
    tpu.vector_store %arg39[%c0_109, %c192], %129 {strides = array<i32>} : memref<16x288xf32, #tpu.memory_space<vmem>>, vector<16x32xf32>,
    %131 = vector.extract_strided_slice %116 {offsets = [112, 0], sizes = [16, 32], strides = [1, 1]} : vector<144x32xf32> to vector<16x32xf32>
    %c0_110 = arith.constant 0 : index
    %c224 = arith.constant 224 : index
    %132 = vector.load %arg39[%c0_110, %c224] : memref<16x288xf32, #tpu.memory_space<vmem>>, vector<16x32xf32>
    tpu.vector_store %arg39[%c0_110, %c224], %131 {strides = array<i32>} : memref<16x288xf32, #tpu.memory_space<vmem>>, vector<16x32xf32>,
    %133 = vector.extract_strided_slice %116 {offsets = [128, 0], sizes = [16, 32], strides = [1, 1]} : vector<144x32xf32> to vector<16x32xf32>
    %c0_111 = arith.constant 0 : index
    %c256 = arith.constant 256 : index
    %134 = vector.load %arg39[%c0_111, %c256] : memref<16x288xf32, #tpu.memory_space<vmem>>, vector<16x32xf32>
    tpu.vector_store %arg39[%c0_111, %c256], %133 {strides = array<i32>} : memref<16x288xf32, #tpu.memory_space<vmem>>, vector<16x32xf32>,
    %c0_112 = arith.constant 0 : index
    %c0_113 = arith.constant 0 : index
    %135 = vector.load %arg39[%c0_112, %c0_113] : memref<16x288xf32, #tpu.memory_space<vmem>>, vector<16x288xf32>
    %136 = arith.truncf %135 : vector<16x288xf32> to vector<16x288xbf16>
    %c0_114 = arith.constant 0 : index
    %c0_115 = arith.constant 0 : index
    %137 = vector.load %arg18[%c0_114, %c0_115] : memref<288x32xbf16, #tpu.memory_space<vmem>>, vector<288x32xbf16>
    %cst_116 = arith.constant dense<0.000000e+00> : vector<16x32xf32>
    %138 = tpu.matmul %136, %137, %cst_116 {dimension_numbers = #tpu.dot_dimension_numbers<[1], [0], [0], [1], [0, 0, 1, 1], [], []>} : vector<16x288xbf16>, vector<288x32xbf16>, vector<16x32xf32> -> vector<16x32xf32>
    %c0_117 = arith.constant 0 : index
    %c0_118 = arith.constant 0 : index
    %139 = vector.load %arg19[%c0_117, %c0_118] : memref<1x32xf32, #tpu.memory_space<vmem>>, vector<1x32xf32>
    %140 = vector.broadcast %139 : vector<1x32xf32> to vector<16x32xf32>
    %141 = arith.addf %138, %140 : vector<16x32xf32>
    %142 = arith.addf %141, %108 : vector<16x32xf32>
    %cst_119 = arith.constant 0.000000e+00 : f32
    %143 = vector.broadcast %cst_119 : f32 to vector<16x32xf32>
    %144 = arith.maximumf %142, %143 : vector<16x32xf32>
    %145 = arith.truncf %144 : vector<16x32xf32> to vector<16x32xbf16>
    %c0_120 = arith.constant 0 : index
    %c0_121 = arith.constant 0 : index
    %146 = vector.load %arg8[%c0_120, %c0_121] : memref<36x16xbf16, #tpu.memory_space<vmem>>, vector<36x16xbf16>
    %cst_122 = arith.constant dense<0.000000e+00> : vector<36x32xf32>
    %147 = tpu.matmul %146, %145, %cst_122 {dimension_numbers = #tpu.dot_dimension_numbers<[1], [0], [0], [1], [0, 0, 1, 1], [], []>} : vector<36x16xbf16>, vector<16x32xbf16>, vector<36x32xf32> -> vector<36x32xf32>
    %148 = vector.extract_strided_slice %147 {offsets = [0, 0], sizes = [4, 32], strides = [1, 1]} : vector<36x32xf32> to vector<4x32xf32>
    %c0_123 = arith.constant 0 : index
    %c0_124 = arith.constant 0 : index
    %149 = vector.load %arg40[%c0_123, %c0_124] : memref<8x288xf32, #tpu.memory_space<vmem>>, vector<4x32xf32>
    tpu.vector_store %arg40[%c0_123, %c0_124], %148 {strides = array<i32>} : memref<8x288xf32, #tpu.memory_space<vmem>>, vector<4x32xf32>,
    %150 = vector.extract_strided_slice %147 {offsets = [4, 0], sizes = [4, 32], strides = [1, 1]} : vector<36x32xf32> to vector<4x32xf32>
    %c0_125 = arith.constant 0 : index
    %c32_126 = arith.constant 32 : index
    %151 = vector.load %arg40[%c0_125, %c32_126] : memref<8x288xf32, #tpu.memory_space<vmem>>, vector<4x32xf32>
    tpu.vector_store %arg40[%c0_125, %c32_126], %150 {strides = array<i32>} : memref<8x288xf32, #tpu.memory_space<vmem>>, vector<4x32xf32>,
    %152 = vector.extract_strided_slice %147 {offsets = [8, 0], sizes = [4, 32], strides = [1, 1]} : vector<36x32xf32> to vector<4x32xf32>
    %c0_127 = arith.constant 0 : index
    %c64_128 = arith.constant 64 : index
    %153 = vector.load %arg40[%c0_127, %c64_128] : memref<8x288xf32, #tpu.memory_space<vmem>>, vector<4x32xf32>
    tpu.vector_store %arg40[%c0_127, %c64_128], %152 {strides = array<i32>} : memref<8x288xf32, #tpu.memory_space<vmem>>, vector<4x32xf32>,
    %154 = vector.extract_strided_slice %147 {offsets = [12, 0], sizes = [4, 32], strides = [1, 1]} : vector<36x32xf32> to vector<4x32xf32>
    %c0_129 = arith.constant 0 : index
    %c96_130 = arith.constant 96 : index
    %155 = vector.load %arg40[%c0_129, %c96_130] : memref<8x288xf32, #tpu.memory_space<vmem>>, vector<4x32xf32>
    tpu.vector_store %arg40[%c0_129, %c96_130], %154 {strides = array<i32>} : memref<8x288xf32, #tpu.memory_space<vmem>>, vector<4x32xf32>,
    %156 = vector.extract_strided_slice %147 {offsets = [16, 0], sizes = [4, 32], strides = [1, 1]} : vector<36x32xf32> to vector<4x32xf32>
    %c0_131 = arith.constant 0 : index
    %c128_132 = arith.constant 128 : index
    %157 = vector.load %arg40[%c0_131, %c128_132] : memref<8x288xf32, #tpu.memory_space<vmem>>, vector<4x32xf32>
    tpu.vector_store %arg40[%c0_131, %c128_132], %156 {strides = array<i32>} : memref<8x288xf32, #tpu.memory_space<vmem>>, vector<4x32xf32>,
    %158 = vector.extract_strided_slice %147 {offsets = [20, 0], sizes = [4, 32], strides = [1, 1]} : vector<36x32xf32> to vector<4x32xf32>
    %c0_133 = arith.constant 0 : index
    %c160_134 = arith.constant 160 : index
    %159 = vector.load %arg40[%c0_133, %c160_134] : memref<8x288xf32, #tpu.memory_space<vmem>>, vector<4x32xf32>
    tpu.vector_store %arg40[%c0_133, %c160_134], %158 {strides = array<i32>} : memref<8x288xf32, #tpu.memory_space<vmem>>, vector<4x32xf32>,
    %160 = vector.extract_strided_slice %147 {offsets = [24, 0], sizes = [4, 32], strides = [1, 1]} : vector<36x32xf32> to vector<4x32xf32>
    %c0_135 = arith.constant 0 : index
    %c192_136 = arith.constant 192 : index
    %161 = vector.load %arg40[%c0_135, %c192_136] : memref<8x288xf32, #tpu.memory_space<vmem>>, vector<4x32xf32>
    tpu.vector_store %arg40[%c0_135, %c192_136], %160 {strides = array<i32>} : memref<8x288xf32, #tpu.memory_space<vmem>>, vector<4x32xf32>,
    %162 = vector.extract_strided_slice %147 {offsets = [28, 0], sizes = [4, 32], strides = [1, 1]} : vector<36x32xf32> to vector<4x32xf32>
    %c0_137 = arith.constant 0 : index
    %c224_138 = arith.constant 224 : index
    %163 = vector.load %arg40[%c0_137, %c224_138] : memref<8x288xf32, #tpu.memory_space<vmem>>, vector<4x32xf32>
    tpu.vector_store %arg40[%c0_137, %c224_138], %162 {strides = array<i32>} : memref<8x288xf32, #tpu.memory_space<vmem>>, vector<4x32xf32>,
    %164 = vector.extract_strided_slice %147 {offsets = [32, 0], sizes = [4, 32], strides = [1, 1]} : vector<36x32xf32> to vector<4x32xf32>
    %c0_139 = arith.constant 0 : index
    %c256_140 = arith.constant 256 : index
    %165 = vector.load %arg40[%c0_139, %c256_140] : memref<8x288xf32, #tpu.memory_space<vmem>>, vector<4x32xf32>
    tpu.vector_store %arg40[%c0_139, %c256_140], %164 {strides = array<i32>} : memref<8x288xf32, #tpu.memory_space<vmem>>, vector<4x32xf32>,
    %c0_141 = arith.constant 0 : index
    %c0_142 = arith.constant 0 : index
    %166 = vector.load %arg40[%c0_141, %c0_142] : memref<8x288xf32, #tpu.memory_space<vmem>>, vector<4x288xf32>
    %167 = arith.truncf %166 : vector<4x288xf32> to vector<4x288xbf16>
    %c0_143 = arith.constant 0 : index
    %c0_144 = arith.constant 0 : index
    %168 = vector.load %arg22[%c0_143, %c0_144] : memref<288x128xbf16, #tpu.memory_space<vmem>>, vector<288x128xbf16>
    %cst_145 = arith.constant dense<0.000000e+00> : vector<4x128xf32>
    %169 = tpu.matmul %167, %168, %cst_145 {dimension_numbers = #tpu.dot_dimension_numbers<[1], [0], [0], [1], [0, 0, 1, 1], [], []>} : vector<4x288xbf16>, vector<288x128xbf16>, vector<4x128xf32> -> vector<4x128xf32>
    %c0_146 = arith.constant 0 : index
    %c128_147 = arith.constant 128 : index
    %170 = vector.load %arg40[%c0_146, %c128_147] : memref<8x288xf32, #tpu.memory_space<vmem>>, vector<4x32xf32>
    %171 = arith.truncf %170 : vector<4x32xf32> to vector<4x32xbf16>
    %c0_148 = arith.constant 0 : index
    %c0_149 = arith.constant 0 : index
    %172 = vector.load %arg26[%c0_148, %c0_149] : memref<32x128xbf16, #tpu.memory_space<vmem>>, vector<32x128xbf16>
    %cst_150 = arith.constant dense<0.000000e+00> : vector<4x128xf32>
    %173 = tpu.matmul %171, %172, %cst_150 {dimension_numbers = #tpu.dot_dimension_numbers<[1], [0], [0], [1], [0, 0, 1, 1], [], []>} : vector<4x32xbf16>, vector<32x128xbf16>, vector<4x128xf32> -> vector<4x128xf32>
    %c0_151 = arith.constant 0 : index
    %c0_152 = arith.constant 0 : index
    %174 = vector.load %arg27[%c0_151, %c0_152] : memref<1x128xf32, #tpu.memory_space<vmem>>, vector<1x128xf32>
    %175 = vector.broadcast %174 : vector<1x128xf32> to vector<4x128xf32>
    %176 = arith.addf %173, %175 : vector<4x128xf32>
    %c0_153 = arith.constant 0 : index
    %c0_154 = arith.constant 0 : index
    %177 = vector.load %arg23[%c0_153, %c0_154] : memref<1x128xf32, #tpu.memory_space<vmem>>, vector<1x128xf32>
    %178 = vector.broadcast %177 : vector<1x128xf32> to vector<4x128xf32>
    %179 = arith.addf %169, %178 : vector<4x128xf32>
    %cst_155 = arith.constant 0.000000e+00 : f32
    %180 = vector.broadcast %cst_155 : f32 to vector<4x128xf32>
    %181 = arith.maximumf %179, %180 : vector<4x128xf32>
    %182 = arith.truncf %181 : vector<4x128xf32> to vector<4x128xbf16>
    %c0_156 = arith.constant 0 : index
    %c0_157 = arith.constant 0 : index
    %183 = vector.load %arg9[%c0_156, %c0_157] : memref<36x4xbf16, #tpu.memory_space<vmem>>, vector<36x4xbf16>
    %cst_158 = arith.constant dense<0.000000e+00> : vector<36x128xf32>
    %184 = tpu.matmul %183, %182, %cst_158 {dimension_numbers = #tpu.dot_dimension_numbers<[1], [0], [0], [1], [0, 0, 1, 1], [], []>} : vector<36x4xbf16>, vector<4x128xbf16>, vector<36x128xf32> -> vector<36x128xf32>
    %185 = vector.extract_strided_slice %184 {offsets = [0, 0], sizes = [4, 128], strides = [1, 1]} : vector<36x128xf32> to vector<4x128xf32>
    %c0_159 = arith.constant 0 : index
    %c0_160 = arith.constant 0 : index
    %186 = vector.load %arg41[%c0_159, %c0_160] : memref<8x1152xf32, #tpu.memory_space<vmem>>, vector<4x128xf32>
    tpu.vector_store %arg41[%c0_159, %c0_160], %185 {strides = array<i32>} : memref<8x1152xf32, #tpu.memory_space<vmem>>, vector<4x128xf32>,
    %187 = vector.extract_strided_slice %184 {offsets = [4, 0], sizes = [4, 128], strides = [1, 1]} : vector<36x128xf32> to vector<4x128xf32>
    %c0_161 = arith.constant 0 : index
    %c128_162 = arith.constant 128 : index
    %188 = vector.load %arg41[%c0_161, %c128_162] : memref<8x1152xf32, #tpu.memory_space<vmem>>, vector<4x128xf32>
    tpu.vector_store %arg41[%c0_161, %c128_162], %187 {strides = array<i32>} : memref<8x1152xf32, #tpu.memory_space<vmem>>, vector<4x128xf32>,
    %189 = vector.extract_strided_slice %184 {offsets = [8, 0], sizes = [4, 128], strides = [1, 1]} : vector<36x128xf32> to vector<4x128xf32>
    %c0_163 = arith.constant 0 : index
    %c256_164 = arith.constant 256 : index
    %190 = vector.load %arg41[%c0_163, %c256_164] : memref<8x1152xf32, #tpu.memory_space<vmem>>, vector<4x128xf32>
    tpu.vector_store %arg41[%c0_163, %c256_164], %189 {strides = array<i32>} : memref<8x1152xf32, #tpu.memory_space<vmem>>, vector<4x128xf32>,
    %191 = vector.extract_strided_slice %184 {offsets = [12, 0], sizes = [4, 128], strides = [1, 1]} : vector<36x128xf32> to vector<4x128xf32>
    %c0_165 = arith.constant 0 : index
    %c384 = arith.constant 384 : index
    %192 = vector.load %arg41[%c0_165, %c384] : memref<8x1152xf32, #tpu.memory_space<vmem>>, vector<4x128xf32>
    tpu.vector_store %arg41[%c0_165, %c384], %191 {strides = array<i32>} : memref<8x1152xf32, #tpu.memory_space<vmem>>, vector<4x128xf32>,
    %193 = vector.extract_strided_slice %184 {offsets = [16, 0], sizes = [4, 128], strides = [1, 1]} : vector<36x128xf32> to vector<4x128xf32>
    %c0_166 = arith.constant 0 : index
    %c512 = arith.constant 512 : index
    %194 = vector.load %arg41[%c0_166, %c512] : memref<8x1152xf32, #tpu.memory_space<vmem>>, vector<4x128xf32>
    tpu.vector_store %arg41[%c0_166, %c512], %193 {strides = array<i32>} : memref<8x1152xf32, #tpu.memory_space<vmem>>, vector<4x128xf32>,
    %195 = vector.extract_strided_slice %184 {offsets = [20, 0], sizes = [4, 128], strides = [1, 1]} : vector<36x128xf32> to vector<4x128xf32>
    %c0_167 = arith.constant 0 : index
    %c640 = arith.constant 640 : index
    %196 = vector.load %arg41[%c0_167, %c640] : memref<8x1152xf32, #tpu.memory_space<vmem>>, vector<4x128xf32>
    tpu.vector_store %arg41[%c0_167, %c640], %195 {strides = array<i32>} : memref<8x1152xf32, #tpu.memory_space<vmem>>, vector<4x128xf32>,
    %197 = vector.extract_strided_slice %184 {offsets = [24, 0], sizes = [4, 128], strides = [1, 1]} : vector<36x128xf32> to vector<4x128xf32>
    %c0_168 = arith.constant 0 : index
    %c768 = arith.constant 768 : index
    %198 = vector.load %arg41[%c0_168, %c768] : memref<8x1152xf32, #tpu.memory_space<vmem>>, vector<4x128xf32>
    tpu.vector_store %arg41[%c0_168, %c768], %197 {strides = array<i32>} : memref<8x1152xf32, #tpu.memory_space<vmem>>, vector<4x128xf32>,
    %199 = vector.extract_strided_slice %184 {offsets = [28, 0], sizes = [4, 128], strides = [1, 1]} : vector<36x128xf32> to vector<4x128xf32>
    %c0_169 = arith.constant 0 : index
    %c896 = arith.constant 896 : index
    %200 = vector.load %arg41[%c0_169, %c896] : memref<8x1152xf32, #tpu.memory_space<vmem>>, vector<4x128xf32>
    tpu.vector_store %arg41[%c0_169, %c896], %199 {strides = array<i32>} : memref<8x1152xf32, #tpu.memory_space<vmem>>, vector<4x128xf32>,
    %201 = vector.extract_strided_slice %184 {offsets = [32, 0], sizes = [4, 128], strides = [1, 1]} : vector<36x128xf32> to vector<4x128xf32>
    %c0_170 = arith.constant 0 : index
    %c1024 = arith.constant 1024 : index
    %202 = vector.load %arg41[%c0_170, %c1024] : memref<8x1152xf32, #tpu.memory_space<vmem>>, vector<4x128xf32>
    tpu.vector_store %arg41[%c0_170, %c1024], %201 {strides = array<i32>} : memref<8x1152xf32, #tpu.memory_space<vmem>>, vector<4x128xf32>,
    %c0_171 = arith.constant 0 : index
    %c0_172 = arith.constant 0 : index
    %203 = vector.load %arg41[%c0_171, %c0_172] : memref<8x1152xf32, #tpu.memory_space<vmem>>, vector<4x1152xf32>
    %204 = arith.truncf %203 : vector<4x1152xf32> to vector<4x1152xbf16>
    %c0_173 = arith.constant 0 : index
    %c0_174 = arith.constant 0 : index
    %205 = vector.load %arg24[%c0_173, %c0_174] : memref<1152x128xbf16, #tpu.memory_space<vmem>>, vector<1152x128xbf16>
    %cst_175 = arith.constant dense<0.000000e+00> : vector<4x128xf32>
    %206 = tpu.matmul %204, %205, %cst_175 {dimension_numbers = #tpu.dot_dimension_numbers<[1], [0], [0], [1], [0, 0, 1, 1], [], []>} : vector<4x1152xbf16>, vector<1152x128xbf16>, vector<4x128xf32> -> vector<4x128xf32>
    %c0_176 = arith.constant 0 : index
    %c0_177 = arith.constant 0 : index
    %207 = vector.load %arg25[%c0_176, %c0_177] : memref<1x128xf32, #tpu.memory_space<vmem>>, vector<1x128xf32>
    %208 = vector.broadcast %207 : vector<1x128xf32> to vector<4x128xf32>
    %209 = arith.addf %206, %208 : vector<4x128xf32>
    %210 = arith.addf %209, %176 : vector<4x128xf32>
    %cst_178 = arith.constant 0.000000e+00 : f32
    %211 = vector.broadcast %cst_178 : f32 to vector<4x128xf32>
    %212 = arith.maximumf %210, %211 : vector<4x128xf32>
    %cst_179 = arith.constant dense<0.000000e+00> : vector<128xf32>
    %213 = vector.multi_reduction <add>, %212, %cst_179 [0] : vector<4x128xf32> to vector<128xf32>
    %214 = vector.shape_cast %213 : vector<128xf32> to vector<1x128xf32>
    %cst_180 = arith.constant 4.000000e+00 : f32
    %215 = vector.broadcast %cst_180 : f32 to vector<1x128xf32>
    %216 = arith.divf %214, %215 : vector<1x128xf32>
    %c0_181 = arith.constant 0 : index
    %c0_182 = arith.constant 0 : index
    %217 = vector.load %arg28[%c0_181, %c0_182] : memref<128x64xf32, #tpu.memory_space<vmem>>, vector<128x64xf32>
    %cst_183 = arith.constant dense<0.000000e+00> : vector<1x64xf32>
    %218 = tpu.matmul %216, %217, %cst_183 {dimension_numbers = #tpu.dot_dimension_numbers<[1], [0], [0], [1], [0, 0, 1, 1], [], []>} : vector<1x128xf32>, vector<128x64xf32>, vector<1x64xf32> -> vector<1x64xf32>
    %c0_184 = arith.constant 0 : index
    %c0_185 = arith.constant 0 : index
    %219 = vector.load %arg29[%c0_184, %c0_185] : memref<1x64xf32, #tpu.memory_space<vmem>>, vector<1x64xf32>
    %220 = arith.addf %218, %219 : vector<1x64xf32>
    %c0_186 = arith.constant 0 : index
    %c0_187 = arith.constant 0 : index
    %221 = vector.load %arg32[%c0_186, %c0_187] : memref<64x64xf32, #tpu.memory_space<vmem>>, vector<64x64xf32>
    %cst_188 = arith.constant dense<0.000000e+00> : vector<1x64xf32>
    %222 = tpu.matmul %220, %221, %cst_188 {dimension_numbers = #tpu.dot_dimension_numbers<[1], [0], [0], [1], [0, 0, 1, 1], [], []>} : vector<1x64xf32>, vector<64x64xf32>, vector<1x64xf32> -> vector<1x64xf32>
    %223 = arith.subf %220, %222 : vector<1x64xf32>
    %224 = arith.mulf %223, %223 : vector<1x64xf32>
    %c0_189 = arith.constant 0 : index
    %c0_190 = arith.constant 0 : index
    %225 = vector.load %arg32[%c0_189, %c0_190] : memref<64x64xf32, #tpu.memory_space<vmem>>, vector<64x64xf32>
    %cst_191 = arith.constant dense<0.000000e+00> : vector<1x64xf32>
    %226 = tpu.matmul %224, %225, %cst_191 {dimension_numbers = #tpu.dot_dimension_numbers<[1], [0], [0], [1], [0, 0, 1, 1], [], []>} : vector<1x64xf32>, vector<64x64xf32>, vector<1x64xf32> -> vector<1x64xf32>
    %cst_192 = arith.constant 9.99999974E-6 : f32
    %227 = vector.broadcast %cst_192 : f32 to vector<1x64xf32>
    %228 = arith.addf %226, %227 : vector<1x64xf32>
    %229 = math.rsqrt %228 : vector<1x64xf32>
    %230 = arith.mulf %223, %229 : vector<1x64xf32>
    %c0_193 = arith.constant 0 : index
    %c0_194 = arith.constant 0 : index
    %231 = vector.load %arg30[%c0_193, %c0_194] : memref<1x64xf32, #tpu.memory_space<vmem>>, vector<1x64xf32>
    %232 = arith.mulf %230, %231 : vector<1x64xf32>
    %c0_195 = arith.constant 0 : index
    %c0_196 = arith.constant 0 : index
    %233 = vector.load %arg31[%c0_195, %c0_196] : memref<1x64xf32, #tpu.memory_space<vmem>>, vector<1x64xf32>
    %234 = arith.addf %232, %233 : vector<1x64xf32>
    %cst_197 = arith.constant 0.000000e+00 : f32
    %235 = vector.broadcast %cst_197 : f32 to vector<1x64xf32>
    %236 = arith.maximumf %234, %235 : vector<1x64xf32>
    %c0_198 = arith.constant 0 : index
    %c0_199 = arith.constant 0 : index
    %237 = vector.load %arg33[%c0_198, %c0_199] : memref<64x2xf32, #tpu.memory_space<vmem>>, vector<64x2xf32>
    %cst_200 = arith.constant dense<0.000000e+00> : vector<1x2xf32>
    %238 = tpu.matmul %236, %237, %cst_200 {dimension_numbers = #tpu.dot_dimension_numbers<[1], [0], [0], [1], [0, 0, 1, 1], [], []>} : vector<1x64xf32>, vector<64x2xf32>, vector<1x2xf32> -> vector<1x2xf32>
    %c0_201 = arith.constant 0 : index
    %c0_202 = arith.constant 0 : index
    %239 = vector.load %arg34[%c0_201, %c0_202] : memref<1x2xf32, #tpu.memory_space<vmem>>, vector<1x2xf32>
    %240 = arith.addf %238, %239 : vector<1x2xf32>
    %241 = vector.shape_cast %240 : vector<1x2xf32> to vector<1x1x2xf32>
    %c0_203 = arith.constant 0 : index
    %c0_204 = arith.constant 0 : index
    %c0_205 = arith.constant 0 : index
    %242 = vector.load %arg35[%c0_203, %c0_204, %c0_205] : memref<1x1x2xf32, #tpu.memory_space<vmem>>, vector<1x1x2xf32>
    tpu.vector_store %arg35[%c0_203, %c0_204, %c0_205], %241 {strides = array<i32>} : memref<1x1x2xf32, #tpu.memory_space<vmem>>, vector<1x1x2xf32>,
    return
  }
  func.func @transform_0(%arg0: i32) -> (i32, i32) {
    %c0_i32 = arith.constant 0 : i32
    %c0_i32_0 = arith.constant 0 : i32
    return %arg0, %c0_i32 : i32, i32
  }
  func.func @transform_1(%arg0: i32) -> (i32, i32) {
    %c0_i32 = arith.constant 0 : i32
    %c0_i32_0 = arith.constant 0 : i32
    %c0_i32_1 = arith.constant 0 : i32
    return %c0_i32, %c0_i32_0 : i32, i32
  }
  func.func @transform_2(%arg0: i32) -> (i32, i32) {
    %c0_i32 = arith.constant 0 : i32
    %c0_i32_0 = arith.constant 0 : i32
    %c0_i32_1 = arith.constant 0 : i32
    return %c0_i32, %c0_i32_0 : i32, i32
  }
  func.func @transform_3(%arg0: i32) -> (i32, i32) {
    %c0_i32 = arith.constant 0 : i32
    %c0_i32_0 = arith.constant 0 : i32
    %c0_i32_1 = arith.constant 0 : i32
    return %c0_i32, %c0_i32_0 : i32, i32
  }
  func.func @transform_4(%arg0: i32) -> (i32, i32) {
    %c0_i32 = arith.constant 0 : i32
    %c0_i32_0 = arith.constant 0 : i32
    %c0_i32_1 = arith.constant 0 : i32
    return %c0_i32, %c0_i32_0 : i32, i32
  }
  func.func @transform_5(%arg0: i32) -> (i32, i32) {
    %c0_i32 = arith.constant 0 : i32
    %c0_i32_0 = arith.constant 0 : i32
    %c0_i32_1 = arith.constant 0 : i32
    return %c0_i32, %c0_i32_0 : i32, i32
  }
  func.func @transform_6(%arg0: i32) -> (i32, i32) {
    %c0_i32 = arith.constant 0 : i32
    %c0_i32_0 = arith.constant 0 : i32
    %c0_i32_1 = arith.constant 0 : i32
    return %c0_i32, %c0_i32_0 : i32, i32
  }
  func.func @transform_7(%arg0: i32) -> (i32, i32) {
    %c0_i32 = arith.constant 0 : i32
    %c0_i32_0 = arith.constant 0 : i32
    %c0_i32_1 = arith.constant 0 : i32
    return %c0_i32, %c0_i32_0 : i32, i32
  }
  func.func @transform_8(%arg0: i32) -> (i32, i32) {
    %c0_i32 = arith.constant 0 : i32
    %c0_i32_0 = arith.constant 0 : i32
    %c0_i32_1 = arith.constant 0 : i32
    return %c0_i32, %c0_i32_0 : i32, i32
  }
  func.func @transform_9(%arg0: i32) -> (i32, i32) {
    %c0_i32 = arith.constant 0 : i32
    %c0_i32_0 = arith.constant 0 : i32
    %c0_i32_1 = arith.constant 0 : i32
    return %c0_i32, %c0_i32_0 : i32, i32
  }
  func.func @transform_10(%arg0: i32) -> (i32, i32) {
    %c0_i32 = arith.constant 0 : i32
    %c0_i32_0 = arith.constant 0 : i32
    %c0_i32_1 = arith.constant 0 : i32
    return %c0_i32, %c0_i32_0 : i32, i32
  }
  func.func @transform_11(%arg0: i32) -> (i32, i32) {
    %c0_i32 = arith.constant 0 : i32
    %c0_i32_0 = arith.constant 0 : i32
    %c0_i32_1 = arith.constant 0 : i32
    return %c0_i32, %c0_i32_0 : i32, i32
  }
  func.func @transform_12(%arg0: i32) -> (i32, i32) {
    %c0_i32 = arith.constant 0 : i32
    %c0_i32_0 = arith.constant 0 : i32
    %c0_i32_1 = arith.constant 0 : i32
    return %c0_i32, %c0_i32_0 : i32, i32
  }
  func.func @transform_13(%arg0: i32) -> (i32, i32) {
    %c0_i32 = arith.constant 0 : i32
    %c0_i32_0 = arith.constant 0 : i32
    %c0_i32_1 = arith.constant 0 : i32
    return %c0_i32, %c0_i32_0 : i32, i32
  }
  func.func @transform_14(%arg0: i32) -> (i32, i32) {
    %c0_i32 = arith.constant 0 : i32
    %c0_i32_0 = arith.constant 0 : i32
    %c0_i32_1 = arith.constant 0 : i32
    return %c0_i32, %c0_i32_0 : i32, i32
  }
  func.func @transform_15(%arg0: i32) -> (i32, i32) {
    %c0_i32 = arith.constant 0 : i32
    %c0_i32_0 = arith.constant 0 : i32
    %c0_i32_1 = arith.constant 0 : i32
    return %c0_i32, %c0_i32_0 : i32, i32
  }
  func.func @transform_16(%arg0: i32) -> (i32, i32) {
    %c0_i32 = arith.constant 0 : i32
    %c0_i32_0 = arith.constant 0 : i32
    %c0_i32_1 = arith.constant 0 : i32
    return %c0_i32, %c0_i32_0 : i32, i32
  }
  func.func @transform_17(%arg0: i32) -> (i32, i32) {
    %c0_i32 = arith.constant 0 : i32
    %c0_i32_0 = arith.constant 0 : i32
    %c0_i32_1 = arith.constant 0 : i32
    return %c0_i32, %c0_i32_0 : i32, i32
  }
  func.func @transform_18(%arg0: i32) -> (i32, i32) {
    %c0_i32 = arith.constant 0 : i32
    %c0_i32_0 = arith.constant 0 : i32
    %c0_i32_1 = arith.constant 0 : i32
    return %c0_i32, %c0_i32_0 : i32, i32
  }
  func.func @transform_19(%arg0: i32) -> (i32, i32) {
    %c0_i32 = arith.constant 0 : i32
    %c0_i32_0 = arith.constant 0 : i32
    %c0_i32_1 = arith.constant 0 : i32
    return %c0_i32, %c0_i32_0 : i32, i32
  }
  func.func @transform_20(%arg0: i32) -> (i32, i32) {
    %c0_i32 = arith.constant 0 : i32
    %c0_i32_0 = arith.constant 0 : i32
    %c0_i32_1 = arith.constant 0 : i32
    return %c0_i32, %c0_i32_0 : i32, i32
  }
  func.func @transform_21(%arg0: i32) -> (i32, i32) {
    %c0_i32 = arith.constant 0 : i32
    %c0_i32_0 = arith.constant 0 : i32
    %c0_i32_1 = arith.constant 0 : i32
    return %c0_i32, %c0_i32_0 : i32, i32
  }
  func.func @transform_22(%arg0: i32) -> (i32, i32) {
    %c0_i32 = arith.constant 0 : i32
    %c0_i32_0 = arith.constant 0 : i32
    %c0_i32_1 = arith.constant 0 : i32
    return %c0_i32, %c0_i32_0 : i32, i32
  }
  func.func @transform_23(%arg0: i32) -> (i32, i32) {
    %c0_i32 = arith.constant 0 : i32
    %c0_i32_0 = arith.constant 0 : i32
    %c0_i32_1 = arith.constant 0 : i32
    return %c0_i32, %c0_i32_0 : i32, i32
  }
  func.func @transform_24(%arg0: i32) -> (i32, i32) {
    %c0_i32 = arith.constant 0 : i32
    %c0_i32_0 = arith.constant 0 : i32
    %c0_i32_1 = arith.constant 0 : i32
    return %c0_i32, %c0_i32_0 : i32, i32
  }
  func.func @transform_25(%arg0: i32) -> (i32, i32) {
    %c0_i32 = arith.constant 0 : i32
    %c0_i32_0 = arith.constant 0 : i32
    %c0_i32_1 = arith.constant 0 : i32
    return %c0_i32, %c0_i32_0 : i32, i32
  }
  func.func @transform_26(%arg0: i32) -> (i32, i32) {
    %c0_i32 = arith.constant 0 : i32
    %c0_i32_0 = arith.constant 0 : i32
    %c0_i32_1 = arith.constant 0 : i32
    return %c0_i32, %c0_i32_0 : i32, i32
  }
  func.func @transform_27(%arg0: i32) -> (i32, i32) {
    %c0_i32 = arith.constant 0 : i32
    %c0_i32_0 = arith.constant 0 : i32
    %c0_i32_1 = arith.constant 0 : i32
    return %c0_i32, %c0_i32_0 : i32, i32
  }
  func.func @transform_28(%arg0: i32) -> (i32, i32) {
    %c0_i32 = arith.constant 0 : i32
    %c0_i32_0 = arith.constant 0 : i32
    %c0_i32_1 = arith.constant 0 : i32
    return %c0_i32, %c0_i32_0 : i32, i32
  }
  func.func @transform_29(%arg0: i32) -> (i32, i32) {
    %c0_i32 = arith.constant 0 : i32
    %c0_i32_0 = arith.constant 0 : i32
    %c0_i32_1 = arith.constant 0 : i32
    return %c0_i32, %c0_i32_0 : i32, i32
  }
  func.func @transform_30(%arg0: i32) -> (i32, i32) {
    %c0_i32 = arith.constant 0 : i32
    %c0_i32_0 = arith.constant 0 : i32
    %c0_i32_1 = arith.constant 0 : i32
    return %c0_i32, %c0_i32_0 : i32, i32
  }
  func.func @transform_31(%arg0: i32) -> (i32, i32) {
    %c0_i32 = arith.constant 0 : i32
    %c0_i32_0 = arith.constant 0 : i32
    %c0_i32_1 = arith.constant 0 : i32
    return %c0_i32, %c0_i32_0 : i32, i32
  }
  func.func @transform_32(%arg0: i32) -> (i32, i32) {
    %c0_i32 = arith.constant 0 : i32
    %c0_i32_0 = arith.constant 0 : i32
    %c0_i32_1 = arith.constant 0 : i32
    return %c0_i32, %c0_i32_0 : i32, i32
  }
  func.func @transform_33(%arg0: i32) -> (i32, i32) {
    %c0_i32 = arith.constant 0 : i32
    %c0_i32_0 = arith.constant 0 : i32
    %c0_i32_1 = arith.constant 0 : i32
    return %c0_i32, %c0_i32_0 : i32, i32
  }
  func.func @transform_34(%arg0: i32) -> (i32, i32, i32) {
    %c0_i32 = arith.constant 0 : i32
    %c0_i32_0 = arith.constant 0 : i32
    %c0_i32_1 = arith.constant 0 : i32
    return %arg0, %c0_i32, %c0_i32_0 : i32, i32, i32
  }
}

</mosaic_0001>

<bundles_post_ra>
// kernel: binary_resnet_forward.1
= control target key start
LH: loop header
LB: loop body
LE: loop exit
PB: predicated region body
PF: predicated region fallthrough
CT: control target
= control target key end

     0   :  { %s7377_s6 = smov 1   ;;  %s7378_s10 = smov 2   ;;  %s8513_s0 = inlined_call_operand.smem [shape: u32[35], index: -1, kind: input, shape index: {}] }
   0x1   :  { %s7435_s5 = sld [smem:[%s8513_s0]]   ;;  %s7379_s14 = smov 3  }
   0x2   :  { %s7440_s9 = sld [smem:[%s8513_s0 + %s7377_s6]]   ;;  %s7380_s18 = smov 4  }
   0x3   :  { %s7445_s13 = sld [smem:[%s8513_s0 + %s7378_s10]]   ;;  %s7381_s22 = smov 5  }
   0x4   :  { %s7450_s17 = sld [smem:[%s8513_s0 + %s7379_s14]]   ;;  %s7382_s26 = smov 6  }
   0x5   :  { %s7455_s21 = sld [smem:[%s8513_s0 + %s7380_s18]]   ;;  %s7383_s30 = smov 7  }
   0x6   :  { %s7460_s25 = sld [smem:[%s8513_s0 + %s7381_s22]]   ;;  %s7384_s4 = smov 8  }
   0x7   :  { %s7465_s29 = sld [smem:[%s8513_s0 + %s7382_s26]]   ;;  %s7385_s10 = smov 9  }
   0x8   :  { %s7470_s3 = sld [smem:[%s8513_s0 + %s7383_s30]]   ;;  %s7386_s15 = smov 10  }
   0x9   :  { %s7475_s8 = sld [smem:[%s8513_s0 + %s7384_s4]]   ;;  %s7387_s20 = smov 11  }
   0xa   :  { %s7480_s14 = sld [smem:[%s8513_s0 + %s7385_s10]]   ;;  %s7388_s26 = smov 12  }
   0xb   :  { %s7485_s19 = sld [smem:[%s8513_s0 + %s7386_s15]]   ;;  %s7389_s1 = smov 13  }
   0xc   :  { %s7490_s24 = sld [smem:[%s8513_s0 + %s7387_s20]]   ;;  %s7390_s7 = smov 14  }
   0xd   :  { %8522 = sst [smem:[#allocation11_spill]] %s7465_s29  ;;  %s7391_s15 = smov 15  }
   0xe   :  { %8523 = sst [smem:[#allocation12_spill]] %s7470_s3  ;;  %s7392_s22 = smov 16  }
   0xf   :  { %8524 = sst [smem:[#allocation13_spill]] %s7475_s8  ;;  %s7393_s28 = smov 17  }
  0x10   :  { %s7495_s30 = sld [smem:[%s8513_s0 + %s7388_s26]]  }
  0x11   :  { %s7500_s6 = sld [smem:[%s8513_s0 + %s7389_s1]]  }
  0x12   :  { %s7505_s12 = sld [smem:[%s8513_s0 + %s7390_s7]]   ;;  %s7394_s7 = smov 18  }
  0x13   :  { %s7510_s20 = sld [smem:[%s8513_s0 + %s7391_s15]]   ;;  %s7395_s15 = smov 19  }
  0x14   :  { %s7515_s27 = sld [smem:[%s8513_s0 + %s7392_s22]]   ;;  %s7396_s22 = smov 20  }
  0x15   :  { %s7520_s4 = sld [smem:[%s8513_s0 + %s7393_s28]]   ;;  %s7397_s28 = smov 21  }
  0x16   :  { %s7525_s8 = sld [smem:[%s8513_s0 + %s7394_s7]]   ;;  %s7398_s7 = smov 22  }
  0x17   :  { %s7530_s3 = sld [smem:[%s8513_s0 + %s7395_s15]]   ;;  %s7399_s15 = smov 23  }
  0x18   :  { %s7535_s29 = sld [smem:[%s8513_s0 + %s7396_s22]]   ;;  %s7400_s22 = smov 24  }
  0x1a   :  { %8525 = sst [smem:[#allocation14_spill]] %s7515_s27 }
  0x1b   :  { %8526 = sst [smem:[#allocation15_spill]] %s7520_s4 }
  0x1c   :  { %8527 = sst [smem:[#allocation16_spill]] %s7525_s8 }
  0x1d   :  { %s7540_s27 = sld [smem:[%s8513_s0 + %s7397_s28]]   ;;  %s7401_s28 = smov 25  }
  0x1e   :  { %8528 = sst [smem:[#allocation17_spill]] %s7535_s29 }
  0x1f   :  { %s7545_s8 = sld [smem:[%s8513_s0 + %s7398_s7]]   ;;  %s7402_s7 = smov 26  }
  0x20   :  { %s7550_s4 = sld [smem:[%s8513_s0 + %s7399_s15]]   ;;  %s7403_s15 = smov 27  }
  0x21   :  { %s7555_s29 = sld [smem:[%s8513_s0 + %s7400_s22]]   ;;  %s7404_s22 = smov 28  }
  0x23   :  { %8529 = sst [smem:[#allocation18_spill]] %s7540_s27 }
  0x24   :  { %s7560_s27 = sld [smem:[%s8513_s0 + %s7401_s28]]   ;;  %s7405_s28 = smov 29  }
  0x25   :  { %8530 = sst [smem:[#allocation19_spill]] %s7545_s8 }
  0x26   :  { %8531 = sst [smem:[#allocation20_spill]] %s7550_s4 }
  0x27   :  { %8532 = sst [smem:[#allocation21_spill]] %s7555_s29 }
  0x28   :  { %s7565_s8 = sld [smem:[%s8513_s0 + %s7402_s7]]   ;;  %s7406_s7 = smov 30  }
  0x29   :  { %s7570_s4 = sld [smem:[%s8513_s0 + %s7403_s15]]   ;;  %s7407_s15 = smov 31  }
  0x2a   :  { %8533 = sst [smem:[#allocation22_spill]] %s7560_s27 }
  0x2b   :  { %s7575_s29 = sld [smem:[%s8513_s0 + %s7404_s22]]   ;;  %s7408_s22 = smov 32  }
  0x2c   :  { %s7580_s27 = sld [smem:[%s8513_s0 + %s7405_s28]]   ;;  %s7409_s28 = smov 33  }
  0x2e   :  { %8534 = sst [smem:[#allocation23_spill]] %s7565_s8 }
  0x2f   :  { %8535 = sst [smem:[#allocation24_spill]] %s7570_s4 }
  0x30   :  { %s7585_s8 = sld [smem:[%s8513_s0 + %s7406_s7]]   ;;  %s7410_s7 = smov 34  }
  0x31   :  { %8536 = sst [smem:[#allocation25_spill]] %s7575_s29 }
  0x32   :  { %8537 = sst [smem:[#allocation26_spill]] %s7580_s27 }
  0x33   :  { %s7590_s4 = sld [smem:[%s8513_s0 + %s7407_s15]]  }
  0x34   :  { %s7595_s29 = sld [smem:[%s8513_s0 + %s7408_s22]]  }
  0x35   :  { %s7600_s27 = sld [smem:[%s8513_s0 + %s7409_s28]]  }
  0x36   :  { %8538 = sst [smem:[#allocation27_spill]] %s7585_s8 }
  0x37   :  { %s7605_s8 = sld [smem:[%s8513_s0 + %s7410_s7]]  }
  0x38   :  { %74 = vsyncpa [#allocation9], 0  ;;  %s7607_s15 = smov 0  }
  0x39 LB: > { %s847_s16 = sshll.u32 %s7450_s17, 4  ;;  %s7614_s18 = sadd.s32 4294967295, %s7375_s15   ;;  %s7375_s15 = sphi %s7607_s15, %s80_s15   ;;  %s848_s16 = int_to_ptr.hbm [resolvable:$true] %s847_s16 }
  0x3a   : > { %p5828_p0 = scmp.ge.s32.totalorder %s7375_s15, 1  ;;  %p830_p1 = scmp.lt.s32.totalorder %s7375_s15, 3 }
  0x3b   : > { %p7261_p2 = scmp.eq.s32.totalorder %s7614_s18, 0  ;;  %s7411_s22 = smov [#allocation8]  }
  0x3c   : > { %p7619_p3 = pnand %p5828_p0, %p830_p1  ;;  %s849_s23 = sshll.u32 %s7411_s22, 4  ;;  %s850_s23 = int_to_ptr.vmem [resolvable:$true] %s849_s23 }
  0x3d   : > { %s7335_s28 = sshra.s32 %s848_s16, 4  ;;  %s7342_s2 = scalar_lea.hbm %s7450_s17, 576  ;;  %s7336_s28 = int_to_ptr.hbm [resolvable:$true] %s7335_s28 }
  0x3e   : > { %p7257_p4 = pneg %p7619_p3  ;;  %s7337_s1 = scalar_lea.hbm %s7336_s28, 576 }
  0x3f   : > { %p7338_p6 = scmp.ne.s32.totalorder %s7336_s28, %s7337_s1  ;;  %p7343_p10 = scmp.lt.s32.totalorder %s7336_s28, %s7450_s17 }
  0x40   : > { %p7627_p5 = pnand %p7261_p2, %p7257_p4  ;;  %p7344_p11 = scmp.lt.s32.totalorder %s7342_s2, %s7337_s1 }
  0x42   : > { %p7339_p7 = pneg %p7627_p5  ;;  %p7345_p12 = por %p7344_p11, %p7343_p10 }
  0x44   : > { %p7340_p8 = pnand %p7339_p7, %p7338_p6 }
  0x46   : > { %p7341_p9 = pneg %p7340_p8 }
  0x48   : > { %p7346_p13 = pnand %p7345_p12, %p7341_p9 }
  0x4a   : > { %7349 = shalt.err (!%p7346_p13)
}
  0x4b   : > { %s7412_s7 = smov 128   ;;  %s7413_s10 = smov 8  }
  0x4c   : > { %7260 = dma.hbm_to_vmem [thread:$0]  (!%p7627_p5), %s848_s16, 9216, %s850_s23, [#allocation9], %s7412_s7, %s7412_s7, %s7413_s10  }
  0x4d   : > { %964 = sbr.rel (%p7619_p3) target bundleno = 5164 (0x142c), region = 156 }
  0x52   : > { %7370 = dma.done.wait (%p7261_p2), [#allocation9], 9216  }
  0x53   : > { %7372 = vsyncadd (%p7261_p2), [#allocation9], 4294958080  ;;  %s5833_s11 = sshll.u32 %s7614_s18, 5  ;;  %vm1167_vm0 = vcmask 1043456   ;;  %vm1168_vm1 = vcmask 1044480   ;;  %v7414_v0 = vmov 65535  }
  0x54   : > { %p1050_p0 = scmp.lt.s32.totalorder %s5833_s11, 63  ;;  %v1169_v1 = vsel %vm1167_vm0, 4294967295, %v7414_v0  ;;  %v5837_v2 = vld [vmem:[%s7440_s9] sm:$0xf]  ;;  %v6989_v3 = vld [vmem:[%s7440_s9] sm:$0x10] }
  0x55   : > { %v1170_v4 = vsel %vm1168_vm1, %v1169_v1, 0  ;;  %v5838_v5 = vor.u32 %v6989_v3, %v5837_v2  ;;  %vm1118_vm2 = vcmask 72704   ;;  %v7677_v35 = vld [vmem:[%s7445_s13] ss:$0 sm:$0xff]  ;;  %vm2121_vm3 = vcmask 64512   ;;  %s7415_s22 = smov 8  }
  0x56   : > { %s8559_s11 = smov (!%p1050_p0, %s5833_s11), 63  ;;  %s7416_s23 = smov 16   ;;  %vm2162_vm4 = vcmask 130112   ;;  %vm2203_vm5 = vcmask 195712   ;;  %vm2244_vm6 = vcmask 261312   ;;  %vm2285_vm7 = vcmask 326912  }
  0x57   : > { %s5834_s16 = sshll.u32 %s8559_s11, 3  ;;  %v1172_v8 = vand.u32 %v5838_v5, %v1170_v4  ;;  %s7417_s26 = smov 24   ;;  %vm2326_vm8 = vcmask 392512   ;;  %vm2367_vm9 = vcmask 458112   ;;  %vm2408_vm10 = vcmask 523712  }
  0x58   : > { %s7646_s0 = scalar_lea.vmem %s7435_s5, %s5834_s16  ;;  %s7418_s28 = smov 32   ;;  %vm2449_vm11 = vcmask 589312   ;;  %vm2571_vm12 = vcmask 588800   ;;  %vm2880_vm13 = vcmask 523264   ;;  %vm3178_vm14 = vcmask 130048  }
  0x59   : > { %v1059_v6 = vld [vmem:[%s7646_s0] sm:$0xff]  ;;  %v1060_v7 = vld [vmem:[%s7646_s0 + $0x8] sm:$0xff]  ;;  %1181 = vmatpush.bf16.msra.mxu0 %v1172_v8  ;;  %v1061_v10 = vld [vmem:[%s7646_s0 + $0x10] sm:$0xff]  ;;  %s7419_s1 = smov 40   ;;  %s7420_s2 = smov 48   ;;  %vm3219_vm15 = vcmask 261248  }
  0x5a   : > { %v1091_v9 = vpack.c.bf16 %v1060_v7, %v1059_v6  ;;  %v1062_v11 = vld [vmem:[%s7646_s0 + $0x18] sm:$0xff]  ;;  %v1063_v13 = vld [vmem:[%s7646_s0 + $0x20] sm:$0xff]  ;;  %v1064_v14 = vld [vmem:[%s7646_s0 + $0x28] sm:$0xff]  ;;  %s7421_s7 = smov 56   ;;  %s7422_s10 = smov 64   ;;  %vm3260_vm1 = vcmask 392448  }
  0x5b   : > { %v1092_v12 = vpack.c.bf16 %v1062_v11, %v1061_v10  ;;  %v1093_v15 = vpack.c.bf16 %v1064_v14, %v1063_v13  ;;  %v1065_v16 = vld [vmem:[%s7646_s0 + $0x30] sm:$0xff]  ;;  %v1066_v17 = vld [vmem:[%s7646_s0 + $0x38] sm:$0xff]  ;;  %v1067_v19 = vld [vmem:[%s7646_s0 + $0x40] sm:$0xff]  ;;  %s7423_s11 = smov 96   ;;  %s7424_s16 = smov 80  }
  0x5c   : > { %5839 = vmatmul.msk.bf16.vlgmr.msra.gmra.mxu0 %vm1118_vm2, %v1091_v9  ;;  %v1094_v18 = vpack.c.bf16 %v1066_v17, %v1065_v16  ;;  %v1068_v20 = vld [vmem:[%s7646_s0 + $0x48] sm:$0xff]  ;;  %v1069_v22 = vld [vmem:[%s7646_s0 + $0x50] sm:$0xff]  ;;  %v1070_v23 = vld [vmem:[%s7646_s0 + $0x58] sm:$0xff]  ;;  %p1055_p1 = scmp.lt.s32.totalorder %s7614_s18, 1 }
  0x5d   : > { %v1095_v21 = vpack.c.bf16 %v1068_v20, %v1067_v19  ;;  %v1096_v24 = vpack.c.bf16 %v1070_v23, %v1069_v22  ;;  %v1071_v25 = vld [vmem:[%s7646_s0 + $0x60] sm:$0xff]  ;;  %v1072_v26 = vld [vmem:[%s7646_s0 + $0x68] sm:$0xff]  ;;  %v1073_v28 = vld [vmem:[%s7646_s0 + $0x70] sm:$0xff] }
  0x5e   : > { %v1097_v27 = vpack.c.bf16 %v1072_v26, %v1071_v25  ;;  %v1074_v29 = vld [vmem:[%s7646_s0 + $0x78] sm:$0xff]  ;;  %v1075_v31 = vld [vmem:[%s7646_s0 + $0x80] sm:$0xff]  ;;  %v1076_v32 = vld [vmem:[%s7646_s0 + $0x88] sm:$0xff]  ;;  %s8561_s18 = smov (!%p1055_p1, %s7614_s18), 1 }
  0x5f   : > { %v1098_v30 = vpack.c.bf16 %v1074_v29, %v1073_v28  ;;  %v1099_v33 = vpack.c.bf16 %v1076_v32, %v1075_v31  ;;  %v1077_v41 = vld [vmem:[%s7646_s0 + $0x90] sm:$0xff]  ;;  %v1078_v42 = vld [vmem:[%s7646_s0 + $0x98] sm:$0xff]  ;;  %v1079_v51 = vld [vmem:[%s7646_s0 + $0xa0] sm:$0xff] }
  0x60   : > { %v1100_v44 = vpack.c.bf16 %v1078_v42, %v1077_v41  ;;  %v1080_v52 = vld [vmem:[%s7646_s0 + $0xa8] sm:$0xff]  ;;  %v1081_v61 = vld [vmem:[%s7646_s0 + $0xb0] sm:$0xff]  ;;  %v1082_v62 = vld [vmem:[%s7646_s0 + $0xb8] sm:$0xff] }
  0x61   : > { %v1101_v54 = vpack.c.bf16 %v1080_v52, %v1079_v51  ;;  %v1102_v0 = vpack.c.bf16 %v1082_v62, %v1081_v61  ;;  %v1083_v7 = vld [vmem:[%s7646_s0 + $0xc0] sm:$0xff]  ;;  %v1084_v8 = vld [vmem:[%s7646_s0 + $0xc8] sm:$0xff]  ;;  %v1085_v13 = vld [vmem:[%s7646_s0 + $0xd0] sm:$0xff] }
  0x62   : > { %v1103_v10 = vpack.c.bf16 %v1084_v8, %v1083_v7  ;;  %v1086_v14 = vld [vmem:[%s7646_s0 + $0xd8] sm:$0xff]  ;;  %v1088_v19 = vld [vmem:[%s7646_s0 + $0xe8] sm:$0xff]  ;;  %v1089_v23 = vld [vmem:[%s7646_s0 + $0xf0] sm:$0xff] }
  0x6c   : > { %5840 = vmatmul.msk.bf16.gmra.mxu0 %vm1118_vm2, %v1092_v12 }
  0x7c   : > { %5841 = vmatmul.msk.bf16.gmra.mxu0 %vm1118_vm2, %v1093_v15  ;;  %v1104_v15 = vpack.c.bf16 %v1086_v14, %v1085_v13 }
  0x8c   : > { %5842 = vmatmul.msk.bf16.gmra.mxu0 %vm1118_vm2, %v1094_v18  ;;  %v1087_v18 = vld [vmem:[%s7646_s0 + $0xe0] sm:$0xff] }
  0x8d   : > { %v1105_v20 = vpack.c.bf16 %v1088_v19, %v1087_v18 }
  0x9c   : > { %5843 = vmatmul.msk.bf16.gmra.mxu0 %vm1118_vm2, %v1095_v21 }
  0xac   : > { %5844 = vmatmul.msk.bf16.gmra.mxu0 %vm1118_vm2, %v1096_v24  ;;  %v1090_v24 = vld [vmem:[%s7646_s0 + $0xf8] sm:$0xff]  ;;  %s7425_s0 = smov 112  }
  0xad   : > { %v1106_v25 = vpack.c.bf16 %v1090_v24, %v1089_v23  ;;  %v5865_v23 = vld [vmem:[#allocation8 + $0x10] sm:$0xf]  ;;  %v6993_v24 = vld [vmem:[#allocation8 + $0x14] sm:$0xf0] }
  0xbc   : > { %5845 = vmatmul.msk.bf16.gmra.mxu0 %vm1118_vm2, %v1097_v27 }
  0xcc   : > { %5846 = vmatmul.msk.bf16.gmra.mxu0 %vm1118_vm2, %v1098_v30 }
  0xd9   : > { %v1183_v34 = vpop.f32.mrf.mxu0 }
  0xda   : > { %v1184_v36 = vadd.f32 %v7677_v35, %v1183_v34 }
  0xdc   : > { %5847 = vmatmul.msk.bf16.gmra.mxu0 %vm1118_vm2, %v1099_v33  ;;  %v1263_v39 = vmax.f32 %v1184_v36, 0.0 }
  0xe1   : > { %v1185_v37 = vpop.f32.mrf.mxu0 }
  0xe2   : > { %v1186_v38 = vadd.f32 %v7677_v35, %v1185_v37 }
  0xe4   : > { %v1264_v40 = vmax.f32 %v1186_v38, 0.0 }
  0xe6   : > { %v7684_v43 = vpack.c.bf16 %v1264_v40, %v1263_v39 }
  0xe9   : > { %v1188_v45 = vpop.f32.mrf.mxu0 }
  0xea   : > { %v1189_v46 = vadd.f32 %v7677_v35, %v1188_v45 }
  0xec   : > { %5848 = vmatmul.msk.bf16.gmra.mxu0 %vm1118_vm2, %v1100_v44  ;;  %v1265_v49 = vmax.f32 %v1189_v46, 0.0 }
  0xf1   : > { %v1190_v47 = vpop.f32.mrf.mxu0 }
  0xf2   : > { %v1191_v48 = vadd.f32 %v7677_v35, %v1190_v47 }
  0xf4   : > { %v1266_v50 = vmax.f32 %v1191_v48, 0.0 }
  0xf6   : > { %v7691_v53 = vpack.c.bf16 %v1266_v50, %v1265_v49 }
  0xf9   : > { %v1193_v55 = vpop.f32.mrf.mxu0 }
  0xfa   : > { %v1194_v56 = vadd.f32 %v7677_v35, %v1193_v55 }
  0xfc   : > { %5849 = vmatmul.msk.bf16.gmra.mxu0 %vm1118_vm2, %v1101_v54  ;;  %v1267_v59 = vmax.f32 %v1194_v56, 0.0 }
 0x101   : > { %v1195_v57 = vpop.f32.mrf.mxu0 }
 0x102   : > { %v1196_v58 = vadd.f32 %v7677_v35, %v1195_v57 }
 0x104   : > { %v1268_v60 = vmax.f32 %v1196_v58, 0.0 }
 0x106   : > { %v1297_v63 = vpack.c.bf16 %v1268_v60, %v1267_v59 }
 0x109   : > { %v1198_v1 = vpop.f32.mrf.mxu0 }
 0x10a   : > { %v1199_v2 = vadd.f32 %v7677_v35, %v1198_v1 }
 0x10c   : > { %5850 = vmatmul.msk.bf16.gmra.mxu0 %vm1118_vm2, %v1102_v0  ;;  %v1269_v5 = vmax.f32 %v1199_v2, 0.0 }
 0x111   : > { %v1200_v3 = vpop.f32.mrf.mxu0 }
 0x112   : > { %v1201_v4 = vadd.f32 %v7677_v35, %v1200_v3 }
 0x114   : > { %v1270_v6 = vmax.f32 %v1201_v4, 0.0 }
 0x116   : > { %v1298_v9 = vpack.c.bf16 %v1270_v6, %v1269_v5  ;;  %v5857_v5 = vld [vmem:[#allocation8] sm:$0xf] }
 0x119   : > { %v1203_v11 = vpop.f32.mrf.mxu0 }
 0x11a   : > { %v1204_v45 = vadd.f32 %v7677_v35, %v1203_v11 }
 0x11c   : > { %5851 = vmatmul.msk.bf16.gmra.mxu0 %vm1118_vm2, %v1103_v10  ;;  %v1271_v49 = vmax.f32 %v1204_v45, 0.0 }
 0x121   : > { %v1205_v12 = vpop.f32.mrf.mxu0 }
 0x122   : > { %v1206_v41 = vadd.f32 %v7677_v35, %v1205_v12 }
 0x124   : > { %v1272_v47 = vmax.f32 %v1206_v41, 0.0 }
 0x126   : > { %v1299_v51 = vpack.c.bf16 %v1272_v47, %v1271_v49  ;;  %v6995_v49 = vld [vmem:[#allocation8 + $0x24] sm:$0xf0] }
 0x129   : > { %v1208_v16 = vpop.f32.mrf.mxu0 }
 0x12a   : > { %v1209_v38 = vadd.f32 %v7677_v35, %v1208_v16 }
 0x12c   : > { %5852 = vmatmul.msk.bf16.gmra.mxu0 %vm1118_vm2, %v1104_v15  ;;  %v1273_v46 = vmax.f32 %v1209_v38, 0.0 }
 0x131   : > { %v1210_v17 = vpop.f32.mrf.mxu0 }
 0x132   : > { %v1211_v34 = vadd.f32 %v7677_v35, %v1210_v17 }
 0x134   : > { %v1274_v42 = vmax.f32 %v1211_v34, 0.0 }
 0x136   : > { %v1300_v48 = vpack.c.bf16 %v1274_v42, %v1273_v46 }
 0x139   : > { %v1213_v21 = vpop.f32.mrf.mxu0 }
 0x13a   : > { %v1214_v31 = vadd.f32 %v7677_v35, %v1213_v21 }
 0x13c   : > { %5853 = vmatmul.msk.bf16.gmra.mxu0 %vm1118_vm2, %v1105_v20  ;;  %v1275_v39 = vmax.f32 %v1214_v31, 0.0 }
 0x141   : > { %v1215_v22 = vpop.f32.mrf.mxu0 }
 0x142   : > { %v1216_v29 = vadd.f32 %v7677_v35, %v1215_v22 }
 0x144   : > { %v1276_v36 = vmax.f32 %v1216_v29, 0.0 }
 0x146   : > { %v1301_v44 = vpack.c.bf16 %v1276_v36, %v1275_v39 }
 0x149   : > { %v1218_v26 = vpop.f32.mrf.mxu0 }
 0x14a   : > { %v1219_v27 = vadd.f32 %v7677_v35, %v1218_v26 }
 0x14c   : > { %5854 = vmatmul.msk.bf16.gmra.mxu0 %vm1118_vm2, %v1106_v25  ;;  %v1277_v32 = vmax.f32 %v1219_v27, 0.0  ;;  %v5866_v27 = vor.u32 %v6993_v24, %v5865_v23  ;;  %vm3301_vm2 = vcmask 523648  }
 0x151   : > { %v1220_v28 = vpop.f32.mrf.mxu0 }
 0x152   : > { %v1221_v30 = vadd.f32 %v7677_v35, %v1220_v28 }
 0x154   : > { %v1278_v33 = vmax.f32 %v1221_v30, 0.0 }
 0x156   : > { %v1302_v37 = vpack.c.bf16 %v1278_v33, %v1277_v32 }
 0x158   : > { %1743 = vmatpush.bf16.msra.mxu1 %v1302_v37 }
 0x159   : > { %v7719_v40 = vpop.f32.mrf.mxu0 }
 0x15c   : > { %1744 = vmatpush.bf16.msra.mxu1 %v1301_v44  ;;  %v1224_v44 = vadd.f32 %v7677_v35, %v7719_v40 }
 0x160   : > { %1745 = vmatpush.bf16.msra.mxu1 %v1300_v48  ;;  %v5873_v48 = vld [vmem:[#allocation8 + $0x20] sm:$0xf] }
 0x161   : > { %v7723_v50 = vpop.f32.mrf.mxu0 }
 0x162   : > { %v1226_v39 = vadd.f32 %v7677_v35, %v7723_v50  ;;  %v5881_v50 = vld [vmem:[#allocation8 + $0x30] sm:$0xf] }
 0x164   : > { %1746 = vmatpush.bf16.msra.mxu1 %v1299_v51  ;;  %v1280_v46 = vmax.f32 %v1226_v39, 0.0  ;;  %v1279_v51 = vmax.f32 %v1224_v44, 0.0  ;;  %v5937_v39 = vld [vmem:[#allocation8 + $0xa0] sm:$0xf] }
 0x168   : > { %1747 = vmatpush.bf16.msra.mxu1 %v1298_v9 }
 0x169   : > { %v1228_v52 = vpop.f32.mrf.mxu0 }
 0x16a   : > { %v1229_v37 = vadd.f32 %v7677_v35, %v1228_v52  ;;  %v5859_v52 = vld [vmem:[#allocation8 + $0x8] sm:$0xf0] }
 0x16c   : > { %1748 = vmatpush.bf16.msra.mxu1 %v1297_v63  ;;  %v1281_v45 = vmax.f32 %v1229_v37, 0.0  ;;  %v5923_v37 = vld [vmem:[#allocation8 + $0x88] sm:$0xf0] }
 0x170   : > { %1749 = vmatpush.bf16.msra.mxu1 %v7691_v53 }
 0x171   : > { %v1230_v54 = vpop.f32.mrf.mxu0 }
 0x172   : > { %v1231_v33 = vadd.f32 %v7677_v35, %v1230_v54  ;;  %v6990_v54 = vld [vmem:[#allocation8 + $0x4] sm:$0xf] }
 0x174   : > { %1750 = vmatpush.bf16.msra.mxu1 %v7684_v43  ;;  %v6991_v43 = vld [vmem:[#allocation8 + $0x4] sm:$0xf0]  ;;  %v1282_v41 = vmax.f32 %v1231_v33, 0.0 }
 0x175   : > { %v5858_v6 = vor.u32 %v6991_v43, %v5857_v5  ;;  %v5883_v5 = vld [vmem:[#allocation8 + $0x38] sm:$0xf0] }
 0x176   : > { %v1304_v47 = vpack.c.bf16 %v1282_v41, %v1281_v45  ;;  %v7011_v41 = vld [vmem:[#allocation8 + $0xa4] sm:$0xf0] }
 0x177   : > { %1751 = vmatmul.bf16.vlgmr.msra.gmra.mxu1 %v5858_v6  ;;  %v5938_v44 = vor.u32 %v7011_v41, %v5937_v39 }
 0x179   : > { %v1233_v55 = vpop.f32.mrf.mxu0 }
 0x17a   : > { %v1234_v31 = vadd.f32 %v7677_v35, %v1233_v55  ;;  %v5874_v55 = vor.u32 %v6995_v49, %v5873_v48  ;;  %v7008_v48 = vld [vmem:[#allocation8 + $0x94] sm:$0xf]  ;;  %v5931_v49 = vld [vmem:[#allocation8 + $0x98] sm:$0xf0] }
 0x17c   : > { %v1283_v38 = vmax.f32 %v1234_v31, 0.0  ;;  %v7009_v31 = vld [vmem:[#allocation8 + $0x94] sm:$0xf0] }
 0x181   : > { %v1235_v56 = vpop.f32.mrf.mxu0 }
 0x182   : > { %v1236_v28 = vadd.f32 %v7677_v35, %v1235_v56  ;;  %v1303_v56 = vpack.c.bf16 %v1280_v46, %v1279_v51 }
 0x184   : > { %v1284_v34 = vmax.f32 %v1236_v28, 0.0  ;;  %v5915_v28 = vld [vmem:[#allocation8 + $0x78] sm:$0xf0] }
 0x186   : > { %v1305_v42 = vpack.c.bf16 %v1284_v34, %v1283_v38 }
 0x187   : > { %1756 = vmatmul.bf16.gmra.mxu1 %v5866_v27  ;;  %v7004_v27 = vld [vmem:[#allocation8 + $0x74] sm:$0xf] }
 0x189   : > { %v1238_v57 = vpop.f32.mrf.mxu0 }
 0x18a   : > { %v1239_v25 = vadd.f32 %v7677_v35, %v1238_v57  ;;  %v5862_v57 = vor.u32 %v6990_v54, %v5859_v52  ;;  %v5945_v52 = vld [vmem:[#allocation8 + $0xb0] sm:$0xf] }
 0x18c   : > { %v1285_v32 = vmax.f32 %v1239_v25, 0.0 }
 0x191   : > { %v1240_v58 = vpop.f32.mrf.mxu0 }
 0x192   : > { %v1241_v20 = vadd.f32 %v7677_v35, %v1240_v58  ;;  %v6997_v58 = vld [vmem:[#allocation8 + $0x34] sm:$0xf0] }
 0x193   : > { %v5882_v40 = vor.u32 %v6997_v58, %v5881_v50 }
 0x194   : > { %v1286_v29 = vmax.f32 %v1241_v20, 0.0  ;;  %v7007_v20 = vld [vmem:[#allocation8 + $0x84] sm:$0xf0] }
 0x196   : > { %v1306_v36 = vpack.c.bf16 %v1286_v29, %v1285_v32  ;;  %v5918_v32 = vor.u32 %v7004_v27, %v5915_v28 }
 0x197   : > { %1761 = vmatmul.bf16.gmra.mxu1 %v5874_v55  ;;  %v7013_v55 = vld [vmem:[#allocation8 + $0xb4] sm:$0xf0] }
 0x198   : > { %v5946_v50 = vor.u32 %v7013_v55, %v5945_v52 }
 0x199   : > { %v1243_v59 = vpop.f32.mrf.mxu0 }
 0x19a   : > { %v1244_v18 = vadd.f32 %v7677_v35, %v1243_v59  ;;  %v6992_v59 = vld [vmem:[#allocation8 + $0x14] sm:$0xf] }
 0x19c   : > { %v1287_v26 = vmax.f32 %v1244_v18, 0.0 }
 0x1a1   : > { %v1245_v60 = vpop.f32.mrf.mxu0 }
 0x1a2   : > { %v1246_v15 = vadd.f32 %v7677_v35, %v1245_v60 }
 0x1a4   : > { %v1288_v21 = vmax.f32 %v1246_v15, 0.0  ;;  %v7000_v15 = vld [vmem:[#allocation8 + $0x54] sm:$0xf] }
 0x1a6   : > { %v1307_v30 = vpack.c.bf16 %v1288_v21, %v1287_v26  ;;  %v7002_v21 = vld [vmem:[#allocation8 + $0x64] sm:$0xf] }
 0x1a7   : > { %1766 = vmatmul.bf16.gmra.mxu1 %v5882_v40  ;;  %v7010_v40 = vld [vmem:[#allocation8 + $0xa4] sm:$0xf] }
 0x1a9   : > { %v1248_v61 = vpop.f32.mrf.mxu0 }
 0x1aa   : > { %v1249_v13 = vadd.f32 %v7677_v35, %v1248_v61  ;;  %v5889_v61 = vld [vmem:[#allocation8 + $0x40] sm:$0xf] }
 0x1ac   : > { %v1289_v19 = vmax.f32 %v1249_v13, 0.0  ;;  %v5913_v13 = vld [vmem:[#allocation8 + $0x70] sm:$0xf] }
 0x1b1   : > { %v1250_v62 = vpop.f32.mrf.mxu0 }
 0x1b2   : > { %v1251_v10 = vadd.f32 %v7677_v35, %v1250_v62  ;;  %v6999_v62 = vld [vmem:[#allocation8 + $0x44] sm:$0xf0] }
 0x1b4   : > { %v1290_v16 = vmax.f32 %v1251_v10, 0.0  ;;  %v5891_v10 = vld [vmem:[#allocation8 + $0x48] sm:$0xf0] }
 0x1b6   : > { %v1308_v22 = vpack.c.bf16 %v1290_v16, %v1289_v19  ;;  %v5899_v16 = vld [vmem:[#allocation8 + $0x58] sm:$0xf0]  ;;  %v5921_v19 = vld [vmem:[#allocation8 + $0x80] sm:$0xf] }
 0x1b7   : > { %v5902_v18 = vor.u32 %v7000_v15, %v5899_v16  ;;  %v5922_v23 = vor.u32 %v7007_v20, %v5921_v19 }
 0x1b9   : > { %v1253_v0 = vpop.f32.mrf.mxu0 }
 0x1ba   : > { %v1254_v7 = vadd.f32 %v7677_v35, %v1253_v0  ;;  %v6994_v0 = vld [vmem:[#allocation8 + $0x24] sm:$0xf] }
 0x1bc   : > { %v1291_v14 = vmax.f32 %v1254_v7, 0.0  ;;  %v5905_v7 = vld [vmem:[#allocation8 + $0x60] sm:$0xf] }
 0x1c1   : > { %v1255_v1 = vpop.f32.mrf.mxu0 }
 0x1c2   : > { %v1256_v63 = vadd.f32 %v7677_v35, %v1255_v1  ;;  %v5875_v1 = vld [vmem:[#allocation8 + $0x28] sm:$0xf0] }
 0x1c4   : > { %v1292_v11 = vmax.f32 %v1256_v63, 0.0  ;;  %v7001_v63 = vld [vmem:[#allocation8 + $0x54] sm:$0xf0] }
 0x1c6   : > { %v1309_v17 = vpack.c.bf16 %v1292_v11, %v1291_v14  ;;  %v7005_v14 = vld [vmem:[#allocation8 + $0x74] sm:$0xf0] }
 0x1c9   : > { %v1258_v2 = vpop.f32.mrf.mxu0 }
 0x1ca   : > { %v1259_v3 = vadd.f32 %v7677_v35, %v1258_v2  ;;  %v5890_v2 = vor.u32 %v6999_v62, %v5889_v61 }
 0x1cc   : > { %v1293_v8 = vmax.f32 %v1259_v3, 0.0  ;;  %v5878_v3 = vor.u32 %v6994_v0, %v5875_v1  ;;  %1771 = vmatmul.bf16.gmra.mxu1 %v5890_v2  ;;  %v5953_v0 = vld [vmem:[#allocation8 + $0xc0] sm:$0xf]  ;;  %v7015_v1 = vld [vmem:[#allocation8 + $0xc4] sm:$0xf0] }
 0x1d1   : > { %v1260_v4 = vpop.f32.mrf.mxu0 }
 0x1d2   : > { %v1261_v53 = vadd.f32 %v7677_v35, %v1260_v4  ;;  %v5867_v35 = vld [vmem:[#allocation8 + $0x18] sm:$0xf0]  ;;  %v5897_v4 = vld [vmem:[#allocation8 + $0x50] sm:$0xf] }
 0x1d3   : > { %v5870_v60 = vor.u32 %v6992_v59, %v5867_v35  ;;  %v5898_v43 = vor.u32 %v7001_v63, %v5897_v4  ;;  %v5954_v4 = vor.u32 %v7015_v1, %v5953_v0 }
 0x1d4   : > { %v1294_v9 = vmax.f32 %v1261_v53, 0.0  ;;  %v6996_v53 = vld [vmem:[#allocation8 + $0x34] sm:$0xf] }
 0x1d5   : > { %v5886_v6 = vor.u32 %v6996_v53, %v5883_v5 }
 0x1d6   : > { %v1310_v12 = vpack.c.bf16 %v1294_v9, %v1293_v8  ;;  %v7003_v8 = vld [vmem:[#allocation8 + $0x64] sm:$0xf0]  ;;  %v6998_v9 = vld [vmem:[#allocation8 + $0x44] sm:$0xf] }
 0x1d7   : > { %v5906_v11 = vor.u32 %v7003_v8, %v5905_v7 }
 0x1d8   : > { %1932 = vmatpush.bf16.msra.mxu2 %v1310_v12  ;;  %v5894_v12 = vor.u32 %v6998_v9, %v5891_v10  ;;  %v5961_v9 = vld [vmem:[#allocation8 + $0xd0] sm:$0xf]  ;;  %v7017_v10 = vld [vmem:[#allocation8 + $0xd4] sm:$0xf0] }
 0x1dc   : > { %1933 = vmatpush.bf16.msra.mxu2 %v1309_v17  ;;  %1776 = vmatmul.bf16.gmra.mxu1 %v5898_v43  ;;  %v5914_v17 = vor.u32 %v7005_v14, %v5913_v13  ;;  %v7012_v43 = vld [vmem:[#allocation8 + $0xb4] sm:$0xf]  ;;  %v5962_v13 = vor.u32 %v7017_v10, %v5961_v9 }
 0x1e0   : > { %1934 = vmatpush.bf16.msra.mxu2 %v1308_v22  ;;  %v5907_v22 = vld [vmem:[#allocation8 + $0x68] sm:$0xf0] }
 0x1e1   : > { %v5910_v25 = vor.u32 %v7002_v21, %v5907_v22  ;;  %v5969_v21 = vld [vmem:[#allocation8 + $0xe0] sm:$0xf]  ;;  %v7019_v22 = vld [vmem:[#allocation8 + $0xe4] sm:$0xf0] }
 0x1e4   : > { %1935 = vmatpush.bf16.msra.mxu2 %v1307_v30  ;;  %v5929_v30 = vld [vmem:[#allocation8 + $0x90] sm:$0xf] }
 0x1e5   : > { %v5930_v33 = vor.u32 %v7009_v31, %v5929_v30  ;;  %v5963_v30 = vld [vmem:[#allocation8 + $0xd8] sm:$0xf0] }
 0x1e8   : > { %1936 = vmatpush.bf16.msra.mxu2 %v1306_v36  ;;  %v7006_v36 = vld [vmem:[#allocation8 + $0x84] sm:$0xf] }
 0x1ec   : > { %1937 = vmatpush.bf16.msra.mxu2 %v1305_v42  ;;  %1781 = vmatmul.bf16.gmra.mxu1 %v5906_v11  ;;  %v5926_v42 = vor.u32 %v7006_v36, %v5923_v37 }
 0x1f0   : > { %1938 = vmatpush.bf16.msra.mxu2 %v1304_v47 }
 0x1f4   : > { %1939 = vmatpush.bf16.msra.mxu2 %v1303_v56  ;;  %v1752_v24 = vpop.f32.mrf.mxu1 }
 0x1f7   : > { %1940 = vmatmul.bf16.vlgmr.msra.gmra.mxu2 %v5862_v57  ;;  %v5934_v57 = vor.u32 %v7008_v48, %v5931_v49  ;;  %v5985_v48 = vld [vmem:[#allocation8 + $0x100] sm:$0xf]  ;;  %v7023_v49 = vld [vmem:[#allocation8 + $0x104] sm:$0xf0] }
 0x1f8   : > { %v5986_v52 = vor.u32 %v7023_v49, %v5985_v48 }
 0x1fc   : > { %1786 = vmatmul.bf16.gmra.mxu1 %v5914_v17  ;;  %v1754_v26 = vpop.f32.mrf.mxu1  ;;  %v7014_v17 = vld [vmem:[#allocation8 + $0xc4] sm:$0xf] }
 0x204   : > { %v1757_v29 = vpop.f32.mrf.mxu1 }
 0x207   : > { %1945 = vmatmul.bf16.gmra.mxu2 %v5870_v60  ;;  %v5939_v60 = vld [vmem:[#allocation8 + $0xa8] sm:$0xf0] }
 0x20c   : > { %1791 = vmatmul.bf16.gmra.mxu1 %v5922_v23  ;;  %v1759_v34 = vpop.f32.mrf.mxu1 }
 0x214   : > { %v1762_v38 = vpop.f32.mrf.mxu1 }
 0x217   : > { %1950 = vmatmul.bf16.gmra.mxu2 %v5878_v3  ;;  %v5942_v3 = vor.u32 %v7010_v40, %v5939_v60  ;;  %v5993_v40 = vld [vmem:[#allocation8 + $0x110] sm:$0xf]  ;;  %v7025_v60 = vld [vmem:[#allocation8 + $0x114] sm:$0xf0] }
 0x218   : > { %v5994_v0 = vor.u32 %v7025_v60, %v5993_v40  ;;  %v6033_v40 = vld [vmem:[#allocation8 + $0x160] sm:$0xf]  ;;  %v7035_v60 = vld [vmem:[#allocation8 + $0x164] sm:$0xf0] }
 0x21c   : > { %1796 = vmatmul.bf16.gmra.mxu1 %v5930_v33  ;;  %v1764_v46 = vpop.f32.mrf.mxu1  ;;  %v5977_v33 = vld [vmem:[#allocation8 + $0xf0] sm:$0xf] }
 0x224   : > { %v1767_v54 = vpop.f32.mrf.mxu1 }
 0x227   : > { %1955 = vmatmul.bf16.gmra.mxu2 %v5886_v6  ;;  %v5947_v6 = vld [vmem:[#allocation8 + $0xb8] sm:$0xf0] }
 0x22c   : > { %1801 = vmatmul.bf16.gmra.mxu1 %v5938_v44  ;;  %v1769_v59 = vpop.f32.mrf.mxu1  ;;  %v7018_v44 = vld [vmem:[#allocation8 + $0xe4] sm:$0xf] }
 0x237   : > { %1960 = vmatmul.bf16.gmra.mxu2 %v5894_v12  ;;  %v5950_v12 = vor.u32 %v7012_v43, %v5947_v6  ;;  %v6001_v43 = vld [vmem:[#allocation8 + $0x120] sm:$0xf]  ;;  %v7027_v6 = vld [vmem:[#allocation8 + $0x124] sm:$0xf0] }
 0x238   : > { %v6002_v9 = vor.u32 %v7027_v6, %v6001_v43 }
 0x23c   : > { %1806 = vmatmul.bf16.gmra.mxu1 %v5946_v50  ;;  %v7020_v50 = vld [vmem:[#allocation8 + $0xf4] sm:$0xf] }
 0x247   : > { %1965 = vmatmul.bf16.gmra.mxu2 %v5902_v18  ;;  %v5955_v18 = vld [vmem:[#allocation8 + $0xc8] sm:$0xf0] }
 0x249   : > { %v1772_v62 = vpop.f32.mrf.mxu1 }
 0x24c   : > { %1811 = vmatmul.bf16.gmra.mxu1 %v5954_v4  ;;  %v7022_v4 = vld [vmem:[#allocation8 + $0x104] sm:$0xf] }
 0x251   : > { %v1774_v53 = vpop.f32.mrf.mxu1 }
 0x257   : > { %1970 = vmatmul.bf16.gmra.mxu2 %v5910_v25  ;;  %v5970_v25 = vor.u32 %v7019_v22, %v5969_v21 }
 0x259   : > { %v1777_v8 = vpop.f32.mrf.mxu1 }
 0x25c   : > { %1816 = vmatmul.bf16.gmra.mxu1 %v5962_v13  ;;  %v7024_v13 = vld [vmem:[#allocation8 + $0x114] sm:$0xf] }
 0x261   : > { %v1779_v15 = vpop.f32.mrf.mxu1 }
 0x267   : > { %1975 = vmatmul.bf16.gmra.mxu2 %v5918_v32 }
 0x269   : > { %v1782_v20 = vpop.f32.mrf.mxu1 }
 0x26c   : > { %1821 = vmatmul.bf16.gmra.mxu1 %v5970_v25  ;;  %v7026_v25 = vld [vmem:[#allocation8 + $0x124] sm:$0xf] }
 0x271   : > { %v1784_v27 = vpop.f32.mrf.mxu1 }
 0x277   : > { %1980 = vmatmul.bf16.gmra.mxu2 %v5926_v42 }
 0x279   : > { %v1787_v32 = vpop.f32.mrf.mxu1 }
 0x27a   : > { %v1941_v45 = vpop.f32.mrf.mxu2 }
 0x27b   : > { %v1942_v47 = vadd.f32 %v1941_v45, %v1752_v24  ;;  %v5958_v24 = vor.u32 %v7014_v17, %v5955_v18  ;;  %v5971_v45 = vld [vmem:[#allocation8 + $0xe8] sm:$0xf0]  ;;  %v6009_v17 = vld [vmem:[#allocation8 + $0x130] sm:$0xf]  ;;  %v7029_v18 = vld [vmem:[#allocation8 + $0x134] sm:$0xf0] }
 0x27c   : > { %v6010_v21 = vor.u32 %v7029_v18, %v6009_v17 }
 0x27d   : > { %2122 = vst.msk [vmem:[#allocation2] sm:$0xff] %vm2121_vm3, %v1942_v47 }
 0x281   : > { %v1789_v41 = vpop.f32.mrf.mxu1 }
 0x282   : > { %v1943_v51 = vpop.f32.mrf.mxu2 }
 0x283   : > { %v1944_v56 = vadd.f32 %v1943_v51, %v1754_v26 }
 0x285   : > { %2123 = vst.msk [vmem:[#allocation2 + $0x8] sm:$0xff] %vm2121_vm3, %v1944_v56 }
 0x287   : > { %1985 = vmatmul.bf16.gmra.mxu2 %v5934_v57 }
 0x289   : > { %v1792_v47 = vpop.f32.mrf.mxu1 }
 0x28a   : > { %v1946_v58 = vpop.f32.mrf.mxu2 }
 0x28b   : > { %v1947_v35 = vadd.f32 %v1946_v58, %v1757_v29  ;;  %v7016_v29 = vld [vmem:[#allocation8 + $0xd4] sm:$0xf]  ;;  %v5979_v58 = vld [vmem:[#allocation8 + $0xf8] sm:$0xf0] }
 0x28c   : > { %v5966_v37 = vor.u32 %v7016_v29, %v5963_v30 }
 0x28d   : > { %2124 = vst.msk [vmem:[#allocation2 + $0x10] sm:$0xff] %vm2121_vm3, %v1947_v35 }
 0x291   : > { %v1794_v56 = vpop.f32.mrf.mxu1 }
 0x292   : > { %v1948_v61 = vpop.f32.mrf.mxu2 }
 0x293   : > { %v1949_v2 = vadd.f32 %v1948_v61, %v1759_v34  ;;  %v7021_v34 = vld [vmem:[#allocation8 + $0xf4] sm:$0xf0] }
 0x295   : > { %2125 = vst.msk [vmem:[#allocation2 + $0x18] sm:$0xff] %vm2121_vm3, %v1949_v2 }
 0x297   : > { %1990 = vmatmul.bf16.gmra.mxu2 %v5942_v3 }
 0x299   : > { %v1797_v35 = vpop.f32.mrf.mxu1 }
 0x29a   : > { %v1951_v63 = vpop.f32.mrf.mxu2 }
 0x29b   : > { %v1952_v5 = vadd.f32 %v1951_v63, %v1762_v38  ;;  %v5978_v38 = vor.u32 %v7021_v34, %v5977_v33  ;;  %v5987_v63 = vld [vmem:[#allocation8 + $0x108] sm:$0xf0] }
 0x29d   : > { %2126 = vst.msk [vmem:[#allocation2 + $0x20] sm:$0xff] %vm2121_vm3, %v1952_v5  ;;  %1826 = vmatmul.bf16.gmra.mxu1 %v5978_v38  ;;  %v7028_v38 = vld [vmem:[#allocation8 + $0x134] sm:$0xf] }
 0x2a1   : > { %v1799_v2 = vpop.f32.mrf.mxu1 }
 0x2a2   : > { %v1953_v7 = vpop.f32.mrf.mxu2 }
 0x2a3   : > { %v1954_v11 = vadd.f32 %v1953_v7, %v1764_v46 }
 0x2a5   : > { %2127 = vst.msk [vmem:[#allocation2 + $0x28] sm:$0xff] %vm2121_vm3, %v1954_v11 }
 0x2a7   : > { %1995 = vmatmul.bf16.gmra.mxu2 %v5950_v12 }
 0x2a9   : > { %v1802_v5 = vpop.f32.mrf.mxu1 }
 0x2aa   : > { %v1956_v14 = vpop.f32.mrf.mxu2 }
 0x2ab   : > { %v1957_v16 = vadd.f32 %v1956_v14, %v1767_v54  ;;  %v5974_v54 = vor.u32 %v7018_v44, %v5971_v45  ;;  %v5995_v14 = vld [vmem:[#allocation8 + $0x118] sm:$0xf0] }
 0x2ad   : > { %2128 = vst.msk [vmem:[#allocation2 + $0x30] sm:$0xff] %vm2121_vm3, %v1957_v16  ;;  %1831 = vmatmul.bf16.gmra.mxu1 %v5986_v52 }
 0x2b1   : > { %v1804_v11 = vpop.f32.mrf.mxu1 }
 0x2b2   : > { %v1958_v19 = vpop.f32.mrf.mxu2 }
 0x2b3   : > { %v1959_v23 = vadd.f32 %v1958_v19, %v1769_v59 }
 0x2b5   : > { %2129 = vst.msk [vmem:[#allocation2 + $0x38] sm:$0xff] %vm2121_vm3, %v1959_v23 }
 0x2b7   : > { %2000 = vmatmul.bf16.gmra.mxu2 %v5958_v24 }
 0x2b9   : > { %v1807_v16 = vpop.f32.mrf.mxu1 }
 0x2ba   : > { %v1961_v26 = vpop.f32.mrf.mxu2 }
 0x2bb   : > { %v1962_v28 = vadd.f32 %v1961_v26, %v1772_v62  ;;  %v5982_v62 = vor.u32 %v7020_v50, %v5979_v58  ;;  %v6003_v26 = vld [vmem:[#allocation8 + $0x128] sm:$0xf0] }
 0x2bc   : > { %v6006_v30 = vor.u32 %v7026_v25, %v6003_v26 }
 0x2bd   : > { %2138 = vrot.lane.b32.xlu0 %v1962_v28, %s7415_s22  ;;  %1836 = vmatmul.bf16.gmra.mxu1 %v5994_v0 }
 0x2c1   : > { %v1809_v23 = vpop.f32.mrf.mxu1 }
 0x2c2   : > { %v1963_v31 = vpop.f32.mrf.mxu2 }
 0x2c3   : > { %v1964_v36 = vadd.f32 %v1963_v31, %v1774_v53  ;;  %v6017_v31 = vld [vmem:[#allocation8 + $0x140] sm:$0xf] }
 0x2c5   : > { %2140 = vrot.lane.b32.xlu0 %v1964_v36, %s7415_s22 }
 0x2c7   : > { %2005 = vmatmul.bf16.gmra.mxu2 %v5966_v37 }
 0x2c9   : > { %v1812_v28 = vpop.f32.mrf.mxu1 }
 0x2ca   : > { %v1966_v39 = vpop.f32.mrf.mxu2 }
 0x2cb   : > { %v1967_v42 = vadd.f32 %v1966_v39, %v1777_v8  ;;  %v5990_v8 = vor.u32 %v7022_v4, %v5987_v63  ;;  %v6011_v39 = vld [vmem:[#allocation8 + $0x138] sm:$0xf0]  ;;  %v7032_v63 = vld [vmem:[#allocation8 + $0x154] sm:$0xf] }
 0x2cc   : > { %v6014_v45 = vor.u32 %v7028_v38, %v6011_v39 }
 0x2cd   : > { %2142 = vrot.lane.b32.xlu1 %v1967_v42, %s7415_s22  ;;  %1841 = vmatmul.bf16.gmra.mxu1 %v6002_v9  ;;  %v7037_v9 = vld [vmem:[#allocation8 + $0x174] sm:$0xf0] }
 0x2d1   : > { %v1814_v36 = vpop.f32.mrf.mxu1 }
 0x2d2   : > { %v1968_v46 = vpop.f32.mrf.mxu2 }
 0x2d3   : > { %v1969_v51 = vadd.f32 %v1968_v46, %v1779_v15  ;;  %v6025_v46 = vld [vmem:[#allocation8 + $0x150] sm:$0xf] }
 0x2d5   : > { %2144 = vrot.lane.b32.xlu2 %v1969_v51, %s7415_s22 }
 0x2d7   : > { %2010 = vmatmul.bf16.gmra.mxu2 %v5974_v54 }
 0x2d9   : > { %v1817_v42 = vpop.f32.mrf.mxu1 }
 0x2da   : > { %v1971_v55 = vpop.f32.mrf.mxu2 }
 0x2db   : > { %v1972_v57 = vadd.f32 %v1971_v55, %v1782_v20  ;;  %v5998_v20 = vor.u32 %v7024_v13, %v5995_v14  ;;  %v7034_v14 = vld [vmem:[#allocation8 + $0x164] sm:$0xf] }
 0x2dd   : > { %2146 = vrot.lane.b32.xlu2 %v1972_v57, %s7415_s22  ;;  %1846 = vmatmul.bf16.gmra.mxu1 %v6010_v21  ;;  %v6019_v57 = vld [vmem:[#allocation8 + $0x148] sm:$0xf0]  ;;  %v7039_v21 = vld [vmem:[#allocation8 + $0x184] sm:$0xf0] }
 0x2e1   : > { %v1819_v51 = vpop.f32.mrf.mxu1 }
 0x2e2   : > { %v1973_v59 = vpop.f32.mrf.mxu2 }
 0x2e3   : > { %v1974_v61 = vadd.f32 %v1973_v59, %v1784_v27 }
 0x2e5   : > { %2148 = vrot.lane.b32.xlu0 %v1974_v61, %s7415_s22  ;;  %v6034_v61 = vor.u32 %v7035_v60, %v6033_v40 }
 0x2e7   : > { %2015 = vmatmul.bf16.gmra.mxu2 %v5982_v62 }
 0x2e9   : > { %v1822_v58 = vpop.f32.mrf.mxu1 }
 0x2ea   : > { %v1976_v1 = vpop.f32.mrf.mxu2 }
 0x2eb   : > { %v1977_v3 = vadd.f32 %v1976_v1, %v1787_v32  ;;  %v7031_v32 = vld [vmem:[#allocation8 + $0x144] sm:$0xf0] }
 0x2ec   : > { %v6018_v33 = vor.u32 %v7031_v32, %v6017_v31 }
 0x2ed   : > { %2150 = vrot.lane.b32.xlu0 %v1977_v3, %s7415_s22 }
 0x2ee   : > { %1851 = vmatmul.bf16.gmra.mxu1 %v6018_v33 }
 0x2f2   : > { %v1978_v53 = vpop.f32.mrf.mxu2 }
 0x2f3   : > { %v1979_v7 = vadd.f32 %v1978_v53, %v1789_v41  ;;  %v6027_v53 = vld [vmem:[#allocation8 + $0x158] sm:$0xf0] }
 0x2f5   : > { %2152 = vrot.lane.b32.xlu1 %v1979_v7, %s7415_s22  ;;  %v6030_v7 = vor.u32 %v7032_v63, %v6027_v53  ;;  %v7045_v63 = vld [vmem:[#allocation8 + $0x1b4] sm:$0xf0]  ;;  %s8541_s22 = sld [smem:[#allocation15_spill]] }
 0x2f7   : > { %2020 = vmatmul.bf16.gmra.mxu2 %v5990_v8  ;;  %v6041_v8 = vld [vmem:[#allocation8 + $0x170] sm:$0xf] }
 0x2fa   : > { %v1981_v10 = vpop.f32.mrf.mxu2 }
 0x2fb   : > { %v1982_v12 = vadd.f32 %v1981_v10, %v1792_v47  ;;  %v7033_v47 = vld [vmem:[#allocation8 + $0x154] sm:$0xf0]  ;;  %v6042_v10 = vor.u32 %v7037_v9, %v6041_v8  ;;  %v7042_v9 = vld [vmem:[#allocation8 + $0x1a4] sm:$0xf] }
 0x2fc   : > { %v6026_v48 = vor.u32 %v7033_v47, %v6025_v46  ;;  %v6051_v46 = vld [vmem:[#allocation8 + $0x188] sm:$0xf0] }
 0x2fd   : > { %2179 = vrot.lane.b32.xlu1 %v1982_v12, %s7416_s23 }
 0x2fe   : > { %1856 = vmatmul.bf16.gmra.mxu1 %v6026_v48 }
 0x302   : > { %v1983_v15 = vpop.f32.mrf.mxu2 }
 0x303   : > { %v1984_v19 = vadd.f32 %v1983_v15, %v1794_v56  ;;  %v7030_v56 = vld [vmem:[#allocation8 + $0x144] sm:$0xf]  ;;  %v6035_v15 = vld [vmem:[#allocation8 + $0x168] sm:$0xf0] }
 0x305   : > { %2181 = vrot.lane.b32.xlu1 %v1984_v19, %s7416_s23  ;;  %v6038_v19 = vor.u32 %v7034_v14, %v6035_v15  ;;  %v6081_v15 = vld [vmem:[#allocation8 + $0x1c0] sm:$0xf] }
 0x307   : > { %2025 = vmatmul.bf16.gmra.mxu2 %v5998_v20  ;;  %v6049_v20 = vld [vmem:[#allocation8 + $0x180] sm:$0xf] }
 0x30a   : > { %v1986_v22 = vpop.f32.mrf.mxu2 }
 0x30b   : > { %v1987_v24 = vadd.f32 %v1986_v22, %v1797_v35  ;;  %v6022_v35 = vor.u32 %v7030_v56, %v6019_v57  ;;  %v6050_v22 = vor.u32 %v7039_v21, %v6049_v20 }
 0x30d   : > { %2183 = vrot.lane.b32.xlu0 %v1987_v24, %s7416_s23 }
 0x30e   : > { %1861 = vmatmul.bf16.gmra.mxu1 %v6034_v61  ;;  %v7040_v61 = vld [vmem:[#allocation8 + $0x194] sm:$0xf] }
 0x312   : > { %v1988_v27 = vpop.f32.mrf.mxu2 }
 0x313   : > { %v1989_v29 = vadd.f32 %v1988_v27, %v1799_v2  ;;  %v1824_v2 = vpop.f32.mrf.mxu1 }
 0x315   : > { %2185 = vrot.lane.b32.xlu1 %v1989_v29, %s7416_s23  ;;  %v6043_v29 = vld [vmem:[#allocation8 + $0x178] sm:$0xf0] }
 0x317   : > { %2030 = vmatmul.bf16.gmra.mxu2 %v6006_v30 }
 0x31a   : > { %v1991_v34 = vpop.f32.mrf.mxu2 }
 0x31b   : > { %v1992_v37 = vadd.f32 %v1991_v34, %v1802_v5  ;;  %v1827_v43 = vpop.f32.mrf.mxu1  ;;  %v6057_v34 = vld [vmem:[#allocation8 + $0x190] sm:$0xf] }
 0x31d   : > { %2187 = vrot.lane.b32.xlu1 %v1992_v37, %s7416_s23 }
 0x31e   : > { %1866 = vmatmul.bf16.gmra.mxu1 %v6042_v10  ;;  %v6067_v10 = vld [vmem:[#allocation8 + $0x1a8] sm:$0xf0] }
 0x322   : > { %v1993_v41 = vpop.f32.mrf.mxu2 }
 0x323   : > { %v1994_v44 = vadd.f32 %v1993_v41, %v1804_v11  ;;  %v1829_v12 = vpop.f32.mrf.mxu1 }
 0x325   : > { %2189 = vrot.lane.b32.xlu2 %v1994_v44, %s7416_s23 }
 0x327   : > { %2035 = vmatmul.bf16.gmra.mxu2 %v6014_v45  ;;  %v7038_v45 = vld [vmem:[#allocation8 + $0x184] sm:$0xf] }
 0x32a   : > { %v1996_v49 = vpop.f32.mrf.mxu2 }
 0x32b   : > { %v7767_v54 = vadd.f32 %v1996_v49, %v1807_v16  ;;  %v1832_v17 = vpop.f32.mrf.mxu1 }
 0x32e   : > { %1871 = vmatmul.bf16.gmra.mxu1 %v6050_v22 }
 0x32f   : > { %v2139_v52 = vpop.permute.xlu0 %2138  ;;  %v2145_v55 = vpop.permute.xlu2 %2144 }
 0x330   : > { %2163 = vst.msk [vmem:[#allocation2] sm:$0xff] %vm2162_vm4, %v2139_v52  ;;  %v6065_v52 = vld [vmem:[#allocation8 + $0x1a0] sm:$0xf] }
 0x331   : > { %2166 = vst.msk [vmem:[#allocation2 + $0x18] sm:$0xff] %vm2162_vm4, %v2145_v55  ;;  %v7043_v55 = vld [vmem:[#allocation8 + $0x1a4] sm:$0xf0] }
 0x332   : > { %v1998_v50 = vpop.f32.mrf.mxu2  ;;  %v6066_v56 = vor.u32 %v7043_v55, %v6065_v52 }
 0x333   : > { %v7771_v59 = vadd.f32 %v1998_v50, %v1809_v23  ;;  %v1834_v25 = vpop.f32.mrf.mxu1 }
 0x337   : > { %2040 = vmatmul.bf16.gmra.mxu2 %v6022_v35  ;;  %v2141_v62 = vpop.permute.xlu0 %2140  ;;  %v2147_v0 = vpop.permute.xlu2 %2146 }
 0x338   : > { %2164 = vst.msk [vmem:[#allocation2 + $0x8] sm:$0xff] %vm2162_vm4, %v2141_v62  ;;  %v6059_v62 = vld [vmem:[#allocation8 + $0x198] sm:$0xf0] }
 0x339   : > { %2167 = vst.msk [vmem:[#allocation2 + $0x20] sm:$0xff] %vm2162_vm4, %v2147_v0 }
 0x33a   : > { %v2001_v1 = vpop.f32.mrf.mxu2 }
 0x33b   : > { %v2002_v3 = vadd.f32 %v2001_v1, %v1812_v28  ;;  %v7036_v28 = vld [vmem:[#allocation8 + $0x174] sm:$0xf]  ;;  %v1837_v31 = vpop.f32.mrf.mxu1 }
 0x33c   : > { %v6046_v33 = vor.u32 %v7036_v28, %v6043_v29  ;;  %v6089_v29 = vld [vmem:[#allocation8 + $0x1d0] sm:$0xf] }
 0x33d   : > { %2220 = vrot.lane.b32.xlu2 %v2002_v3, %s7417_s26  ;;  %v6062_v3 = vor.u32 %v7040_v61, %v6059_v62  ;;  %v7053_v61 = vld [vmem:[#allocation8 + $0x1f4] sm:$0xf0] }
 0x33f   : > { %v2143_v4 = vpop.permute.xlu1 %2142 }
 0x340   : > { %2165 = vst.msk [vmem:[#allocation2 + $0x10] sm:$0xff] %vm2162_vm4, %v2143_v4  ;;  %v6073_v4 = vld [vmem:[#allocation8 + $0x1b0] sm:$0xf] }
 0x341   : > { %v6074_v53 = vor.u32 %v7045_v63, %v6073_v4  ;;  %v7050_v63 = vld [vmem:[#allocation8 + $0x1e4] sm:$0xf] }
 0x342   : > { %v2003_v5 = vpop.f32.mrf.mxu2 }
 0x343   : > { %v2004_v6 = vadd.f32 %v2003_v5, %v1814_v36  ;;  %v7041_v36 = vld [vmem:[#allocation8 + $0x194] sm:$0xf0]  ;;  %v1839_v41 = vpop.f32.mrf.mxu1 }
 0x344   : > { %v6058_v37 = vor.u32 %v7041_v36, %v6057_v34 }
 0x345   : > { %2222 = vrot.lane.b32.xlu2 %v2004_v6, %s7417_s26 }
 0x346   : > { %1876 = vmatmul.bf16.gmra.mxu1 %v6058_v37  ;;  %v7046_v37 = vld [vmem:[#allocation8 + $0x1c4] sm:$0xf] }
 0x347   : > { %2045 = vmatmul.bf16.gmra.mxu2 %v6030_v7 }
 0x34a   : > { %v2006_v11 = vpop.f32.mrf.mxu2 }
 0x34b   : > { %v2007_v13 = vadd.f32 %v2006_v11, %v1817_v42  ;;  %v1842_v48 = vpop.f32.mrf.mxu1 }
 0x34d   : > { %2224 = vrot.lane.b32.xlu2 %v2007_v13, %s7417_s26  ;;  %v6070_v13 = vor.u32 %v7042_v9, %v6067_v10  ;;  %v7055_v9 = vld [vmem:[#allocation8 + $0x204] sm:$0xf0] }
 0x352   : > { %v2008_v16 = vpop.f32.mrf.mxu2 }
 0x353   : > { %v2009_v18 = vadd.f32 %v2008_v16, %v1819_v51  ;;  %v6054_v51 = vor.u32 %v7038_v45, %v6051_v46  ;;  %v7047_v16 = vld [vmem:[#allocation8 + $0x1c4] sm:$0xf0]  ;;  %v6097_v46 = vld [vmem:[#allocation8 + $0x1e0] sm:$0xf] }
 0x355   : > { %2226 = vrot.lane.b32.xlu0 %v2009_v18, %s7417_s26 }
 0x356   : > { %1881 = vmatmul.bf16.gmra.mxu1 %v6066_v56  ;;  %v7048_v56 = vld [vmem:[#allocation8 + $0x1d4] sm:$0xf] }
 0x357   : > { %2050 = vmatmul.bf16.gmra.mxu2 %v6038_v19  ;;  %v2149_v23 = vpop.permute.xlu0 %2148 }
 0x358   : > { %2168 = vst.msk [vmem:[#allocation2 + $0x28] sm:$0xff] %vm2162_vm4, %v2149_v23  ;;  %v7044_v23 = vld [vmem:[#allocation8 + $0x1b4] sm:$0xf] }
 0x35a   : > { %v2011_v24 = vpop.f32.mrf.mxu2 }
 0x35b   : > { %v2012_v26 = vadd.f32 %v2011_v24, %v1822_v58  ;;  %v1844_v58 = vpop.f32.mrf.mxu1  ;;  %v6075_v24 = vld [vmem:[#allocation8 + $0x1b8] sm:$0xf0] }
 0x35d   : > { %2228 = vrot.lane.b32.xlu0 %v2012_v26, %s7417_s26 }
 0x35f   : > { %v2151_v27 = vpop.permute.xlu0 %2150 }
 0x360   : > { %2169 = vst.msk [vmem:[#allocation2 + $0x30] sm:$0xff] %vm2162_vm4, %v2151_v27  ;;  %v6078_v27 = vor.u32 %v7044_v23, %v6075_v24 }
 0x362   : > { %v2013_v30 = vpop.f32.mrf.mxu2 }
 0x363   : > { %v2014_v32 = vadd.f32 %v2013_v30, %v1824_v2  ;;  %v1847_v1 = vpop.f32.mrf.mxu1  ;;  %v7049_v30 = vld [vmem:[#allocation8 + $0x1d4] sm:$0xf0] }
 0x365   : > { %2230 = vrot.lane.b32.xlu1 %v2014_v32, %s7417_s26 }
 0x366   : > { %1886 = vmatmul.bf16.gmra.mxu1 %v6074_v53  ;;  %v6099_v53 = vld [vmem:[#allocation8 + $0x1e8] sm:$0xf0] }
 0x367   : > { %2055 = vmatmul.bf16.gmra.mxu2 %v6046_v33  ;;  %v2153_v38 = vpop.permute.xlu1 %2152 }
 0x368   : > { %2170 = vst.msk [vmem:[#allocation2 + $0x38] sm:$0xff] %vm2162_vm4, %v2153_v38  ;;  %v6083_v38 = vld [vmem:[#allocation8 + $0x1c8] sm:$0xf0]  ;;  %vm3383_vm4 = vcmask 786048  }
 0x36a   : > { %v2016_v39 = vpop.f32.mrf.mxu2 }
 0x36b   : > { %v7785_v42 = vadd.f32 %v2016_v39, %v1827_v43  ;;  %v1849_v6 = vpop.f32.mrf.mxu1 }
 0x36f   : > { %v2180_v44 = vpop.permute.xlu1 %2179 }
 0x370   : > { %2204 = vst.msk [vmem:[#allocation2] sm:$0xff] %vm2203_vm5, %v2180_v44  ;;  %v6086_v44 = vor.u32 %v7046_v37, %v6083_v38  ;;  %v6129_v37 = vld [vmem:[#allocation8 + $0x220] sm:$0xf]  ;;  %v7059_v38 = vld [vmem:[#allocation8 + $0x224] sm:$0xf0] }
 0x372   : > { %v2018_v47 = vpop.f32.mrf.mxu2 }
 0x373   : > { %v7788_v49 = vadd.f32 %v2018_v47, %v1829_v12  ;;  %v1852_v14 = vpop.f32.mrf.mxu1  ;;  %v7051_v47 = vld [vmem:[#allocation8 + $0x1e4] sm:$0xf0] }
 0x377   : > { %2060 = vmatmul.bf16.gmra.mxu2 %v6054_v51  ;;  %v2182_v57 = vpop.permute.xlu1 %2181 }
 0x378   : > { %2205 = vst.msk [vmem:[#allocation2 + $0x8] sm:$0xff] %vm2203_vm5, %v2182_v57  ;;  %v6091_v57 = vld [vmem:[#allocation8 + $0x1d8] sm:$0xf0] }
 0x37a   : > { %v2021_v50 = vpop.f32.mrf.mxu2 }
 0x37b   : > { %v2022_v35 = vadd.f32 %v2021_v50, %v1832_v17  ;;  %v6082_v17 = vor.u32 %v7047_v16, %v6081_v15  ;;  %v1854_v21 = vpop.f32.mrf.mxu1  ;;  %v7052_v15 = vld [vmem:[#allocation8 + $0x1f4] sm:$0xf]  ;;  %v6107_v16 = vld [vmem:[#allocation8 + $0x1f8] sm:$0xf0] }
 0x37d   : > { %2261 = vrot.lane.b32.xlu0 %v2022_v35, %s7418_s28  ;;  %1891 = vmatmul.bf16.gmra.mxu1 %v6082_v17  ;;  %v6094_v35 = vor.u32 %v7048_v56, %v6091_v57 }
 0x37f   : > { %v2184_v40 = vpop.permute.xlu0 %2183  ;;  %v2190_v60 = vpop.permute.xlu2 %2189 }
 0x380   : > { %2206 = vst.msk [vmem:[#allocation2 + $0x10] sm:$0xff] %vm2203_vm5, %v2184_v40 }
 0x381   : > { %2209 = vst.msk [vmem:[#allocation2 + $0x28] sm:$0xff] %vm2203_vm5, %v2190_v60  ;;  %v6105_v60 = vld [vmem:[#allocation8 + $0x1f0] sm:$0xf] }
 0x382   : > { %v2023_v0 = vpop.f32.mrf.mxu2  ;;  %v6106_v62 = vor.u32 %v7053_v61, %v6105_v60 }
 0x383   : > { %v2024_v2 = vadd.f32 %v2023_v0, %v1834_v25  ;;  %v1857_v28 = vpop.f32.mrf.mxu1 }
 0x385   : > { %2263 = vrot.lane.b32.xlu1 %v2024_v2, %s7418_s28 }
 0x387   : > { %2065 = vmatmul.bf16.gmra.mxu2 %v6062_v3  ;;  %v2186_v5 = vpop.permute.xlu1 %2185 }
 0x388   : > { %2207 = vst.msk [vmem:[#allocation2 + $0x18] sm:$0xff] %vm2203_vm5, %v2186_v5 }
 0x38a   : > { %v2026_v43 = vpop.f32.mrf.mxu2 }
 0x38b   : > { %v2027_v7 = vadd.f32 %v2026_v43, %v1837_v31  ;;  %v6090_v31 = vor.u32 %v7049_v30, %v6089_v29  ;;  %v1859_v36 = vpop.f32.mrf.mxu1  ;;  %v7054_v29 = vld [vmem:[#allocation8 + $0x204] sm:$0xf]  ;;  %v6115_v30 = vld [vmem:[#allocation8 + $0x208] sm:$0xf0] }
 0x38d   : > { %2265 = vrot.lane.b32.xlu1 %v2027_v7, %s7418_s28  ;;  %1896 = vmatmul.bf16.gmra.mxu1 %v6090_v31 }
 0x38f   : > { %v2188_v8 = vpop.permute.xlu1 %2187 }
 0x390   : > { %2208 = vst.msk [vmem:[#allocation2 + $0x20] sm:$0xff] %vm2203_vm5, %v2188_v8  ;;  %v6113_v8 = vld [vmem:[#allocation8 + $0x200] sm:$0xf] }
 0x391   : > { %v6114_v10 = vor.u32 %v7055_v9, %v6113_v8  ;;  %v7060_v8 = vld [vmem:[#allocation8 + $0x234] sm:$0xf]  ;;  %v6139_v9 = vld [vmem:[#allocation8 + $0x238] sm:$0xf0] }
 0x392   : > { %v2028_v11 = vpop.f32.mrf.mxu2 }
 0x393   : > { %v2029_v12 = vadd.f32 %v2028_v11, %v1839_v41  ;;  %v1862_v45 = vpop.f32.mrf.mxu1 }
 0x395   : > { %2267 = vrot.lane.b32.xlu2 %v2029_v12, %s7418_s28 }
 0x397   : > { %2070 = vmatmul.bf16.gmra.mxu2 %v6070_v13  ;;  %v2221_v18 = vpop.permute.xlu2 %2220 }
 0x398   : > { %2245 = vst.msk [vmem:[#allocation2] sm:$0xff] %vm2244_vm6, %v2221_v18 }
 0x39a   : > { %v2031_v19 = vpop.f32.mrf.mxu2 }
 0x39b   : > { %v2032_v20 = vadd.f32 %v2031_v19, %v1842_v48  ;;  %v6098_v48 = vor.u32 %v7051_v47, %v6097_v46  ;;  %v1864_v55 = vpop.f32.mrf.mxu1  ;;  %v6110_v19 = vor.u32 %v7052_v15, %v6107_v16 }
 0x39d   : > { %2269 = vrot.lane.b32.xlu2 %v2032_v20, %s7418_s28  ;;  %1901 = vmatmul.bf16.gmra.mxu1 %v6098_v48 }
 0x39f   : > { %v2223_v22 = vpop.permute.xlu2 %2222 }
 0x3a0   : > { %2246 = vst.msk [vmem:[#allocation2 + $0x8] sm:$0xff] %vm2244_vm6, %v2223_v22  ;;  %v7057_v22 = vld [vmem:[#allocation8 + $0x214] sm:$0xf0] }
 0x3a2   : > { %v2033_v25 = vpop.f32.mrf.mxu2 }
 0x3a3   : > { %v2034_v26 = vadd.f32 %v2033_v25, %v1844_v58  ;;  %v1867_v40 = vpop.f32.mrf.mxu1 }
 0x3a5   : > { %2271 = vrot.lane.b32.xlu0 %v2034_v26, %s7418_s28 }
 0x3a7   : > { %2075 = vmatmul.bf16.gmra.mxu2 %v6078_v27  ;;  %v2225_v32 = vpop.permute.xlu2 %2224 }
 0x3a8   : > { %2247 = vst.msk [vmem:[#allocation2 + $0x10] sm:$0xff] %vm2244_vm6, %v2225_v32 }
 0x3aa   : > { %v2036_v33 = vpop.f32.mrf.mxu2 }
 0x3ab   : > { %v7804_v34 = vadd.f32 %v2036_v33, %v1847_v1  ;;  %v1869_v3 = vpop.f32.mrf.mxu1  ;;  %v6118_v33 = vor.u32 %v7054_v29, %v6115_v30 }
 0x3ad   : > { %1906 = vmatmul.bf16.gmra.mxu1 %v6106_v62 }
 0x3b2   : > { %v2038_v39 = vpop.f32.mrf.mxu2 }
 0x3b3   : > { %v7806_v41 = vadd.f32 %v2038_v39, %v1849_v6  ;;  %v6102_v6 = vor.u32 %v7050_v63, %v6099_v53  ;;  %v1872_v7 = vpop.f32.mrf.mxu1  ;;  %v6130_v39 = vor.u32 %v7059_v38, %v6129_v37 }
 0x3b7   : > { %2080 = vmatmul.bf16.gmra.mxu2 %v6086_v44 }
 0x3ba   : > { %v2041_v51 = vpop.f32.mrf.mxu2 }
 0x3bb   : > { %v2042_v52 = vadd.f32 %v2041_v51, %v1852_v14  ;;  %v1874_v14 = vpop.f32.mrf.mxu1 }
 0x3bd   : > { %2302 = vrot.lane.b32.xlu2 %v2042_v52, %s7419_s1  ;;  %1911 = vmatmul.bf16.gmra.mxu1 %v6114_v10  ;;  %v7056_v52 = vld [vmem:[#allocation8 + $0x214] sm:$0xf] }
 0x3c2   : > { %v2043_v50 = vpop.f32.mrf.mxu2 }
 0x3c3   : > { %v2044_v58 = vadd.f32 %v2043_v50, %v1854_v21  ;;  %v1877_v20 = vpop.f32.mrf.mxu1  ;;  %v6121_v21 = vld [vmem:[#allocation8 + $0x210] sm:$0xf] }
 0x3c4   : > { %v6122_v23 = vor.u32 %v7057_v22, %v6121_v21 }
 0x3c5   : > { %2304 = vrot.lane.b32.xlu0 %v2044_v58, %s7419_s1  ;;  %v6137_v58 = vld [vmem:[#allocation8 + $0x230] sm:$0xf] }
 0x3c7   : > { %2085 = vmatmul.bf16.gmra.mxu2 %v6094_v35  ;;  %v2227_v0 = vpop.permute.xlu0 %2226  ;;  %v7061_v35 = vld [vmem:[#allocation8 + $0x234] sm:$0xf0] }
 0x3c8   : > { %2248 = vst.msk [vmem:[#allocation2 + $0x18] sm:$0xff] %vm2244_vm6, %v2227_v0  ;;  %v7058_v0 = vld [vmem:[#allocation8 + $0x224] sm:$0xf] }
 0x3ca   : > { %v2046_v1 = vpop.f32.mrf.mxu2 }
 0x3cb   : > { %v2047_v2 = vadd.f32 %v2046_v1, %v1857_v28  ;;  %v1879_v26 = vpop.f32.mrf.mxu1  ;;  %v6131_v1 = vld [vmem:[#allocation8 + $0x228] sm:$0xf0] }
 0x3cc   : > { %v6134_v63 = vor.u32 %v7058_v0, %v6131_v1 }
 0x3cd   : > { %2306 = vrot.lane.b32.xlu0 %v2047_v2, %s7419_s1  ;;  %1916 = vmatmul.bf16.gmra.mxu1 %v6122_v23 }
 0x3cf   : > { %v2229_v4 = vpop.permute.xlu0 %2228 }
 0x3d0   : > { %2249 = vst.msk [vmem:[#allocation2 + $0x20] sm:$0xff] %vm2244_vm6, %v2229_v4 }
 0x3d2   : > { %v2048_v5 = vpop.f32.mrf.mxu2 }
 0x3d3   : > { %v2049_v43 = vadd.f32 %v2048_v5, %v1859_v36  ;;  %v1882_v36 = vpop.f32.mrf.mxu1 }
 0x3d5   : > { %2308 = vrot.lane.b32.xlu1 %v2049_v43, %s7419_s1 }
 0x3d7   : > { %2090 = vmatmul.bf16.gmra.mxu2 %v6102_v6  ;;  %v2231_v11 = vpop.permute.xlu1 %2230 }
 0x3d8   : > { %2250 = vst.msk [vmem:[#allocation2 + $0x28] sm:$0xff] %vm2244_vm6, %v2231_v11 }
 0x3da   : > { %v2051_v12 = vpop.f32.mrf.mxu2 }
 0x3db   : > { %v2052_v13 = vadd.f32 %v2051_v12, %v1862_v45  ;;  %v1884_v48 = vpop.f32.mrf.mxu1  ;;  %v6142_v12 = vor.u32 %v7060_v8, %v6139_v9 }
 0x3dd   : > { %2310 = vrot.lane.b32.xlu1 %v2052_v13, %s7419_s1  ;;  %1921 = vmatmul.bf16.gmra.mxu1 %v6130_v39 }
 0x3e2   : > { %v2053_v17 = vpop.f32.mrf.mxu2 }
 0x3e3   : > { %v2054_v18 = vadd.f32 %v2053_v17, %v1864_v55  ;;  %v6123_v55 = vld [vmem:[#allocation8 + $0x218] sm:$0xf0]  ;;  %v1887_v60 = vpop.f32.mrf.mxu1 }
 0x3e4   : > { %v6126_v50 = vor.u32 %v7056_v52, %v6123_v55 }
 0x3e5   : > { %2312 = vrot.lane.b32.xlu2 %v2054_v18, %s7419_s1 }
 0x3e7   : > { %2095 = vmatmul.bf16.gmra.mxu2 %v6110_v19 }
 0x3ea   : > { %v2056_v24 = vpop.f32.mrf.mxu2 }
 0x3eb   : > { %v7817_v25 = vadd.f32 %v2056_v24, %v1867_v40  ;;  %v6138_v40 = vor.u32 %v7061_v35, %v6137_v58 }
 0x3ed   : > { %1926 = vmatmul.bf16.gmra.mxu1 %v6138_v40 }
 0x3ef   : > { %v2262_v27 = vpop.permute.xlu0 %2261  ;;  %v2268_v28 = vpop.permute.xlu2 %2267 }
 0x3f0   : > { %2286 = vst.msk [vmem:[#allocation2] sm:$0xff] %vm2285_vm7, %v2262_v27 }
 0x3f1   : > { %2289 = vst.msk [vmem:[#allocation2 + $0x18] sm:$0xff] %vm2285_vm7, %v2268_v28 }
 0x3f2   : > { %v2058_v31 = vpop.f32.mrf.mxu2 }
 0x3f3   : > { %v7821_v32 = vadd.f32 %v2058_v31, %v1869_v3  ;;  %v7829_v3 = vpop.f32.mrf.mxu1 }
 0x3f7   : > { %2100 = vmatmul.bf16.gmra.mxu2 %v6118_v33  ;;  %v2264_v44 = vpop.permute.xlu1 %2263  ;;  %v2270_v45 = vpop.permute.xlu2 %2269 }
 0x3f8   : > { %2287 = vst.msk [vmem:[#allocation2 + $0x8] sm:$0xff] %vm2285_vm7, %v2264_v44 }
 0x3f9   : > { %2290 = vst.msk [vmem:[#allocation2 + $0x20] sm:$0xff] %vm2285_vm7, %v2270_v45 }
 0x3fa   : > { %v2061_v46 = vpop.f32.mrf.mxu2 }
 0x3fb   : > { %v2062_v47 = vadd.f32 %v2061_v46, %v1872_v7  ;;  %v1892_v7 = vpop.f32.mrf.mxu1 }
 0x3fd   : > { %2343 = vrot.lane.b32.xlu1 %v2062_v47, %s7420_s2 }
 0x3ff   : > { %v2266_v51 = vpop.permute.xlu1 %2265 }
 0x400   : > { %2288 = vst.msk [vmem:[#allocation2 + $0x10] sm:$0xff] %vm2285_vm7, %v2266_v51 }
 0x402   : > { %v2063_v56 = vpop.f32.mrf.mxu2 }
 0x403   : > { %v2064_v57 = vadd.f32 %v2063_v56, %v1874_v14  ;;  %v1894_v13 = vpop.f32.mrf.mxu1 }
 0x405   : > { %2345 = vrot.lane.b32.xlu2 %v2064_v57, %s7420_s2 }
 0x407   : > { %2105 = vmatmul.bf16.gmra.mxu2 %v6126_v50 }
 0x40a   : > { %v2066_v61 = vpop.f32.mrf.mxu2 }
 0x40b   : > { %v2067_v62 = vadd.f32 %v2066_v61, %v1877_v20  ;;  %v1897_v16 = vpop.f32.mrf.mxu1 }
 0x40d   : > { %2347 = vrot.lane.b32.xlu2 %v2067_v62, %s7420_s2 }
 0x412   : > { %v2068_v2 = vpop.f32.mrf.mxu2 }
 0x413   : > { %v2069_v4 = vadd.f32 %v2068_v2, %v1879_v26  ;;  %v1899_v20 = vpop.f32.mrf.mxu1 }
 0x415   : > { %2349 = vrot.lane.b32.xlu0 %v2069_v4, %s7420_s2 }
 0x417   : > { %2110 = vmatmul.bf16.gmra.mxu2 %v6134_v63  ;;  %v2272_v53 = vpop.permute.xlu0 %2271  ;;  %v2303_v5 = vpop.permute.xlu2 %2302 }
 0x418   : > { %2291 = vst.msk [vmem:[#allocation2 + $0x28] sm:$0xff] %vm2285_vm7, %v2272_v53 }
 0x419   : > { %2327 = vst.msk [vmem:[#allocation2] sm:$0xff] %vm2326_vm8, %v2303_v5 }
 0x41a   : > { %v2071_v43 = vpop.f32.mrf.mxu2 }
 0x41b   : > { %v2072_v6 = vadd.f32 %v2071_v43, %v1882_v36  ;;  %v1902_v27 = vpop.f32.mrf.mxu1 }
 0x41d   : > { %2351 = vrot.lane.b32.xlu0 %v2072_v6, %s7420_s2 }
 0x422   : > { %v2073_v10 = vpop.f32.mrf.mxu2 }
 0x423   : > { %v2074_v11 = vadd.f32 %v2073_v10, %v1884_v48  ;;  %v1904_v31 = vpop.f32.mrf.mxu1 }
 0x425   : > { %2353 = vrot.lane.b32.xlu1 %v2074_v11, %s7420_s2 }
 0x427   : > { %2115 = vmatmul.bf16.gmra.mxu2 %v6142_v12 }
 0x42a   : > { %v2076_v14 = vpop.f32.mrf.mxu2 }
 0x42b   : > { %v7836_v15 = vadd.f32 %v2076_v14, %v1887_v60  ;;  %v1907_v38 = vpop.f32.mrf.mxu1 }
 0x432   : > { %v7838_v17 = vpop.f32.mrf.mxu2 }
 0x433   : > { %v7853_v47 = vpop.f32.mrf.mxu1  ;;  %v2079_v8 = vadd.f32 %v7838_v17, %v7829_v3 }
 0x437   : > { %v2305_v18 = vpop.permute.xlu0 %2304 }
 0x438   : > { %2328 = vst.msk [vmem:[#allocation2 + $0x8] sm:$0xff] %vm2326_vm8, %v2305_v18 }
 0x43a   : > { %v2081_v19 = vpop.f32.mrf.mxu2 }
 0x43b   : > { %v2082_v21 = vadd.f32 %v2081_v19, %v1892_v7  ;;  %v1912_v52 = vpop.f32.mrf.mxu1 }
 0x43d   : > { %2384 = vrot.lane.b32.xlu0 %v2082_v21, %s7421_s7 }
 0x43f   : > { %v2307_v22 = vpop.permute.xlu0 %2306  ;;  %v2313_v23 = vpop.permute.xlu2 %2312 }
 0x440   : > { %2329 = vst.msk [vmem:[#allocation2 + $0x10] sm:$0xff] %vm2326_vm8, %v2307_v22 }
 0x441   : > { %2332 = vst.msk [vmem:[#allocation2 + $0x28] sm:$0xff] %vm2326_vm8, %v2313_v23 }
 0x442   : > { %v2083_v24 = vpop.f32.mrf.mxu2 }
 0x443   : > { %v2084_v26 = vadd.f32 %v2083_v24, %v1894_v13  ;;  %v1914_v57 = vpop.f32.mrf.mxu1 }
 0x445   : > { %2386 = vrot.lane.b32.xlu1 %v2084_v26, %s7421_s7 }
 0x447   : > { %v2309_v28 = vpop.permute.xlu1 %2308 }
 0x448   : > { %2330 = vst.msk [vmem:[#allocation2 + $0x18] sm:$0xff] %vm2326_vm8, %v2309_v28 }
 0x44a   : > { %v2086_v29 = vpop.f32.mrf.mxu2 }
 0x44b   : > { %v2087_v30 = vadd.f32 %v2086_v29, %v1897_v16  ;;  %v1917_v35 = vpop.f32.mrf.mxu1 }
 0x44d   : > { %2388 = vrot.lane.b32.xlu1 %v2087_v30, %s7421_s7 }
 0x44f   : > { %v2311_v33 = vpop.permute.xlu1 %2310 }
 0x450   : > { %2331 = vst.msk [vmem:[#allocation2 + $0x20] sm:$0xff] %vm2326_vm8, %v2311_v33 }
 0x452   : > { %v2088_v36 = vpop.f32.mrf.mxu2 }
 0x453   : > { %v2089_v37 = vadd.f32 %v2088_v36, %v1899_v20  ;;  %v1919_v62 = vpop.f32.mrf.mxu1 }
 0x455   : > { %2232 = vrot.lane.b32.xlu1 %v7785_v42, %s7417_s26  ;;  %2390 = vrot.lane.b32.xlu2 %v2089_v37, %s7421_s7 }
 0x45a   : > { %v2091_v39 = vpop.f32.mrf.mxu2 }
 0x45b   : > { %v2092_v44 = vadd.f32 %v2091_v39, %v1902_v27 }
 0x45d   : > { %2392 = vrot.lane.b32.xlu2 %v2092_v44, %s7421_s7 }
 0x45f   : > { %v2346_v45 = vpop.permute.xlu2 %2345 }
 0x460   : > { %2369 = vst.msk [vmem:[#allocation2 + $0x8] sm:$0xff] %vm2367_vm9, %v2346_v45 }
 0x462   : > { %v2093_v46 = vpop.f32.mrf.mxu2 }
 0x463   : > { %v2094_v48 = vadd.f32 %v2093_v46, %v1904_v31 }
 0x465   : > { %2394 = vrot.lane.b32.xlu0 %v2094_v48, %s7421_s7 }
 0x467   : > { %v2348_v51 = vpop.permute.xlu2 %2347 }
 0x468   : > { %2370 = vst.msk [vmem:[#allocation2 + $0x10] sm:$0xff] %vm2367_vm9, %v2348_v51 }
 0x46a   : > { %v2096_v42 = vpop.f32.mrf.mxu2 }
 0x46f   : > { %v2344_v55 = vpop.permute.xlu1 %2343 }
 0x470   : > { %2368 = vst.msk [vmem:[#allocation2] sm:$0xff] %vm2367_vm9, %v2344_v55 }
 0x472   : > { %v2098_v56 = vpop.f32.mrf.mxu2 }
 0x473   : > { %v2099_v3 = vadd.f32 %v2098_v56, %v7853_v47 }
 0x47a   : > { %v2101_v50 = vpop.f32.mrf.mxu2 }
 0x47b   : > { %v2102_v58 = vadd.f32 %v2101_v50, %v1912_v52 }
 0x47d   : > { %2425 = vrot.lane.b32.xlu2 %v2102_v58, %s7422_s10 }
 0x482   : > { %v2103_v40 = vpop.f32.mrf.mxu2 }
 0x483   : > { %v2104_v60 = vadd.f32 %v2103_v40, %v1914_v57 }
 0x485   : > { %2191 = vrot.lane.b32.xlu2 %v7767_v54, %s7416_s23  ;;  %2427 = vrot.lane.b32.xlu0 %v2104_v60, %s7422_s10  ;;  %v1922_v54 = vpop.f32.mrf.mxu1 }
 0x487   : > { %v2350_v61 = vpop.permute.xlu0 %2349 }
 0x488   : > { %2371 = vst.msk [vmem:[#allocation2 + $0x18] sm:$0xff] %vm2367_vm9, %v2350_v61  ;;  %v2478_v61 = vld [vmem:[%s7480_s14 + $0x20] sm:$0xf] }
 0x48a   : > { %v2106_v0 = vpop.f32.mrf.mxu2 }
 0x48b   : > { %v2107_v4 = vadd.f32 %v2106_v0, %v1917_v35  ;;  %v2479_v35 = vld [vmem:[%s7500_s6] sm:$0xf] }
 0x48c   : > { %v2509_v40 = vsel %vm1167_vm0, %v2479_v35, 0 }
 0x48d   : > { %2234 = vrot.lane.b32.xlu2 %v7788_v49, %s7417_s26  ;;  %2193 = vrot.lane.b32.xlu0 %v7771_v59, %s7416_s23  ;;  %v1924_v59 = vpop.f32.mrf.mxu1  ;;  %s8543_s26 = sld [smem:[#allocation11_spill]] }
 0x48e   : > { %2518 = vmatpush.bf16.msra.mxu3 %v2509_v40  ;;  %v7076_v40 = vld [vmem:[%s7455_s21 + $0x50] sm:$0xff] }
 0x48f   : > { %v2352_v1 = vpop.permute.xlu0 %2351 }
 0x490   : > { %2372 = vst.msk [vmem:[#allocation2 + $0x20] sm:$0xff] %vm2367_vm9, %v2352_v1 }
 0x492   : > { %v2108_v2 = vpop.f32.mrf.mxu2 }
 0x493   : > { %v2109_v63 = vadd.f32 %v2108_v2, %v1919_v62  ;;  %v2561_v62 = vunpack.c.l.b16 %v2478_v61 }
 0x495   : > { %2314 = vrot.lane.b32.xlu2 %v7817_v25, %s7419_s1  ;;  %2429 = vrot.lane.b32.xlu0 %v2107_v4, %s7422_s10  ;;  %v1927_v25 = vpop.f32.mrf.mxu1  ;;  %v2566_v0 = vpack.c.b16 %v2561_v62, %v2561_v62  ;;  %v7065_v4 = vld [vmem:[%s7480_s14 + $0x18] sm:$0xff] }
 0x496   : > { %2431 = vrot.lane.b32.xlu1 %v2109_v63, %s7422_s10  ;;  %v7064_v63 = vld [vmem:[%s7480_s14 + $0x10] sm:$0xff]  ;;  %v7077_v62 = vld [vmem:[%s7455_s21 + $0x58] sm:$0xff] }
 0x497   : > { %v2354_v53 = vpop.permute.xlu1 %2353  ;;  %v2585_v1 = vsel %vm1167_vm0, %v2566_v0, 0 }
 0x498   : > { %2373 = vst.msk [vmem:[#allocation2 + $0x28] sm:$0xff] %vm2367_vm9, %v2354_v53  ;;  %2590 = vmatpush.bf16.msrb.mxu3 %v2585_v1  ;;  %v7062_v53 = vld [vmem:[%s7480_s14] sm:$0xff] }
 0x49a   : > { %v2111_v49 = vpop.f32.mrf.mxu2 }
 0x49b   : > { %v2112_v6 = vadd.f32 %v2111_v49, %v1922_v54  ;;  %v7063_v54 = vld [vmem:[%s7480_s14 + $0x8] sm:$0xff] }
 0x49c   : > { %2591 = vmatpush.bf16.msrb.mxu3 %v7065_v4 }
 0x49d   : > { %2273 = vrot.lane.b32.xlu0 %v7804_v34, %s7418_s28  ;;  %v2097_v34 = vadd.f32 %v2096_v42, %v1907_v38  ;;  %v1929_v9 = vpop.f32.mrf.mxu1 }
 0x49e   : > { %2275 = vrot.lane.b32.xlu1 %v7806_v41, %s7418_s28 }
 0x4a0   : > { %2592 = vmatpush.bf16.msrb.mxu3 %v7064_v63 }
 0x4a2   : > { %v2113_v5 = vpop.f32.mrf.mxu2 }
 0x4a3   : > { %v2114_v43 = vadd.f32 %v2113_v5, %v1924_v59 }
 0x4a4   : > { %2593 = vmatpush.bf16.msrb.mxu3 %v7063_v54  ;;  %v7079_v54 = vld [vmem:[%s7455_s21 + $0x68] sm:$0xff] }
 0x4a5   : > { %2316 = vrot.lane.b32.xlu0 %v7821_v32, %s7419_s1  ;;  %2435 = vrot.lane.b32.xlu2 %v2114_v43, %s7422_s10  ;;  %s8544_s1 = sld [smem:[#allocation16_spill]] }
 0x4a6   : > { %2433 = vrot.lane.b32.xlu1 %v2112_v6, %s7422_s10 }
 0x4a8   : > { %2594 = vmatpush.bf16.msrb.mxu3 %v7062_v53 }
 0x4aa   : > { %v2116_v7 = vpop.f32.mrf.mxu2 }
 0x4ab   : > { %v2117_v11 = vadd.f32 %v2116_v7, %v1927_v25 }
 0x4ad   : > { %2396 = vrot.lane.b32.xlu0 %v2097_v34, %s7421_s7  ;;  %2357 = vrot.lane.b32.xlu2 %v2079_v8, %s7420_s2 }
 0x4ae   : > { %2355 = vrot.lane.b32.xlu1 %v7836_v15, %s7420_s2 }
 0x4af   : > { %v2385_v41 = vpop.permute.xlu0 %2384  ;;  %v2391_v32 = vpop.permute.xlu2 %2390 }
 0x4b0   : > { %2409 = vst.msk [vmem:[#allocation2] sm:$0xff] %vm2408_vm10, %v2385_v41 }
 0x4b1   : > { %2412 = vst.msk [vmem:[#allocation2 + $0x18] sm:$0xff] %vm2408_vm10, %v2391_v32 }
 0x4b2   : > { %v2118_v10 = vpop.f32.mrf.mxu2 }
 0x4b3   : > { %v2119_v12 = vadd.f32 %v2118_v10, %v1929_v9 }
 0x4b5   : > { %2437 = vrot.lane.b32.xlu2 %v2117_v11, %s7422_s10  ;;  %2439 = vrot.lane.b32.xlu0 %v2119_v12, %s7422_s10 }
 0x4b6   : > { %2398 = vrot.lane.b32.xlu1 %v2099_v3, %s7421_s7  ;;  %s8546_s7 = sld [smem:[#allocation20_spill]] }
 0x4b7   : > { %v2387_v13 = vpop.permute.xlu1 %2386  ;;  %v2393_v14 = vpop.permute.xlu2 %2392 }
 0x4b8   : > { %2410 = vst.msk [vmem:[#allocation2 + $0x8] sm:$0xff] %vm2408_vm10, %v2387_v13 }
 0x4b9   : > { %2413 = vst.msk [vmem:[#allocation2 + $0x20] sm:$0xff] %vm2408_vm10, %v2393_v14  ;;  %v7323_v14 = vld [vmem:[%s7485_s19] ss:$0 sm:$0xff] }
 0x4bf   : > { %v2389_v15 = vpop.permute.xlu1 %2388 }
 0x4c0   : > { %2411 = vst.msk [vmem:[#allocation2 + $0x10] sm:$0xff] %vm2408_vm10, %v2389_v15 }
 0x4c7   : > { %v2233_v19 = vpop.permute.xlu1 %2232 }
 0x4d7   : > { %v2395_v16 = vpop.permute.xlu0 %2394  ;;  %v2426_v17 = vpop.permute.xlu2 %2425 }
 0x4d8   : > { %2414 = vst.msk [vmem:[#allocation2 + $0x28] sm:$0xff] %vm2408_vm10, %v2395_v16 }
 0x4d9   : > { %2450 = vst.msk [vmem:[#allocation2] sm:$0xff] %vm2449_vm11, %v2426_v17 }
 0x4df   : > { %v2192_v18 = vpop.permute.xlu2 %2191 }
 0x4e0   : > { %2210 = vst.msk [vmem:[#allocation2 + $0x30] sm:$0xff] %vm2203_vm5, %v2192_v18  ;;  %v2458_v26 = vld [vmem:[#allocation2] sm:$0xff] }
 0x4e1   : > { %2251 = vst.msk [vmem:[#allocation2 + $0x30] sm:$0xff] %vm2244_vm6, %v2233_v19 }
 0x4e7   : > { %v2235_v20 = vpop.permute.xlu2 %2234 }
 0x4ef   : > { %v2315_v21 = vpop.permute.xlu2 %2314 }
 0x4f7   : > { %v2428_v22 = vpop.permute.xlu0 %2427 }
 0x4f8   : > { %2451 = vst.msk [vmem:[#allocation2 + $0x8] sm:$0xff] %vm2449_vm11, %v2428_v22 }
 0x4ff   : > { %v2194_v23 = vpop.permute.xlu0 %2193  ;;  %v2436_v24 = vpop.permute.xlu2 %2435  ;;  %v2459_v27 = vld [vmem:[#allocation2 + $0x8] sm:$0xff] }
 0x500   : > { %2211 = vst.msk [vmem:[#allocation2 + $0x38] sm:$0xff] %vm2203_vm5, %v2194_v23  ;;  %v7902_v28 = vpack.c.bf16 %v2459_v27, %v2458_v26  ;;  %vm3424_vm5 = vcmask 917248  }
 0x501   : > { %2252 = vst.msk [vmem:[#allocation2 + $0x38] sm:$0xff] %vm2244_vm6, %v2235_v20  ;;  %vm3465_vm6 = vcmask 1048448  }
 0x502   : > { %2455 = vst.msk [vmem:[#allocation2 + $0x28] sm:$0xff] %vm2449_vm11, %v2436_v24  ;;  %2488 = vrot.lane.b32.xlu1 %v7902_v28, %s7423_s11 }
 0x507   : > { %v2430_v29 = vpop.permute.xlu0 %2429  ;;  %v2358_v44 = vpop.permute.xlu2 %2357 }
 0x508   : > { %2452 = vst.msk [vmem:[#allocation2 + $0x10] sm:$0xff] %vm2449_vm11, %v2430_v29  ;;  %v2432_v30 = vpop.permute.xlu1 %2431 }
 0x509   : > { %2453 = vst.msk [vmem:[#allocation2 + $0x18] sm:$0xff] %vm2449_vm11, %v2432_v30  ;;  %v2463_v51 = vld [vmem:[#allocation2 + $0x28] sm:$0xff] }
 0x50f   : > { %v2274_v31 = vpop.permute.xlu0 %2273  ;;  %v2460_v33 = vld [vmem:[#allocation2 + $0x10] sm:$0xff]  ;;  %v2438_v42 = vpop.permute.xlu2 %2437 }
 0x510   : > { %2292 = vst.msk [vmem:[#allocation2 + $0x30] sm:$0xff] %vm2285_vm7, %v2274_v31  ;;  %v2276_v36 = vpop.permute.xlu1 %2275  ;;  %v2461_v37 = vld [vmem:[#allocation2 + $0x18] sm:$0xff] }
 0x511   : > { %2333 = vst.msk [vmem:[#allocation2 + $0x30] sm:$0xff] %vm2326_vm8, %v2315_v21  ;;  %v2467_v38 = vpack.c.bf16 %v2461_v37, %v2460_v33 }
 0x512   : > { %2293 = vst.msk [vmem:[#allocation2 + $0x38] sm:$0xff] %vm2285_vm7, %v2276_v36  ;;  %vm4182_vm7 = vcmask 261120  }
 0x513   : > { %2490 = vrot.lane.b32.xlu2 %v2467_v38, %s7423_s11 }
 0x517   : > { %v2317_v39 = vpop.permute.xlu0 %2316 }
 0x518   : > { %2334 = vst.msk [vmem:[#allocation2 + $0x38] sm:$0xff] %vm2326_vm8, %v2317_v39  ;;  %v2434_v45 = vpop.permute.xlu1 %2433  ;;  %vm4193_vm8 = vcmask 523520  }
 0x519   : > { %2375 = vst.msk [vmem:[#allocation2 + $0x38] sm:$0xff] %vm2367_vm9, %v2358_v44  ;;  %v7066_v44 = vld [vmem:[%s7455_s21] sm:$0xff] }
 0x51a   : > { %2454 = vst.msk [vmem:[#allocation2 + $0x20] sm:$0xff] %vm2449_vm11, %v2434_v45  ;;  %v7067_v45 = vld [vmem:[%s7455_s21 + $0x8] sm:$0xff] }
 0x51f   : > { %v2397_v46 = vpop.permute.xlu0 %2396 }
 0x520   : > { %v2356_v47 = vpop.permute.xlu1 %2355 }
 0x521   : > { %2374 = vst.msk [vmem:[#allocation2 + $0x30] sm:$0xff] %vm2367_vm9, %v2356_v47  ;;  %v2462_v48 = vld [vmem:[#allocation2 + $0x20] sm:$0xff]  ;;  %v7069_v47 = vld [vmem:[%s7455_s21 + $0x18] sm:$0xff]  ;;  %vm4204_vm9 = vcmask 785920  }
 0x522   : > { %2415 = vst.msk [vmem:[#allocation2 + $0x30] sm:$0xff] %vm2408_vm10, %v2397_v46  ;;  %v2468_v52 = vpack.c.bf16 %v2463_v51, %v2462_v48  ;;  %v7068_v46 = vld [vmem:[%s7455_s21 + $0x10] sm:$0xff]  ;;  %v7070_v48 = vld [vmem:[%s7455_s21 + $0x20] sm:$0xff]  ;;  %v7071_v51 = vld [vmem:[%s7455_s21 + $0x28] sm:$0xff] }
 0x523   : > { %2456 = vst.msk [vmem:[#allocation2 + $0x30] sm:$0xff] %vm2449_vm11, %v2438_v42  ;;  %v7072_v42 = vld [vmem:[%s7455_s21 + $0x30] sm:$0xff] }
 0x524   : > { %2492 = vrot.lane.b32.xlu0 %v2468_v52, %s7423_s11 }
 0x527   : > { %v2440_v55 = vpop.permute.xlu0 %2439 }
 0x528   : > { %v2399_v56 = vpop.permute.xlu1 %2398 }
 0x529   : > { %2416 = vst.msk [vmem:[#allocation2 + $0x38] sm:$0xff] %vm2408_vm10, %v2399_v56  ;;  %vm4215_vm10 = vcmask 1048320  }
 0x52a   : > { %2457 = vst.msk [vmem:[#allocation2 + $0x38] sm:$0xff] %vm2449_vm11, %v2440_v55  ;;  %v2464_v57 = vld [vmem:[#allocation2 + $0x30] sm:$0xff]  ;;  %v7074_v55 = vld [vmem:[%s7455_s21 + $0x40] sm:$0xff]  ;;  %vm4509_vm11 = vcmask 257024  }
 0x531   : > { %v2465_v50 = vld [vmem:[#allocation2 + $0x38] sm:$0xff] }
 0x532   : > { %v2469_v58 = vpack.c.bf16 %v2465_v50, %v2464_v57  ;;  %v7075_v50 = vld [vmem:[%s7455_s21 + $0x48] sm:$0xff] }
 0x534   : > { %2494 = vrot.lane.b32.xlu1 %v2469_v58, %s7423_s11 }
 0x56d   : > { %v2491_v2 = vpop.permute.xlu2 %2490 }
 0x574   : > { %v2489_v60 = vpop.permute.xlu1 %2488 }
 0x575   : > { %6143 = vmatmul.msk.bf16.vlgmr.msra.gmra.mxu3 %vm2121_vm3, %v2489_v60 }
 0x585   : > { %6144 = vmatmul.msk.bf16.gmra.mxu3 %vm2121_vm3, %v2491_v2  ;;  %v7078_v2 = vld [vmem:[%s7455_s21 + $0x60] sm:$0xff] }
 0x596   : > { %v2493_v49 = vpop.permute.xlu0 %2492 }
 0x597   : > { %6145 = vmatmul.msk.bf16.gmra.mxu3 %vm2121_vm3, %v2493_v49 }
 0x5a6   : > { %v2495_v59 = vpop.permute.xlu1 %2494 }
 0x5a7   : > { %6146 = vmatmul.msk.bf16.gmra.mxu3 %vm2121_vm3, %v2495_v59  ;;  %v7080_v59 = vld [vmem:[%s7455_s21 + $0x70] sm:$0xff]  ;;  %vm3342_vm3 = vcmask 654848  }
 0x5b7   : > { %6163 = vmatmul.msk.bf16.vlgmr.msrb.gmra.mxu3 %vm2571_vm12, %v7902_v28 }
 0x5c7   : > { %6164 = vmatmul.msk.bf16.gmra.mxu3 %vm2571_vm12, %v2467_v38 }
 0x5d7   : > { %6165 = vmatmul.msk.bf16.gmra.mxu3 %vm2571_vm12, %v2468_v52  ;;  %v7073_v52 = vld [vmem:[%s7455_s21 + $0x38] sm:$0xff] }
 0x5e7   : > { %6166 = vmatmul.msk.bf16.gmra.mxu3 %vm2571_vm12, %v2469_v58  ;;  %vm4516_vm12 = vcmask 519424  }
 0x5f8   : > { %v7937_v5 = vpop.f32.mrf.mxu3 }
 0x600   : > { %v7939_v43 = vpop.f32.mrf.mxu3 }
 0x608   : > { %v7941_v6 = vpop.f32.mrf.mxu3 }
 0x610   : > { %v7943_v25 = vpop.f32.mrf.mxu3 }
 0x61a   : > { %v7945_v7 = vpop.f32.mrf.mxu3 }
 0x622   : > { %v7947_v8 = vpop.f32.mrf.mxu3 }
 0x62a   : > { %v7949_v34 = vpop.f32.mrf.mxu3 }
 0x632   : > { %v7951_v41 = vpop.f32.mrf.mxu3 }
 0x63a   : > { %v2596_v32 = vpop.f32.mrf.mxu3 }
 0x63b   : > { %v2597_v31 = vadd.f32 %v7323_v14, %v2596_v32 }
 0x63d   : > { %v2616_v38 = vmax.f32 %v2597_v31, 0.0 }
 0x642   : > { %v2598_v9 = vpop.f32.mrf.mxu3 }
 0x643   : > { %v2599_v28 = vadd.f32 %v7323_v14, %v2598_v9 }
 0x645   : > { %v2617_v36 = vmax.f32 %v2599_v28, 0.0 }
 0x647   : > { %v2624_v39 = vpack.c.bf16 %v2617_v36, %v2616_v38 }
 0x64a   : > { %v2601_v10 = vpop.f32.mrf.mxu3 }
 0x64b   : > { %v2602_v26 = vadd.f32 %v7323_v14, %v2601_v10  ;;  %v7081_v10 = vld [vmem:[%s7455_s21 + $0x78] sm:$0xff] }
 0x64d   : > { %v2618_v33 = vmax.f32 %v2602_v26, 0.0 }
 0x652   : > { %v2603_v11 = vpop.f32.mrf.mxu3 }
 0x653   : > { %v2604_v22 = vadd.f32 %v7323_v14, %v2603_v11 }
 0x655   : > { %v2619_v29 = vmax.f32 %v2604_v22, 0.0  ;;  %v7085_v22 = vld [vmem:[%s7455_s21 + $0x98] sm:$0xff] }
 0x657   : > { %v2625_v37 = vpack.c.bf16 %v2619_v29, %v2618_v33  ;;  %v7087_v33 = vld [vmem:[%s7455_s21 + $0xa8] sm:$0xff] }
 0x65a   : > { %v2606_v12 = vpop.f32.mrf.mxu3 }
 0x65b   : > { %v2607_v19 = vadd.f32 %v7323_v14, %v2606_v12 }
 0x65d   : > { %v2620_v27 = vmax.f32 %v2607_v19, 0.0 }
 0x662   : > { %v2608_v3 = vpop.f32.mrf.mxu3 }
 0x663   : > { %v2609_v17 = vadd.f32 %v7323_v14, %v2608_v3  ;;  %v7082_v3 = vld [vmem:[%s7455_s21 + $0x80] sm:$0xff] }
 0x665   : > { %v2621_v23 = vmax.f32 %v2609_v17, 0.0 }
 0x667   : > { %v2626_v30 = vpack.c.bf16 %v2621_v23, %v2620_v27  ;;  %v7086_v27 = vld [vmem:[%s7455_s21 + $0xa0] sm:$0xff] }
 0x66a   : > { %v2611_v13 = vpop.f32.mrf.mxu3 }
 0x66b   : > { %v2612_v15 = vadd.f32 %v7323_v14, %v2611_v13 }
 0x66d   : > { %v2622_v20 = vmax.f32 %v2612_v15, 0.0  ;;  %v7083_v15 = vld [vmem:[%s7455_s21 + $0x88] sm:$0xff] }
 0x672   : > { %v2613_v16 = vpop.f32.mrf.mxu3 }
 0x673   : > { %v2614_v18 = vadd.f32 %v7323_v14, %v2613_v16 }
 0x675   : > { %v2623_v21 = vmax.f32 %v2614_v18, 0.0  ;;  %v7084_v18 = vld [vmem:[%s7455_s21 + $0x90] sm:$0xff] }
 0x677   : > { %v2627_v24 = vpack.c.bf16 %v2623_v21, %v2622_v20 }
 0x679   : > { %2993 = vmatpush.bf16.msra.mxu3 %v2627_v24 }
 0x67d   : > { %2994 = vmatpush.bf16.msra.mxu3 %v2626_v30 }
 0x681   : > { %2995 = vmatpush.bf16.msra.mxu3 %v2625_v37 }
 0x685   : > { %2996 = vmatpush.bf16.msra.mxu3 %v2624_v39  ;;  %v7088_v39 = vld [vmem:[%s7455_s21 + $0xb0] sm:$0xff] }
 0x688   : > { %6311 = vmatmul.msk.bf16.vlgmr.msra.gmra.mxu3 %vm2880_vm13, %v7066_v44 }
 0x698   : > { %6312 = vmatmul.msk.bf16.gmra.mxu3 %vm2880_vm13, %v7067_v45 }
 0x6a8   : > { %6313 = vmatmul.msk.bf16.gmra.mxu3 %vm2880_vm13, %v7068_v46 }
 0x6b8   : > { %6314 = vmatmul.msk.bf16.gmra.mxu3 %vm2880_vm13, %v7069_v47 }
 0x6c8   : > { %6315 = vmatmul.msk.bf16.gmra.mxu3 %vm2880_vm13, %v7070_v48  ;;  %v7089_v48 = vld [vmem:[%s7455_s21 + $0xb8] sm:$0xff] }
 0x6d8   : > { %6316 = vmatmul.msk.bf16.gmra.mxu3 %vm2880_vm13, %v7071_v51 }
 0x6e8   : > { %6317 = vmatmul.msk.bf16.gmra.mxu3 %vm2880_vm13, %v7072_v42 }
 0x6f8   : > { %6318 = vmatmul.msk.bf16.gmra.mxu3 %vm2880_vm13, %v7073_v52 }
 0x708   : > { %6319 = vmatmul.msk.bf16.gmra.mxu3 %vm2880_vm13, %v7074_v55  ;;  %v7090_v55 = vld [vmem:[%s7455_s21 + $0xc0] sm:$0xff] }
 0x70b   : > { %v2998_v56 = vpop.f32.mrf.mxu3 }
 0x70c   : > { %3179 = vst.msk [vmem:[#allocation3] sm:$0xff] %vm3178_vm14, %v2998_v56 }
 0x713   : > { %v3000_v57 = vpop.f32.mrf.mxu3 }
 0x714   : > { %3180 = vst.msk [vmem:[#allocation3 + $0x10] sm:$0xff] %vm3178_vm14, %v3000_v57 }
 0x718   : > { %6320 = vmatmul.msk.bf16.gmra.mxu3 %vm2880_vm13, %v7075_v50 }
 0x71b   : > { %v3003_v58 = vpop.f32.mrf.mxu3 }
 0x71c   : > { %3181 = vst.msk [vmem:[#allocation3 + $0x20] sm:$0xff] %vm3178_vm14, %v3003_v58 }
 0x723   : > { %v3005_v35 = vpop.f32.mrf.mxu3 }
 0x724   : > { %3182 = vst.msk [vmem:[#allocation3 + $0x30] sm:$0xff] %vm3178_vm14, %v3005_v35  ;;  %v7091_v35 = vld [vmem:[%s7455_s21 + $0xc8] sm:$0xff] }
 0x728   : > { %6321 = vmatmul.msk.bf16.gmra.mxu3 %vm2880_vm13, %v7076_v40 }
 0x72b   : > { %v3008_v60 = vpop.f32.mrf.mxu3 }
 0x72c   : > { %3183 = vst.msk [vmem:[#allocation3 + $0x40] sm:$0xff] %vm3178_vm14, %v3008_v60 }
 0x733   : > { %v3010_v61 = vpop.f32.mrf.mxu3 }
 0x734   : > { %3184 = vst.msk [vmem:[#allocation3 + $0x50] sm:$0xff] %vm3178_vm14, %v3010_v61 }
 0x738   : > { %6322 = vmatmul.msk.bf16.gmra.mxu3 %vm2880_vm13, %v7077_v62  ;;  %v7092_v62 = vld [vmem:[%s7455_s21 + $0xd0] sm:$0xff] }
 0x73b   : > { %v3013_v0 = vpop.f32.mrf.mxu3 }
 0x73c   : > { %3185 = vst.msk [vmem:[#allocation3 + $0x60] sm:$0xff] %vm3178_vm14, %v3013_v0 }
 0x743   : > { %v3015_v1 = vpop.f32.mrf.mxu3 }
 0x744   : > { %3186 = vst.msk [vmem:[#allocation3 + $0x70] sm:$0xff] %vm3178_vm14, %v3015_v1 }
 0x748   : > { %6323 = vmatmul.msk.bf16.gmra.mxu3 %vm2880_vm13, %v7078_v2 }
 0x74b   : > { %v3018_v4 = vpop.f32.mrf.mxu3 }
 0x74c   : > { %3195 = vrot.lane.b32.xlu2 %v3018_v4, %s7416_s23  ;;  %v7093_v4 = vld [vmem:[%s7455_s21 + $0xd8] sm:$0xff] }
 0x753   : > { %v3020_v63 = vpop.f32.mrf.mxu3 }
 0x754   : > { %3197 = vrot.lane.b32.xlu0 %v3020_v63, %s7416_s23 }
 0x758   : > { %6324 = vmatmul.msk.bf16.gmra.mxu3 %vm2880_vm13, %v7079_v54 }
 0x75b   : > { %v3023_v53 = vpop.f32.mrf.mxu3 }
 0x75c   : > { %3199 = vrot.lane.b32.xlu1 %v3023_v53, %s7416_s23 }
 0x763   : > { %v3025_v49 = vpop.f32.mrf.mxu3 }
 0x764   : > { %3201 = vrot.lane.b32.xlu2 %v3025_v49, %s7416_s23 }
 0x768   : > { %6325 = vmatmul.msk.bf16.gmra.mxu3 %vm2880_vm13, %v7080_v59  ;;  %v7094_v59 = vld [vmem:[%s7455_s21 + $0xe0] sm:$0xff] }
 0x76b   : > { %v3028_v32 = vpop.f32.mrf.mxu3 }
 0x76c   : > { %3203 = vrot.lane.b32.xlu0 %v3028_v32, %s7416_s23 }
 0x773   : > { %v3030_v9 = vpop.f32.mrf.mxu3 }
 0x774   : > { %3205 = vrot.lane.b32.xlu1 %v3030_v9, %s7416_s23 }
 0x778   : > { %6326 = vmatmul.msk.bf16.gmra.mxu3 %vm2880_vm13, %v7081_v10 }
 0x77b   : > { %v8000_v11 = vpop.f32.mrf.mxu3 }
 0x783   : > { %v8002_v12 = vpop.f32.mrf.mxu3 }
 0x788   : > { %6327 = vmatmul.msk.bf16.gmra.mxu3 %vm2880_vm13, %v7082_v3 }
 0x78b   : > { %v3038_v13 = vpop.f32.mrf.mxu3 }
 0x78c   : > { %3236 = vrot.lane.b32.xlu1 %v3038_v13, %s7418_s28  ;;  %v7095_v13 = vld [vmem:[%s7455_s21 + $0xe8] sm:$0xff] }
 0x793   : > { %v3040_v14 = vpop.f32.mrf.mxu3 }
 0x794   : > { %3238 = vrot.lane.b32.xlu2 %v3040_v14, %s7418_s28 }
 0x798   : > { %6328 = vmatmul.msk.bf16.gmra.mxu3 %vm2880_vm13, %v7083_v15 }
 0x79b   : > { %v3043_v16 = vpop.f32.mrf.mxu3 }
 0x79c   : > { %3240 = vrot.lane.b32.xlu0 %v3043_v16, %s7418_s28 }
 0x7a3   : > { %v3045_v17 = vpop.f32.mrf.mxu3 }
 0x7a4   : > { %3242 = vrot.lane.b32.xlu1 %v3045_v17, %s7418_s28 }
 0x7a6   : > { %v3196_v19 = vpop.permute.xlu2 %3195 }
 0x7a7   : > { %3220 = vst.msk [vmem:[#allocation3] sm:$0xff] %vm3219_vm15, %v3196_v19  ;;  %v7096_v19 = vld [vmem:[%s7455_s21 + $0xf0] sm:$0xff] }
 0x7a8   : > { %6329 = vmatmul.msk.bf16.gmra.mxu3 %vm2880_vm13, %v7084_v18  ;;  %v7109_v18 = vld [vmem:[%s7490_s24 + $0x38] sm:$0xff] }
 0x7a9   : > { %3594 = vmatpush.bf16.msrb.mxu0 %v7109_v18 }
 0x7ab   : > { %v3048_v20 = vpop.f32.mrf.mxu3 }
 0x7ac   : > { %3244 = vrot.lane.b32.xlu2 %v3048_v20, %s7418_s28 }
 0x7b3   : > { %v3050_v21 = vpop.f32.mrf.mxu3 }
 0x7b4   : > { %3246 = vrot.lane.b32.xlu0 %v3050_v21, %s7418_s28 }
 0x7b8   : > { %6330 = vmatmul.msk.bf16.gmra.mxu3 %vm2880_vm13, %v7085_v22 }
 0x7bb   : > { %v8019_v23 = vpop.f32.mrf.mxu3 }
 0x7be   : > { %v3202_v24 = vpop.permute.xlu2 %3201 }
 0x7bf   : > { %3223 = vst.msk [vmem:[#allocation3 + $0x30] sm:$0xff] %vm3219_vm15, %v3202_v24  ;;  %v7097_v24 = vld [vmem:[%s7455_s21 + $0xf8] sm:$0xff] }
 0x7c3   : > { %v8022_v26 = vpop.f32.mrf.mxu3 }
 0x7c6   : > { %v3198_v28 = vpop.permute.xlu0 %3197 }
 0x7c7   : > { %3221 = vst.msk [vmem:[#allocation3 + $0x10] sm:$0xff] %vm3219_vm15, %v3198_v28 }
 0x7c8   : > { %6331 = vmatmul.msk.bf16.gmra.mxu3 %vm2880_vm13, %v7086_v27 }
 0x7cb   : > { %v3058_v29 = vpop.f32.mrf.mxu3 }
 0x7cc   : > { %3277 = vrot.lane.b32.xlu0 %v3058_v29, %s7420_s2 }
 0x7ce   : > { %v3200_v30 = vpop.permute.xlu1 %3199 }
 0x7cf   : > { %3222 = vst.msk [vmem:[#allocation3 + $0x20] sm:$0xff] %vm3219_vm15, %v3200_v30  ;;  %v7108_v30 = vld [vmem:[%s7490_s24 + $0x30] sm:$0xff] }
 0x7d0   : > { %3595 = vmatpush.bf16.msrb.mxu0 %v7108_v30 }
 0x7d3   : > { %v3060_v31 = vpop.f32.mrf.mxu3 }
 0x7d4   : > { %3279 = vrot.lane.b32.xlu1 %v3060_v31, %s7420_s2 }
 0x7d8   : > { %6332 = vmatmul.msk.bf16.gmra.mxu3 %vm2880_vm13, %v7087_v33 }
 0x7db   : > { %v3063_v36 = vpop.f32.mrf.mxu3 }
 0x7dc   : > { %3281 = vrot.lane.b32.xlu2 %v3063_v36, %s7420_s2 }
 0x7de   : > { %v3204_v37 = vpop.permute.xlu0 %3203 }
 0x7df   : > { %3224 = vst.msk [vmem:[#allocation3 + $0x40] sm:$0xff] %vm3219_vm15, %v3204_v37 }
 0x7e3   : > { %v3065_v38 = vpop.f32.mrf.mxu3 }
 0x7e4   : > { %3283 = vrot.lane.b32.xlu0 %v3065_v38, %s7420_s2 }
 0x7e6   : > { %v3206_v44 = vpop.permute.xlu1 %3205 }
 0x7e7   : > { %3225 = vst.msk [vmem:[#allocation3 + $0x50] sm:$0xff] %vm3219_vm15, %v3206_v44 }
 0x7e8   : > { %6333 = vmatmul.msk.bf16.gmra.mxu3 %vm2880_vm13, %v7088_v39 }
 0x7eb   : > { %v3068_v45 = vpop.f32.mrf.mxu3 }
 0x7ec   : > { %3285 = vrot.lane.b32.xlu1 %v3068_v45, %s7420_s2  ;;  %v7107_v45 = vld [vmem:[%s7490_s24 + $0x28] sm:$0xff] }
 0x7ed   : > { %3596 = vmatpush.bf16.msrb.mxu0 %v7107_v45  ;;  %v7110_v45 = vld [vmem:[%s7490_s24 + $0x40] sm:$0xff] }
 0x7ee   : > { %v3239_v46 = vpop.permute.xlu2 %3238 }
 0x7ef   : > { %3262 = vst.msk [vmem:[#allocation3 + $0x10] sm:$0xff] %vm3260_vm1, %v3239_v46 }
 0x7f3   : > { %v3070_v47 = vpop.f32.mrf.mxu3 }
 0x7f4   : > { %3287 = vrot.lane.b32.xlu2 %v3070_v47, %s7420_s2 }
 0x7f8   : > { %6334 = vmatmul.msk.bf16.gmra.mxu3 %vm2880_vm13, %v7089_v48 }
 0x7fb   : > { %v8043_v51 = vpop.f32.mrf.mxu3 }
 0x7fe   : > { %v3237_v42 = vpop.permute.xlu1 %3236 }
 0x7ff   : > { %3261 = vst.msk [vmem:[#allocation3] sm:$0xff] %vm3260_vm1, %v3237_v42 }
 0x803   : > { %v8046_v52 = vpop.f32.mrf.mxu3 }
 0x806   : > { %v3245_v56 = vpop.permute.xlu2 %3244 }
 0x807   : > { %3265 = vst.msk [vmem:[#allocation3 + $0x40] sm:$0xff] %vm3260_vm1, %v3245_v56 }
 0x808   : > { %6335 = vmatmul.msk.bf16.gmra.mxu3 %vm2880_vm13, %v7090_v55 }
 0x80b   : > { %v3078_v57 = vpop.f32.mrf.mxu3 }
 0x80c   : > { %3318 = vrot.lane.b32.xlu2 %v3078_v57, %s7422_s10 }
 0x80e   : > { %v3241_v50 = vpop.permute.xlu0 %3240 }
 0x80f   : > { %3263 = vst.msk [vmem:[#allocation3 + $0x20] sm:$0xff] %vm3260_vm1, %v3241_v50  ;;  %v7106_v50 = vld [vmem:[%s7490_s24 + $0x20] sm:$0xff] }
 0x810   : > { %3597 = vmatpush.bf16.msrb.mxu0 %v7106_v50 }
 0x813   : > { %v3080_v58 = vpop.f32.mrf.mxu3 }
 0x814   : > { %3320 = vrot.lane.b32.xlu0 %v3080_v58, %s7422_s10 }
 0x816   : > { %v3243_v40 = vpop.permute.xlu1 %3242 }
 0x817   : > { %3264 = vst.msk [vmem:[#allocation3 + $0x30] sm:$0xff] %vm3260_vm1, %v3243_v40 }
 0x818   : > { %6336 = vmatmul.msk.bf16.gmra.mxu3 %vm2880_vm13, %v7091_v35 }
 0x81b   : > { %v3083_v60 = vpop.f32.mrf.mxu3 }
 0x81c   : > { %3322 = vrot.lane.b32.xlu1 %v3083_v60, %s7422_s10  ;;  %v7098_v60 = vld [vmem:[%s7455_s21 + $0x100] sm:$0xff] }
 0x823   : > { %v3085_v61 = vpop.f32.mrf.mxu3 }
 0x824   : > { %3324 = vrot.lane.b32.xlu2 %v3085_v61, %s7422_s10 }
 0x826   : > { %v3247_v0 = vpop.permute.xlu0 %3246 }
 0x827   : > { %3266 = vst.msk [vmem:[#allocation3 + $0x50] sm:$0xff] %vm3260_vm1, %v3247_v0 }
 0x828   : > { %6337 = vmatmul.msk.bf16.gmra.mxu3 %vm2880_vm13, %v7092_v62 }
 0x82b   : > { %v3088_v1 = vpop.f32.mrf.mxu3 }
 0x82c   : > { %3326 = vrot.lane.b32.xlu0 %v3088_v1, %s7422_s10  ;;  %v7105_v1 = vld [vmem:[%s7490_s24 + $0x18] sm:$0xff] }
 0x82d   : > { %3598 = vmatpush.bf16.msrb.mxu0 %v7105_v1 }
 0x833   : > { %v3090_v2 = vpop.f32.mrf.mxu3 }
 0x834   : > { %3328 = vrot.lane.b32.xlu1 %v3090_v2, %s7422_s10  ;;  %v7099_v2 = vld [vmem:[%s7455_s21 + $0x108] sm:$0xff] }
 0x836   : > { %v3282_v63 = vpop.permute.xlu2 %3281 }
 0x837   : > { %3304 = vst.msk [vmem:[#allocation3 + $0x20] sm:$0xff] %vm3301_vm2, %v3282_v63 }
 0x838   : > { %6338 = vmatmul.msk.bf16.gmra.mxu3 %vm2880_vm13, %v7093_v4 }
 0x83b   : > { %v8067_v54 = vpop.f32.mrf.mxu3 }
 0x83e   : > { %v3278_v53 = vpop.permute.xlu0 %3277 }
 0x83f   : > { %3302 = vst.msk [vmem:[#allocation3] sm:$0xff] %vm3301_vm2, %v3278_v53  ;;  %v7104_v53 = vld [vmem:[%s7490_s24 + $0x10] sm:$0xff] }
 0x840   : > { %3599 = vmatpush.bf16.msrb.mxu0 %v7104_v53 }
 0x843   : > { %v8070_v49 = vpop.f32.mrf.mxu3 }
 0x846   : > { %v3280_v32 = vpop.permute.xlu1 %3279 }
 0x847   : > { %3303 = vst.msk [vmem:[#allocation3 + $0x10] sm:$0xff] %vm3301_vm2, %v3280_v32 }
 0x848   : > { %6339 = vmatmul.msk.bf16.gmra.mxu3 %vm2880_vm13, %v7094_v59 }
 0x84b   : > { %v3098_v9 = vpop.f32.mrf.mxu3 }
 0x84c   : > { %3359 = vrot.lane.b32.xlu1 %v3098_v9, %s7424_s16 }
 0x84e   : > { %v3288_v10 = vpop.permute.xlu2 %3287 }
 0x84f   : > { %3307 = vst.msk [vmem:[#allocation3 + $0x50] sm:$0xff] %vm3301_vm2, %v3288_v10 }
 0x853   : > { %v3100_v3 = vpop.f32.mrf.mxu3 }
 0x854   : > { %3361 = vrot.lane.b32.xlu2 %v3100_v3, %s7424_s16  ;;  %v7103_v3 = vld [vmem:[%s7490_s24 + $0x8] sm:$0xff] }
 0x855   : > { %3600 = vmatpush.bf16.msrb.mxu0 %v7103_v3 }
 0x856   : > { %v3284_v14 = vpop.permute.xlu0 %3283 }
 0x857   : > { %3305 = vst.msk [vmem:[#allocation3 + $0x30] sm:$0xff] %vm3301_vm2, %v3284_v14  ;;  %v7102_v14 = vld [vmem:[%s7490_s24] sm:$0xff] }
 0x858   : > { %6340 = vmatmul.msk.bf16.gmra.mxu3 %vm2880_vm13, %v7095_v13 }
 0x859   : > { %3601 = vmatpush.bf16.msrb.mxu0 %v7102_v14 }
 0x85b   : > { %v3103_v15 = vpop.f32.mrf.mxu3 }
 0x85c   : > { %3363 = vrot.lane.b32.xlu0 %v3103_v15, %s7424_s16 }
 0x85d   : > { %3630 = vmatpush.bf16.msra.mxu0 %v7110_v45 }
 0x85e   : > { %v3286_v16 = vpop.permute.xlu1 %3285 }
 0x85f   : > { %3306 = vst.msk [vmem:[#allocation3 + $0x40] sm:$0xff] %vm3301_vm2, %v3286_v16 }
 0x863   : > { %v3105_v17 = vpop.f32.mrf.mxu3 }
 0x864   : > { %3365 = vrot.lane.b32.xlu1 %v3105_v17, %s7424_s16 }
 0x866   : > { %v3319_v20 = vpop.permute.xlu2 %3318 }
 0x867   : > { %3343 = vst.msk [vmem:[#allocation3] sm:$0xff] %vm3342_vm3, %v3319_v20 }
 0x868   : > { %6341 = vmatmul.msk.bf16.gmra.mxu3 %vm2880_vm13, %v7096_v19 }
 0x86b   : > { %v3108_v21 = vpop.f32.mrf.mxu3 }
 0x86c   : > { %3367 = vrot.lane.b32.xlu2 %v3108_v21, %s7424_s16 }
 0x873   : > { %v3110_v22 = vpop.f32.mrf.mxu3 }
 0x874   : > { %3369 = vrot.lane.b32.xlu0 %v3110_v22, %s7424_s16 }
 0x878   : > { %6342 = vmatmul.msk.bf16.gmra.mxu3 %vm2880_vm13, %v7097_v24 }
 0x87b   : > { %v8092_v27 = vpop.f32.mrf.mxu3 }
 0x87e   : > { %v3325_v28 = vpop.permute.xlu2 %3324 }
 0x87f   : > { %3346 = vst.msk [vmem:[#allocation3 + $0x30] sm:$0xff] %vm3342_vm3, %v3325_v28 }
 0x883   : > { %v8095_v29 = vpop.f32.mrf.mxu3 }
 0x886   : > { %v3321_v31 = vpop.permute.xlu0 %3320 }
 0x887   : > { %3344 = vst.msk [vmem:[#allocation3 + $0x10] sm:$0xff] %vm3342_vm3, %v3321_v31 }
 0x888   : > { %6343 = vmatmul.msk.bf16.gmra.mxu3 %vm2880_vm13, %v7098_v60 }
 0x88b   : > { %v3118_v33 = vpop.f32.mrf.mxu3 }
 0x88c   : > { %3400 = vrot.lane.b32.xlu0 %v3118_v33, %s7423_s11 }
 0x88e   : > { %v3323_v36 = vpop.permute.xlu1 %3322 }
 0x88f   : > { %3345 = vst.msk [vmem:[#allocation3 + $0x20] sm:$0xff] %vm3342_vm3, %v3323_v36 }
 0x893   : > { %v3120_v37 = vpop.f32.mrf.mxu3 }
 0x894   : > { %3402 = vrot.lane.b32.xlu1 %v3120_v37, %s7423_s11 }
 0x898   : > { %6344 = vmatmul.msk.bf16.gmra.mxu3 %vm2880_vm13, %v7099_v2 }
 0x89b   : > { %v3123_v38 = vpop.f32.mrf.mxu3 }
 0x89c   : > { %3404 = vrot.lane.b32.xlu2 %v3123_v38, %s7423_s11 }
 0x89e   : > { %v3327_v39 = vpop.permute.xlu0 %3326 }
 0x89f   : > { %3347 = vst.msk [vmem:[#allocation3 + $0x40] sm:$0xff] %vm3342_vm3, %v3327_v39 }
 0x8a3   : > { %v3125_v44 = vpop.f32.mrf.mxu3 }
 0x8a4   : > { %3406 = vrot.lane.b32.xlu0 %v3125_v44, %s7423_s11 }
 0x8a6   : > { %v3329_v46 = vpop.permute.xlu1 %3328 }
 0x8a7   : > { %3348 = vst.msk [vmem:[#allocation3 + $0x50] sm:$0xff] %vm3342_vm3, %v3329_v46 }
 0x8ab   : > { %v3128_v47 = vpop.f32.mrf.mxu3 }
 0x8ac   : > { %3408 = vrot.lane.b32.xlu1 %v3128_v47, %s7423_s11 }
 0x8ae   : > { %v3362_v48 = vpop.permute.xlu2 %3361 }
 0x8af   : > { %3385 = vst.msk [vmem:[#allocation3 + $0x10] sm:$0xff] %vm3383_vm4, %v3362_v48 }
 0x8b3   : > { %v3130_v42 = vpop.f32.mrf.mxu3 }
 0x8b4   : > { %3248 = vrot.lane.b32.xlu1 %v8019_v23, %s7418_s28  ;;  %3410 = vrot.lane.b32.xlu2 %v3130_v42, %s7423_s11 }
 0x8bb   : > { %v3133_v55 = vpop.f32.mrf.mxu3 }
 0x8be   : > { %v3360_v56 = vpop.permute.xlu1 %3359 }
 0x8bf   : > { %3384 = vst.msk [vmem:[#allocation3] sm:$0xff] %vm3383_vm4, %v3360_v56 }
 0x8c3   : > { %v3135_v57 = vpop.f32.mrf.mxu3 }
 0x8c6   : > { %v3368_v58 = vpop.permute.xlu2 %3367 }
 0x8c7   : > { %3388 = vst.msk [vmem:[#allocation3 + $0x40] sm:$0xff] %vm3383_vm4, %v3368_v58 }
 0x8cb   : > { %v3138_v35 = vpop.f32.mrf.mxu3 }
 0x8cc   : > { %3441 = vrot.lane.b32.xlu2 %v3138_v35, %s7425_s0 }
 0x8ce   : > { %v3364_v23 = vpop.permute.xlu0 %3363 }
 0x8cf   : > { %3386 = vst.msk [vmem:[#allocation3 + $0x20] sm:$0xff] %vm3383_vm4, %v3364_v23 }
 0x8d3   : > { %v3140_v40 = vpop.f32.mrf.mxu3 }
 0x8d4   : > { %3207 = vrot.lane.b32.xlu2 %v8000_v11, %s7416_s23  ;;  %3443 = vrot.lane.b32.xlu0 %v3140_v40, %s7425_s0 }
 0x8d6   : > { %v3366_v61 = vpop.permute.xlu1 %3365 }
 0x8d7   : > { %3387 = vst.msk [vmem:[#allocation3 + $0x30] sm:$0xff] %vm3383_vm4, %v3366_v61 }
 0x8db   : > { %v3143_v62 = vpop.f32.mrf.mxu3 }
 0x8dc   : > { %3209 = vrot.lane.b32.xlu0 %v8002_v12, %s7416_s23  ;;  %3445 = vrot.lane.b32.xlu1 %v3143_v62, %s7425_s0 }
 0x8e3   : > { %v3145_v0 = vpop.f32.mrf.mxu3 }
 0x8e4   : > { %3289 = vrot.lane.b32.xlu0 %v8043_v51, %s7420_s2  ;;  %3291 = vrot.lane.b32.xlu1 %v8046_v52, %s7420_s2  ;;  %v7100_v51 = vld [vmem:[%s7455_s21 + $0x110] sm:$0xff] }
 0x8e5   : > { %3447 = vrot.lane.b32.xlu2 %v3145_v0, %s7425_s0  ;;  %6345 = vmatmul.msk.bf16.gmra.mxu3 %vm2880_vm13, %v7100_v51 }
 0x8e6   : > { %v3370_v11 = vpop.permute.xlu0 %3369 }
 0x8e7   : > { %3389 = vst.msk [vmem:[#allocation3 + $0x50] sm:$0xff] %vm3383_vm4, %v3370_v11 }
 0x8eb   : > { %v3148_v12 = vpop.f32.mrf.mxu3 }
 0x8ec   : > { %3332 = vrot.lane.b32.xlu0 %v8070_v49, %s7422_s10 }
 0x8ed   : > { %3250 = vrot.lane.b32.xlu2 %v8022_v26, %s7418_s28 }
 0x8f3   : > { %v3150_v4 = vpop.f32.mrf.mxu3 }
 0x8f4   : > { %3449 = vrot.lane.b32.xlu0 %v3148_v12, %s7425_s0  ;;  %3451 = vrot.lane.b32.xlu1 %v3150_v4, %s7425_s0 }
 0x8f5   : > { %3330 = vrot.lane.b32.xlu2 %v8067_v54, %s7422_s10  ;;  %v7101_v54 = vld [vmem:[%s7455_s21 + $0x118] sm:$0xff] }
 0x8f6   : > { %v3405_v52 = vpop.permute.xlu2 %3404  ;;  %6346 = vmatmul.msk.bf16.gmra.mxu3 %vm2880_vm13, %v7101_v54 }
 0x8f7   : > { %3427 = vst.msk [vmem:[#allocation3 + $0x20] sm:$0xff] %vm3424_vm5, %v3405_v52 }
 0x8fb   : > { %v3153_v63 = vpop.f32.mrf.mxu3 }
 0x8fc   : > { %3412 = vrot.lane.b32.xlu0 %v3133_v55, %s7423_s11  ;;  %3371 = vrot.lane.b32.xlu1 %v8092_v27, %s7424_s16 }
 0x8fd   : > { %3373 = vrot.lane.b32.xlu2 %v8095_v29, %s7424_s16 }
 0x8fe   : > { %v3401_v26 = vpop.permute.xlu0 %3400 }
 0x8ff   : > { %3425 = vst.msk [vmem:[#allocation3] sm:$0xff] %vm3424_vm5, %v3401_v26 }
 0x903   : > { %v3155_v49 = vpop.f32.mrf.mxu3 }
 0x904   : > { %3414 = vrot.lane.b32.xlu1 %v3135_v57, %s7423_s11  ;;  %3455 = vrot.lane.b32.xlu0 %v3155_v49, %s7425_s0 }
 0x905   : > { %3453 = vrot.lane.b32.xlu2 %v3153_v63, %s7425_s0 }
 0x906   : > { %v3403_v59 = vpop.permute.xlu1 %3402 }
 0x907   : > { %3426 = vst.msk [vmem:[#allocation3 + $0x10] sm:$0xff] %vm3424_vm5, %v3403_v59 }
 0x90b   : > { %v3158_v31 = vpop.f32.mrf.mxu3 }
 0x90c   : > { %3474 = vst.msk [vmem:[#allocation3 + $0x8] sm:$0xff] %vm3178_vm14, %v3158_v31 }
 0x90e   : > { %v3411_v32 = vpop.permute.xlu2 %3410 }
 0x90f   : > { %3430 = vst.msk [vmem:[#allocation3 + $0x50] sm:$0xff] %vm3424_vm5, %v3411_v32 }
 0x913   : > { %v3160_v44 = vpop.f32.mrf.mxu3  ;;  %v3483_v11 = vld [vmem:[#allocation3 + $0x8] sm:$0xff] }
 0x914   : > { %3475 = vst.msk [vmem:[#allocation3 + $0x18] sm:$0xff] %vm3178_vm14, %v3160_v44 }
 0x916   : > { %v3407_v9 = vpop.permute.xlu0 %3406 }
 0x917   : > { %3428 = vst.msk [vmem:[#allocation3 + $0x30] sm:$0xff] %vm3424_vm5, %v3407_v9 }
 0x91b   : > { %v3163_v48 = vpop.f32.mrf.mxu3  ;;  %v3485_v12 = vld [vmem:[#allocation3 + $0x18] sm:$0xff] }
 0x91c   : > { %3476 = vst.msk [vmem:[#allocation3 + $0x28] sm:$0xff] %vm3178_vm14, %v3163_v48  ;;  %v3499_v51 = vpack.c.bf16 %v3485_v12, %v3483_v11 }
 0x91e   : > { %v3409_v10 = vpop.permute.xlu1 %3408 }
 0x91f   : > { %3429 = vst.msk [vmem:[#allocation3 + $0x40] sm:$0xff] %vm3424_vm5, %v3409_v10 }
 0x923   : > { %v3165_v35 = vpop.f32.mrf.mxu3  ;;  %v3487_v52 = vld [vmem:[#allocation3 + $0x28] sm:$0xff] }
 0x924   : > { %3477 = vst.msk [vmem:[#allocation3 + $0x38] sm:$0xff] %vm3178_vm14, %v3165_v35 }
 0x926   : > { %v3442_v13 = vpop.permute.xlu2 %3441  ;;  %v3249_v16 = vpop.permute.xlu1 %3248 }
 0x927   : > { %3466 = vst.msk [vmem:[#allocation3] sm:$0xff] %vm3465_vm6, %v3442_v13 }
 0x92b   : > { %v3489_v63 = vld [vmem:[#allocation3 + $0x38] sm:$0xff] }
 0x92c   : > { %v3501_v26 = vpack.c.bf16 %v3489_v63, %v3487_v52 }
 0x92e   : > { %v3208_v15 = vpop.permute.xlu2 %3207  ;;  %v3482_v22 = vld [vmem:[#allocation3] sm:$0xff] }
 0x92f   : > { %3226 = vst.msk [vmem:[#allocation3 + $0x60] sm:$0xff] %vm3219_vm15, %v3208_v15 }
 0x930   : > { %3267 = vst.msk [vmem:[#allocation3 + $0x60] sm:$0xff] %vm3260_vm1, %v3249_v16 }
 0x93f   : > { %v3448_v17 = vpop.permute.xlu2 %3447 }
 0x940   : > { %3469 = vst.msk [vmem:[#allocation3 + $0x30] sm:$0xff] %vm3465_vm6, %v3448_v17 }
 0x946   : > { %v3444_v18 = vpop.permute.xlu0 %3443 }
 0x947   : > { %3467 = vst.msk [vmem:[#allocation3 + $0x10] sm:$0xff] %vm3465_vm6, %v3444_v18  ;;  %v3251_v19 = vpop.permute.xlu2 %3250  ;;  %v3488_v37 = vld [vmem:[#allocation3 + $0x30] sm:$0xff] }
 0x94e   : > { %v3210_v20 = vpop.permute.xlu0 %3209  ;;  %v3446_v21 = vpop.permute.xlu1 %3445  ;;  %v3484_v24 = vld [vmem:[#allocation3 + $0x10] sm:$0xff] }
 0x94f   : > { %3227 = vst.msk [vmem:[#allocation3 + $0x70] sm:$0xff] %vm3219_vm15, %v3210_v20  ;;  %v3498_v27 = vpack.c.bf16 %v3484_v24, %v3482_v22  ;;  %v3331_v28 = vpop.permute.xlu2 %3330  ;;  %v7322_v20 = vld [vmem:[%s7505_s12] ss:$0 sm:$0xff] }
 0x950   : > { %3268 = vst.msk [vmem:[#allocation3 + $0x70] sm:$0xff] %vm3260_vm1, %v3251_v19  ;;  %v7324_v19 = vld [vmem:[%s7495_s30] ss:$0 sm:$0xff]  ;;  %v2521_v24 = vadd.f32 %v7322_v20, %v7937_v5  ;;  %v2531_v45 = vadd.f32 %v7322_v20, %v7945_v7  ;;  %v2536_v5 = vadd.f32 %v7322_v20, %v7949_v34  ;;  %v2523_v63 = vadd.f32 %v7322_v20, %v7939_v43 }
 0x951   : > { %3468 = vst.msk [vmem:[#allocation3 + $0x20] sm:$0xff] %vm3465_vm6, %v3446_v21  ;;  %3602 = vmatmul.bf16.vlgmr.msrb.gmra.mxu0 %v3498_v27  ;;  %v7111_v43 = vld [vmem:[%s7460_s25] sm:$0xff] }
 0x956   : > { %v3290_v29 = vpop.permute.xlu0 %3289  ;;  %v3292_v30 = vpop.permute.xlu1 %3291 }
 0x957   : > { %3308 = vst.msk [vmem:[#allocation3 + $0x60] sm:$0xff] %vm3301_vm2, %v3290_v29  ;;  %v3374_v38 = vpop.permute.xlu2 %3373 }
 0x958   : > { %3349 = vst.msk [vmem:[#allocation3 + $0x60] sm:$0xff] %vm3342_vm3, %v3331_v28  ;;  %v3486_v33 = vld [vmem:[#allocation3 + $0x20] sm:$0xff] }
 0x959   : > { %3309 = vst.msk [vmem:[#allocation3 + $0x70] sm:$0xff] %vm3301_vm2, %v3292_v30  ;;  %v3500_v39 = vpack.c.bf16 %v3488_v37, %v3486_v33  ;;  %v2526_v33 = vadd.f32 %v7322_v20, %v7941_v6 }
 0x95e   : > { %v3333_v36 = vpop.permute.xlu0 %3332 }
 0x95f   : > { %3350 = vst.msk [vmem:[#allocation3 + $0x70] sm:$0xff] %vm3342_vm3, %v3333_v36  ;;  %v3454_v50 = vpop.permute.xlu2 %3453 }
 0x960   : > { %3391 = vst.msk [vmem:[#allocation3 + $0x70] sm:$0xff] %vm3383_vm4, %v3374_v38 }
 0x961   : > { %3607 = vmatmul.bf16.gmra.mxu0 %v3500_v39 }
 0x966   : > { %v3450_v46 = vpop.permute.xlu0 %3449  ;;  %v3452_v47 = vpop.permute.xlu1 %3451 }
 0x967   : > { %3470 = vst.msk [vmem:[#allocation3 + $0x40] sm:$0xff] %vm3465_vm6, %v3450_v46 }
 0x968   : > { %3471 = vst.msk [vmem:[#allocation3 + $0x50] sm:$0xff] %vm3465_vm6, %v3452_v47  ;;  %v3168_v60 = vpop.f32.mrf.mxu3 }
 0x969   : > { %3478 = vst.msk [vmem:[#allocation3 + $0x48] sm:$0xff] %vm3178_vm14, %v3168_v60 }
 0x96e   : > { %v3413_v42 = vpop.permute.xlu0 %3412  ;;  %v3372_v55 = vpop.permute.xlu1 %3371  ;;  %v3490_v56 = vld [vmem:[#allocation3 + $0x40] sm:$0xff] }
 0x96f   : > { %3390 = vst.msk [vmem:[#allocation3 + $0x60] sm:$0xff] %vm3383_vm4, %v3372_v55  ;;  %v3492_v57 = vld [vmem:[#allocation3 + $0x50] sm:$0xff] }
 0x970   : > { %3431 = vst.msk [vmem:[#allocation3 + $0x60] sm:$0xff] %vm3424_vm5, %v3413_v42  ;;  %v3502_v58 = vpack.c.bf16 %v3492_v57, %v3490_v56  ;;  %v3170_v1 = vpop.f32.mrf.mxu3  ;;  %v3491_v53 = vld [vmem:[#allocation3 + $0x48] sm:$0xff] }
 0x971   : > { %3472 = vst.msk [vmem:[#allocation3 + $0x60] sm:$0xff] %vm3465_vm6, %v3454_v50 }
 0x972   : > { %3612 = vmatmul.bf16.gmra.mxu0 %v3502_v58  ;;  %3479 = vst.msk [vmem:[#allocation3 + $0x58] sm:$0xff] %vm3178_vm14, %v3170_v1  ;;  %v2528_v1 = vadd.f32 %v7322_v20, %v7943_v25 }
 0x976   : > { %v3415_v23 = vpop.permute.xlu1 %3414  ;;  %v3456_v40 = vpop.permute.xlu0 %3455 }
 0x977   : > { %3432 = vst.msk [vmem:[#allocation3 + $0x70] sm:$0xff] %vm3424_vm5, %v3415_v23  ;;  %v2533_v23 = vadd.f32 %v7322_v20, %v7947_v8 }
 0x978   : > { %3473 = vst.msk [vmem:[#allocation3 + $0x70] sm:$0xff] %vm3465_vm6, %v3456_v40  ;;  %v3494_v61 = vld [vmem:[#allocation3 + $0x60] sm:$0xff]  ;;  %v2538_v40 = vadd.f32 %v7322_v20, %v7951_v41 }
 0x979   : > { %v3173_v2 = vpop.f32.mrf.mxu3  ;;  %v3493_v54 = vld [vmem:[#allocation3 + $0x58] sm:$0xff] }
 0x97a   : > { %3480 = vst.msk [vmem:[#allocation3 + $0x68] sm:$0xff] %vm3178_vm14, %v3173_v2  ;;  %v3503_v49 = vpack.c.bf16 %v3493_v54, %v3491_v53 }
 0x97f   : > { %v3496_v62 = vld [vmem:[#allocation3 + $0x70] sm:$0xff] }
 0x980   : > { %v3504_v0 = vpack.c.bf16 %v3496_v62, %v3494_v61 }
 0x981   : > { %v3175_v4 = vpop.f32.mrf.mxu3  ;;  %v3495_v59 = vld [vmem:[#allocation3 + $0x68] sm:$0xff] }
 0x982   : > { %3617 = vmatmul.bf16.gmra.mxu0 %v3504_v0  ;;  %3481 = vst.msk [vmem:[#allocation3 + $0x78] sm:$0xff] %vm3178_vm14, %v3175_v4 }
 0x989   : > { %v3497_v32 = vld [vmem:[#allocation3 + $0x78] sm:$0xff] }
 0x98a   : > { %v3505_v9 = vpack.c.bf16 %v3497_v32, %v3495_v59 }
 0x992   : > { %6383 = vmatmul.msk.bf16.vlgmr.msra.gmra.mxu0 %vm3178_vm14, %v3499_v51 }
 0x9a2   : > { %6384 = vmatmul.msk.bf16.gmra.mxu0 %vm3178_vm14, %v3501_v26 }
 0x9b2   : > { %6385 = vmatmul.msk.bf16.gmra.mxu0 %vm3178_vm14, %v3503_v49 }
 0x9c2   : > { %6386 = vmatmul.msk.bf16.gmra.mxu0 %vm3178_vm14, %v3505_v9  ;;  %v7112_v9 = vld [vmem:[%s7460_s25 + $0x8] sm:$0xff] }
 0x9ce   : > { %v3603_v10 = vpop.f32.mrf.mxu0 }
 0x9cf   : > { %v3604_v21 = vadd.f32 %v7324_v19, %v3603_v10  ;;  %v7113_v10 = vld [vmem:[%s7460_s25 + $0x10] sm:$0xff] }
 0x9d6   : > { %v3605_v3 = vpop.f32.mrf.mxu0 }
 0x9d7   : > { %v3606_v2 = vadd.f32 %v7324_v19, %v3605_v3  ;;  %v7114_v3 = vld [vmem:[%s7460_s25 + $0x18] sm:$0xff] }
 0x9de   : > { %v3608_v13 = vpop.f32.mrf.mxu0 }
 0x9df   : > { %v3609_v30 = vadd.f32 %v7324_v19, %v3608_v13  ;;  %v7115_v13 = vld [vmem:[%s7460_s25 + $0x20] sm:$0xff] }
 0x9e6   : > { %v3610_v14 = vpop.f32.mrf.mxu0 }
 0x9e7   : > { %v3611_v60 = vadd.f32 %v7324_v19, %v3610_v14  ;;  %v7116_v14 = vld [vmem:[%s7460_s25 + $0x28] sm:$0xff] }
 0x9ef   : > { %v3613_v15 = vpop.f32.mrf.mxu0 }
 0x9f0   : > { %v3614_v39 = vadd.f32 %v7324_v19, %v3613_v15  ;;  %v7117_v15 = vld [vmem:[%s7460_s25 + $0x30] sm:$0xff] }
 0x9f7   : > { %v3615_v16 = vpop.f32.mrf.mxu0 }
 0x9f8   : > { %v3616_v50 = vadd.f32 %v7324_v19, %v3615_v16  ;;  %v7118_v16 = vld [vmem:[%s7460_s25 + $0x38] sm:$0xff] }
 0x9ff   : > { %v3618_v17 = vpop.f32.mrf.mxu0 }
 0xa00   : > { %v3619_v42 = vadd.f32 %v7324_v19, %v3618_v17 }
 0xa07   : > { %v3620_v18 = vpop.f32.mrf.mxu0 }
 0xa08   : > { %v3621_v58 = vadd.f32 %v7324_v19, %v3620_v18 }
 0xa0f   : > { %v3632_v22 = vpop.f32.mrf.mxu0 }
 0xa10   : > { %v3633_v27 = vadd.f32 %v3632_v22, %v3604_v21 }
 0xa12   : > { %v3652_v28 = vadd.f32 %v3633_v27, %v2521_v24 }
 0xa14   : > { %v3660_v59 = vmax.f32 %v3652_v28, 0.0 }
 0xa17   : > { %v3634_v29 = vpop.f32.mrf.mxu0 }
 0xa18   : > { %v3635_v12 = vadd.f32 %v3634_v29, %v3606_v2  ;;  %v7123_v2 = vld [vmem:[%s7510_s20 + $0x18] sm:$0xff] }
 0xa1a   : > { %v3653_v41 = vadd.f32 %v3635_v12, %v2523_v63  ;;  %v7121_v12 = vld [vmem:[%s7510_s20 + $0x8] sm:$0xff]  ;;  %v7154_v63 = vld [vmem:[%s8541_s22 + $0x78] sm:$0xff] }
 0xa1b   : > { %4426 = vmatpush.bf16.msrb.mxu2 %v7154_v63 }
 0xa1c   : > { %v3661_v25 = vmax.f32 %v3653_v41, 0.0 }
 0xa1e   : > { %v3668_v32 = vpack.c.bf16 %v3661_v25, %v3660_v59  ;;  %v7144_v59 = vld [vmem:[%s8541_s22 + $0x28] sm:$0xff] }
 0xa1f   : > { %v3637_v31 = vpop.f32.mrf.mxu0 }
 0xa20   : > { %v3638_v36 = vadd.f32 %v3637_v31, %v3609_v30 }
 0xa22   : > { %v3654_v37 = vadd.f32 %v3638_v36, %v2526_v33 }
 0xa24   : > { %v3662_v54 = vmax.f32 %v3654_v37, 0.0 }
 0xa27   : > { %v3639_v38 = vpop.f32.mrf.mxu0 }
 0xa28   : > { %v3640_v7 = vadd.f32 %v3639_v38, %v3611_v60 }
 0xa2a   : > { %v3655_v51 = vadd.f32 %v3640_v7, %v2528_v1 }
 0xa2c   : > { %v3663_v26 = vmax.f32 %v3655_v51, 0.0 }
 0xa2e   : > { %v3669_v49 = vpack.c.bf16 %v3663_v26, %v3662_v54  ;;  %v7145_v26 = vld [vmem:[%s8541_s22 + $0x30] sm:$0xff] }
 0xa2f   : > { %v3642_v44 = vpop.f32.mrf.mxu0 }
 0xa30   : > { %v3643_v46 = vadd.f32 %v3642_v44, %v3614_v39 }
 0xa32   : > { %v3656_v47 = vadd.f32 %v3643_v46, %v2531_v45 }
 0xa34   : > { %v3664_v8 = vmax.f32 %v3656_v47, 0.0 }
 0xa37   : > { %v3644_v48 = vpop.f32.mrf.mxu0 }
 0xa38   : > { %v3645_v35 = vadd.f32 %v3644_v48, %v3616_v50 }
 0xa3a   : > { %v3657_v62 = vadd.f32 %v3645_v35, %v2533_v23  ;;  %v7127_v35 = vld [vmem:[%s7510_s20 + $0x38] sm:$0xff]  ;;  %v7125_v23 = vld [vmem:[%s7510_s20 + $0x28] sm:$0xff] }
 0xa3c   : > { %v3665_v4 = vmax.f32 %v3657_v62, 0.0 }
 0xa3e   : > { %v3670_v53 = vpack.c.bf16 %v3665_v4, %v3664_v8  ;;  %v7120_v4 = vld [vmem:[%s7510_s20] sm:$0xff] }
 0xa3f   : > { %v3647_v55 = vpop.f32.mrf.mxu0  ;;  %v7128_v8 = vld [vmem:[%s7510_s20 + $0x40] sm:$0xff] }
 0xa40   : > { %v3648_v56 = vadd.f32 %v3647_v55, %v3619_v42 }
 0xa42   : > { %v3658_v57 = vadd.f32 %v3648_v56, %v2536_v5 }
 0xa44   : > { %v3666_v11 = vmax.f32 %v3658_v57, 0.0  ;;  %v7119_v57 = vld [vmem:[%s7460_s25 + $0x40] sm:$0xff] }
 0xa47   : > { %v3649_v6 = vpop.f32.mrf.mxu0 }
 0xa48   : > { %v3650_v61 = vadd.f32 %v3649_v6, %v3621_v58  ;;  %v7129_v58 = vld [vmem:[%s7530_s3] sm:$0xff]  ;;  %v7126_v6 = vld [vmem:[%s7510_s20 + $0x30] sm:$0xff] }
 0xa4a   : > { %v3659_v0 = vadd.f32 %v3650_v61, %v2538_v40  ;;  %v7124_v40 = vld [vmem:[%s7510_s20 + $0x20] sm:$0xff] }
 0xa4c   : > { %v3667_v34 = vmax.f32 %v3659_v0, 0.0 }
 0xa4e   : > { %v3671_v52 = vpack.c.bf16 %v3667_v34, %v3666_v11  ;;  %v7146_v11 = vld [vmem:[%s8541_s22 + $0x38] sm:$0xff]  ;;  %v7122_v34 = vld [vmem:[%s7510_s20 + $0x10] sm:$0xff] }
 0xa4f   : > { %4412 = vmatpush.bf16.msrb.mxu1 %v7146_v11 }
 0xa50   : > { %3766 = vmatpush.bf16.msrb.mxu0 %v3671_v52 }
 0xa53   : > { %4413 = vmatpush.bf16.msrb.mxu1 %v7145_v26 }
 0xa54   : > { %3767 = vmatpush.bf16.msrb.mxu0 %v3670_v53  ;;  %v7153_v53 = vld [vmem:[%s8541_s22 + $0x70] sm:$0xff] }
 0xa55   : > { %4427 = vmatpush.bf16.msrb.mxu2 %v7153_v53 }
 0xa57   : > { %4414 = vmatpush.bf16.msrb.mxu1 %v7144_v59  ;;  %v7156_v59 = vld [vmem:[%s8541_s22 + $0x88] sm:$0xff] }
 0xa58   : > { %3768 = vmatpush.bf16.msrb.mxu0 %v3669_v49 }
 0xa5c   : > { %3769 = vmatpush.bf16.msrb.mxu0 %v3668_v32 }
 0xa5f   : > { %6423 = vmatmul.msk.bf16.vlgmr.msrb.gmra.mxu0 %vm2880_vm13, %v7111_v43  ;;  %v7152_v43 = vld [vmem:[%s8541_s22 + $0x68] sm:$0xff] }
 0xa60   : > { %3939 = vmatpush.bf16.msra.mxu0 %v7129_v58  ;;  %4428 = vmatpush.bf16.msrb.mxu2 %v7152_v43  ;;  %v7138_v58 = vld [vmem:[%s8543_s26 + $0x40] sm:$0xff] }
 0xa61   : > { %v7155_v43 = vld [vmem:[%s8541_s22 + $0x80] sm:$0xff] }
 0xa64   : > { %4007 = vmatpush.bf16.msrb.mxu0 %v7127_v35 }
 0xa68   : > { %4008 = vmatpush.bf16.msrb.mxu0 %v7126_v6 }
 0xa6c   : > { %4009 = vmatpush.bf16.msrb.mxu0 %v7125_v23 }
 0xa6f   : > { %6424 = vmatmul.msk.bf16.gmra.mxu0 %vm2880_vm13, %v7112_v9 }
 0xa70   : > { %4010 = vmatpush.bf16.msrb.mxu0 %v7124_v40 }
 0xa74   : > { %4011 = vmatpush.bf16.msrb.mxu0 %v7123_v2 }
 0xa78   : > { %4012 = vmatpush.bf16.msrb.mxu0 %v7122_v34  ;;  %v7139_v34 = vld [vmem:[%s8541_s22] sm:$0xff] }
 0xa7c   : > { %4013 = vmatpush.bf16.msrb.mxu0 %v7121_v12 }
 0xa7f   : > { %6425 = vmatmul.msk.bf16.gmra.mxu0 %vm2880_vm13, %v7113_v10 }
 0xa80   : > { %4014 = vmatpush.bf16.msrb.mxu0 %v7120_v4  ;;  %v7147_v4 = vld [vmem:[%s8541_s22 + $0x40] sm:$0xff] }
 0xa8f   : > { %6426 = vmatmul.msk.bf16.gmra.mxu0 %vm2880_vm13, %v7114_v3 }
 0xa9f   : > { %6427 = vmatmul.msk.bf16.gmra.mxu0 %vm2880_vm13, %v7115_v13 }
 0xaaf   : > { %6428 = vmatmul.msk.bf16.gmra.mxu0 %vm2880_vm13, %v7116_v14 }
 0xabf   : > { %6429 = vmatmul.msk.bf16.gmra.mxu0 %vm2880_vm13, %v7117_v15 }
 0xacf   : > { %6430 = vmatmul.msk.bf16.gmra.mxu0 %vm2880_vm13, %v7118_v16 }
 0xadc   : > { %v3771_v17 = vpop.f32.mrf.mxu0 }
 0xadd   : > { %3816 = vst.msk [vmem:[#allocation4] sm:$0xff] %vm3178_vm14, %v3771_v17 }
 0xadf   : > { %6431 = vmatmul.msk.bf16.gmra.mxu0 %vm2880_vm13, %v7119_v57 }
 0xae4   : > { %v3773_v18 = vpop.f32.mrf.mxu0 }
 0xae5   : > { %3817 = vst.msk [vmem:[#allocation4 + $0x10] sm:$0xff] %vm3178_vm14, %v3773_v18 }
 0xaec   : > { %v3776_v19 = vpop.f32.mrf.mxu0 }
 0xaed   : > { %3820 = vrot.lane.b32.xlu1 %v3776_v19, %s7416_s23 }
 0xaf4   : > { %v3778_v20 = vpop.f32.mrf.mxu0 }
 0xaf5   : > { %3822 = vrot.lane.b32.xlu2 %v3778_v20, %s7416_s23  ;;  %s8542_s23 = sld [smem:[#allocation14_spill]] }
 0xafb   : > { %v7326_v14 = vld [vmem:[%s8542_s23] ss:$0 sm:$0xff]  ;;  %s8549_s23 = sld [smem:[#allocation22_spill]] }
 0xafc   : > { %v3781_v21 = vpop.f32.mrf.mxu0 }
 0xafd   : > { %3830 = vrot.lane.b32.xlu0 %v3781_v21, %s7418_s28 }
 0xb04   : > { %v3783_v22 = vpop.f32.mrf.mxu0 }
 0xb05   : > { %3832 = vrot.lane.b32.xlu1 %v3783_v22, %s7418_s28 }
 0xb0c   : > { %v3786_v24 = vpop.f32.mrf.mxu0 }
 0xb0d   : > { %3840 = vrot.lane.b32.xlu2 %v3786_v24, %s7420_s2  ;;  %v7130_v24 = vld [vmem:[%s8543_s26] sm:$0xff] }
 0xb14   : > { %v3788_v27 = vpop.f32.mrf.mxu0 }
 0xb15   : > { %3842 = vrot.lane.b32.xlu0 %v3788_v27, %s7420_s2  ;;  %v7131_v27 = vld [vmem:[%s8543_s26 + $0x8] sm:$0xff]  ;;  %s8545_s2 = sld [smem:[#allocation17_spill]] }
 0xb1c   : > { %v3791_v28 = vpop.f32.mrf.mxu0 }
 0xb1d   : > { %3850 = vrot.lane.b32.xlu1 %v3791_v28, %s7422_s10  ;;  %v7143_v28 = vld [vmem:[%s8541_s22 + $0x20] sm:$0xff] }
 0xb1e   : > { %4415 = vmatpush.bf16.msrb.mxu1 %v7143_v28 }
 0xb24   : > { %v3793_v29 = vpop.f32.mrf.mxu0 }
 0xb25   : > { %3852 = vrot.lane.b32.xlu2 %v3793_v29, %s7422_s10  ;;  %v7151_v29 = vld [vmem:[%s8541_s22 + $0x60] sm:$0xff] }
 0xb26   : > { %4429 = vmatpush.bf16.msrb.mxu2 %v7151_v29 }
 0xb2c   : > { %v3796_v30 = vpop.f32.mrf.mxu0 }
 0xb2d   : > { %3860 = vrot.lane.b32.xlu0 %v3796_v30, %s7424_s16  ;;  %v7132_v30 = vld [vmem:[%s8543_s26 + $0x10] sm:$0xff] }
 0xb34   : > { %v3798_v31 = vpop.f32.mrf.mxu0 }
 0xb35   : > { %3862 = vrot.lane.b32.xlu1 %v3798_v31, %s7424_s16  ;;  %v7133_v31 = vld [vmem:[%s8543_s26 + $0x18] sm:$0xff]  ;;  %s8547_s16 = sld [smem:[#allocation12_spill]] }
 0xb3c   : > { %v3801_v33 = vpop.f32.mrf.mxu0 }
 0xb3d   : > { %3870 = vrot.lane.b32.xlu2 %v3801_v33, %s7423_s11  ;;  %v7134_v33 = vld [vmem:[%s8543_s26 + $0x20] sm:$0xff] }
 0xb44   : > { %v3803_v36 = vpop.f32.mrf.mxu0 }
 0xb45   : > { %3872 = vrot.lane.b32.xlu0 %v3803_v36, %s7423_s11  ;;  %v7135_v36 = vld [vmem:[%s8543_s26 + $0x28] sm:$0xff] }
 0xb4c   : > { %v3806_v37 = vpop.f32.mrf.mxu0 }
 0xb4d   : > { %3880 = vrot.lane.b32.xlu1 %v3806_v37, %s7425_s0  ;;  %v7142_v37 = vld [vmem:[%s8541_s22 + $0x18] sm:$0xff] }
 0xb4e   : > { %4416 = vmatpush.bf16.msrb.mxu1 %v7142_v37 }
 0xb4f   : > { %v3823_v38 = vpop.permute.xlu2 %3822 }
 0xb50   : > { %3827 = vst.msk [vmem:[#allocation4 + $0x10] sm:$0xff] %vm3219_vm15, %v3823_v38  ;;  %v7136_v38 = vld [vmem:[%s8543_s26 + $0x30] sm:$0xff] }
 0xb54   : > { %v3808_v39 = vpop.f32.mrf.mxu0 }
 0xb55   : > { %3882 = vrot.lane.b32.xlu2 %v3808_v39, %s7425_s0  ;;  %v7150_v39 = vld [vmem:[%s8541_s22 + $0x58] sm:$0xff]  ;;  %s8548_s0 = sld [smem:[#allocation18_spill]] }
 0xb56   : > { %4430 = vmatpush.bf16.msrb.mxu2 %v7150_v39 }
 0xb5c   : > { %v3811_v51 = vpop.f32.mrf.mxu0 }
 0xb5d   : > { %3888 = vst.msk [vmem:[#allocation4 + $0x8] sm:$0xff] %vm3178_vm14, %v3811_v51 }
 0xb5f   : > { %v3821_v44 = vpop.permute.xlu1 %3820 }
 0xb60   : > { %3826 = vst.msk [vmem:[#allocation4] sm:$0xff] %vm3219_vm15, %v3821_v44  ;;  %v7137_v44 = vld [vmem:[%s8543_s26 + $0x38] sm:$0xff]  ;;  %vm4528_vm15 = vcmask 1044224  }
 0xb64   : > { %v3813_v52 = vpop.f32.mrf.mxu0  ;;  %v3891_v54 = vld [vmem:[#allocation4 + $0x8] sm:$0xff] }
 0xb65   : > { %3889 = vst.msk [vmem:[#allocation4 + $0x18] sm:$0xff] %vm3178_vm14, %v3813_v52 }
 0xb67   : > { %v3841_v46 = vpop.permute.xlu2 %3840 }
 0xb6c   : > { %v3893_v25 = vld [vmem:[#allocation4 + $0x18] sm:$0xff] }
 0xb6d   : > { %v3895_v49 = vpack.c.bf16 %v3893_v25, %v3891_v54 }
 0xb6f   : > { %v3831_v45 = vpop.permute.xlu0 %3830 }
 0xb70   : > { %3836 = vst.msk [vmem:[#allocation4] sm:$0xff] %vm3260_vm1, %v3831_v45 }
 0xb71   : > { %3846 = vst.msk [vmem:[#allocation4] sm:$0xff] %vm3301_vm2, %v3841_v46 }
 0xb77   : > { %v3833_v47 = vpop.permute.xlu1 %3832 }
 0xb78   : > { %3837 = vst.msk [vmem:[#allocation4 + $0x10] sm:$0xff] %vm3260_vm1, %v3833_v47  ;;  %vm4810_vm1 = vcmask 1041408  }
 0xb7f   : > { %v3853_v42 = vpop.permute.xlu2 %3852 }
 0xb87   : > { %v3843_v48 = vpop.permute.xlu0 %3842 }
 0xb88   : > { %3847 = vst.msk [vmem:[#allocation4 + $0x10] sm:$0xff] %vm3301_vm2, %v3843_v48  ;;  %vm4800_vm2 = vcmask 31744  }
 0xb89   : > { %3857 = vst.msk [vmem:[#allocation4 + $0x10] sm:$0xff] %vm3342_vm3, %v3853_v42 }
 0xb8f   : > { %v3851_v55 = vpop.permute.xlu1 %3850 }
 0xb90   : > { %3856 = vst.msk [vmem:[#allocation4] sm:$0xff] %vm3342_vm3, %v3851_v55  ;;  %v7141_v55 = vld [vmem:[%s8541_s22 + $0x10] sm:$0xff] }
 0xb91   : > { %4417 = vmatpush.bf16.msrb.mxu1 %v7141_v55 }
 0xb97   : > { %v3871_v56 = vpop.permute.xlu2 %3870 }
 0xb9f   : > { %v3861_v5 = vpop.permute.xlu0 %3860 }
 0xba0   : > { %3866 = vst.msk [vmem:[#allocation4] sm:$0xff] %vm3383_vm4, %v3861_v5 }
 0xba1   : > { %3876 = vst.msk [vmem:[#allocation4] sm:$0xff] %vm3424_vm5, %v3871_v56  ;;  %v7149_v56 = vld [vmem:[%s8541_s22 + $0x50] sm:$0xff] }
 0xba2   : > { %4431 = vmatpush.bf16.msrb.mxu2 %v7149_v56 }
 0xba7   : > { %v3863_v50 = vpop.permute.xlu1 %3862 }
 0xba8   : > { %3867 = vst.msk [vmem:[#allocation4 + $0x10] sm:$0xff] %vm3383_vm4, %v3863_v50 }
 0xbaf   : > { %v3883_v61 = vpop.permute.xlu2 %3882 }
 0xbb7   : > { %v3873_v60 = vpop.permute.xlu0 %3872 }
 0xbb8   : > { %3877 = vst.msk [vmem:[#allocation4 + $0x10] sm:$0xff] %vm3424_vm5, %v3873_v60  ;;  %v7140_v60 = vld [vmem:[%s8541_s22 + $0x8] sm:$0xff] }
 0xbb9   : > { %3887 = vst.msk [vmem:[#allocation4 + $0x10] sm:$0xff] %vm3465_vm6, %v3883_v61  ;;  %v7148_v61 = vld [vmem:[%s8541_s22 + $0x48] sm:$0xff]  ;;  %4418 = vmatpush.bf16.msrb.mxu1 %v7140_v60 }
 0xbba   : > { %4432 = vmatpush.bf16.msrb.mxu2 %v7148_v61 }
 0xbbd   : > { %4419 = vmatpush.bf16.msrb.mxu1 %v7139_v34  ;;  %v7173_v34 = vld [vmem:[%s8548_s0 + $0x70] sm:$0xff] }
 0xbbe   : > { %4433 = vmatpush.bf16.msrb.mxu2 %v7147_v4  ;;  %v7177_v4 = vld [vmem:[%s8549_s23] sm:$0xff] }
 0xbbf   : > { %v3881_v7 = vpop.permute.xlu1 %3880 }
 0xbc0   : > { %3886 = vst.msk [vmem:[#allocation4] sm:$0xff] %vm3465_vm6, %v3881_v7  ;;  %v3892_v0 = vld [vmem:[#allocation4 + $0x10] sm:$0xff]  ;;  %vm5731_vm6 = vcmask 8192  }
 0xbc1   : > { %4446 = vmatpush.bf16.msra.mxu1 %v7156_v59  ;;  %v7162_v59 = vld [vmem:[%s8548_s0 + $0x18] sm:$0xff] }
 0xbc5   : > { %4447 = vmatpush.bf16.msra.mxu1 %v7155_v43  ;;  %v7161_v43 = vld [vmem:[%s8548_s0 + $0x10] sm:$0xff] }
 0xbc7   : > { %v3890_v62 = vld [vmem:[#allocation4] sm:$0xff] }
 0xbc8   : > { %v3894_v1 = vpack.c.bf16 %v3892_v0, %v3890_v62 }
 0xbca   : > { %3921 = vrot.lane.b32.xlu0 %v3894_v1, %s7422_s10 }
 0xc3c   : > { %v3922_v41 = vpop.permute.xlu0 %3921 }
 0xc3d   : > { %6436 = vmatmul.msk.bf16.vlgmr.msra.gmra.mxu0 %vm3178_vm14, %v3922_v41 }
 0xc3e   : > { %4028 = vmatpush.bf16.msra.mxu0 %v7128_v8 }
 0xc4d   : > { %4015 = vmatmul.bf16.vlgmr.msrb.gmra.mxu0 %v3894_v1 }
 0xc5d   : > { %6473 = vmatmul.msk.bf16.vlgmr.msra.gmra.mxu0 %vm3178_vm14, %v3895_v49 }
 0xcba   : > { %v8275_v32 = vpop.f32.mrf.mxu0 }
 0xcc2   : > { %v8278_v9 = vpop.f32.mrf.mxu0 }
 0xcca   : > { %v4016_v10 = vpop.f32.mrf.mxu0 }
 0xccb   : > { %v4017_v15 = vadd.f32 %v7326_v14, %v4016_v10 }
 0xcd2   : > { %v4018_v3 = vpop.f32.mrf.mxu0 }
 0xcd3   : > { %v4019_v16 = vadd.f32 %v7326_v14, %v4018_v3 }
 0xcda   : > { %v4030_v13 = vpop.f32.mrf.mxu0 }
 0xcdb   : > { %v4031_v17 = vadd.f32 %v4030_v13, %v4017_v15 }
 0xcdd   : > { %v4035_v20 = vmax.f32 %v4031_v17, 0.0 }
 0xce2   : > { %v4032_v18 = vpop.f32.mrf.mxu0 }
 0xce3   : > { %v4033_v19 = vadd.f32 %v4032_v18, %v4019_v16 }
 0xce5   : > { %v4036_v21 = vmax.f32 %v4033_v19, 0.0 }
 0xce7   : > { %v4037_v22 = vpack.c.bf16 %v4036_v21, %v4035_v20 }
 0xce9   : > { %4135 = vmatpush.bf16.msrb.mxu0 %v4037_v22 }
 0xcec   : > { %6510 = vmatmul.msk.bf16.vlgmr.msrb.gmra.mxu0 %vm3178_vm14, %v7130_v24  ;;  %v7327_v24 = vld [vmem:[%s8544_s1] ss:$0 sm:$0xff]  ;;  %s8553_s1 = sld [smem:[#allocation21_spill]] }
 0xcfc   : > { %6511 = vmatmul.msk.bf16.gmra.mxu0 %vm3178_vm14, %v7131_v27 }
 0xd0c   : > { %6512 = vmatmul.msk.bf16.gmra.mxu0 %vm3178_vm14, %v7132_v30 }
 0xd1c   : > { %6513 = vmatmul.msk.bf16.gmra.mxu0 %vm3178_vm14, %v7133_v31  ;;  %v7325_v31 = vld [vmem:[%s8545_s2] ss:$0 sm:$0xff]  ;;  %s8554_s2 = sld [smem:[#allocation23_spill]] }
 0xd1d   : > { %v3942_v39 = vadd.f32 %v7325_v31, %v8275_v32  ;;  %v7187_v32 = vld [vmem:[%s8546_s7 + $0x30] sm:$0xff] }
 0xd2c   : > { %6514 = vmatmul.msk.bf16.gmra.mxu0 %vm3178_vm14, %v7134_v33  ;;  %v7188_v33 = vld [vmem:[%s8546_s7 + $0x38] sm:$0xff] }
 0xd2d   : > { %5456 = vmatpush.bf16.msrb.mxu3 %v7188_v33 }
 0xd31   : > { %5457 = vmatpush.bf16.msrb.mxu3 %v7187_v32 }
 0xd3c   : > { %6515 = vmatmul.msk.bf16.gmra.mxu0 %vm3178_vm14, %v7135_v36 }
 0xd4c   : > { %6516 = vmatmul.msk.bf16.gmra.mxu0 %vm3178_vm14, %v7136_v38 }
 0xd5c   : > { %6517 = vmatmul.msk.bf16.gmra.mxu0 %vm3178_vm14, %v7137_v44 }
 0xd69   : > { %v4137_v45 = vpop.f32.mrf.mxu0 }
 0xd6a   : > { %4183 = vst.msk [vmem:[#allocation5] sm:$0xff] %vm4182_vm7, %v4137_v45 }
 0xd6c   : > { %6518 = vmatmul.msk.bf16.gmra.mxu0 %vm3178_vm14, %v7138_v58  ;;  %v4463_v58 = vld [vmem:[%s8547_s16 + $0x10] sm:$0x3] }
 0xd71   : > { %v4139_v46 = vpop.f32.mrf.mxu0 }
 0xd72   : > { %4184 = vst.msk [vmem:[#allocation5 + $0x18] sm:$0xff] %vm4182_vm7, %v4139_v46  ;;  %v3944_v46 = vadd.f32 %v7325_v31, %v8278_v9  ;;  %v4473_v9 = vunpack.c.l.b16 %v4463_v58 }
 0xd79   : > { %v4142_v47 = vpop.f32.mrf.mxu0 }
 0xd7a   : > { %4187 = vrot.lane.b32.xlu1 %v4142_v47, %s7418_s28 }
 0xd81   : > { %v4144_v48 = vpop.f32.mrf.mxu0 }
 0xd82   : > { %4189 = vrot.lane.b32.xlu2 %v4144_v48, %s7418_s28 }
 0xd89   : > { %v4147_v42 = vpop.f32.mrf.mxu0 }
 0xd8a   : > { %4198 = vrot.lane.b32.xlu0 %v4147_v42, %s7422_s10 }
 0xd91   : > { %v4149_v5 = vpop.f32.mrf.mxu0 }
 0xd92   : > { %4200 = vrot.lane.b32.xlu1 %v4149_v5, %s7422_s10 }
 0xd99   : > { %v4152_v57 = vpop.f32.mrf.mxu0 }
 0xd9a   : > { %4209 = vrot.lane.b32.xlu2 %v4152_v57, %s7423_s11  ;;  %v7157_v57 = vld [vmem:[%s8547_s16] sm:$0xff] }
 0xda1   : > { %v4154_v50 = vpop.f32.mrf.mxu0 }
 0xda2   : > { %4211 = vrot.lane.b32.xlu0 %v4154_v50, %s7423_s11  ;;  %v7158_v50 = vld [vmem:[%s8547_s16 + $0x8] sm:$0xff] }
 0xda9   : > { %v4157_v35 = vpop.f32.mrf.mxu0 }
 0xdaa   : > { %4218 = vst.msk [vmem:[#allocation5 + $0x8] sm:$0xff] %vm4182_vm7, %v4157_v35 }
 0xdb1   : > { %v4159_v6 = vpop.f32.mrf.mxu0 }
 0xdb2   : > { %4219 = vst.msk [vmem:[#allocation5 + $0x20] sm:$0xff] %vm4182_vm7, %v4159_v6  ;;  %v4476_v6 = vpack.c.b16 %v4473_v9, %v4473_v9  ;;  %v7212_v9 = vld [vmem:[%s8546_s7 + $0xf8] sm:$0xff] }
 0xdb3   : > { %5495 = vmatpush.bf16.msra.mxu0 %v7212_v9 }
 0xdb9   : > { %v4162_v23 = vpop.f32.mrf.mxu0 }
 0xdba   : > { %4222 = vrot.lane.b32.xlu1 %v4162_v23, %s7418_s28  ;;  %v7186_v23 = vld [vmem:[%s8546_s7 + $0x28] sm:$0xff] }
 0xdbb   : > { %5458 = vmatpush.bf16.msrb.mxu3 %v7186_v23  ;;  %v7211_v23 = vld [vmem:[%s8546_s7 + $0xf0] sm:$0xff] }
 0xdbc   : > { %5496 = vmatpush.bf16.msra.mxu0 %v7211_v23  ;;  %v7252_v23 = vld [vmem:[%s8546_s7 + $0x238] sm:$0xff] }
 0xdc1   : > { %v4164_v40 = vpop.f32.mrf.mxu0 }
 0xdc2   : > { %4224 = vrot.lane.b32.xlu2 %v4164_v40, %s7418_s28 }
 0xdc9   : > { %v4167_v7 = vpop.f32.mrf.mxu0 }
 0xdca   : > { %4232 = vrot.lane.b32.xlu0 %v4167_v7, %s7422_s10 }
 0xdd1   : > { %v4169_v62 = vpop.f32.mrf.mxu0 }
 0xdd2   : > { %4234 = vrot.lane.b32.xlu1 %v4169_v62, %s7422_s10 }
 0xdd9   : > { %v4172_v0 = vpop.f32.mrf.mxu0 }
 0xdda   : > { %4242 = vrot.lane.b32.xlu2 %v4172_v0, %s7423_s11 }
 0xddc   : > { %v4190_v1 = vpop.permute.xlu2 %4189 }
 0xddd   : > { %4195 = vst.msk [vmem:[#allocation5 + $0x18] sm:$0xff] %vm4193_vm8, %v4190_v1 }
 0xde1   : > { %v4174_v2 = vpop.f32.mrf.mxu0 }
 0xde2   : > { %4244 = vrot.lane.b32.xlu0 %v4174_v2, %s7423_s11  ;;  %v7174_v2 = vld [vmem:[%s8548_s0 + $0x78] sm:$0xff] }
 0xde9   : > { %v4177_v54 = vpop.f32.mrf.mxu0 }
 0xdea   : > { %4250 = vst.msk [vmem:[#allocation5 + $0x10] sm:$0xff] %vm4182_vm7, %v4177_v54  ;;  %v7168_v54 = vld [vmem:[%s8548_s0 + $0x48] sm:$0xff] }
 0xdec   : > { %v4188_v11 = vpop.permute.xlu1 %4187 }
 0xded   : > { %4194 = vst.msk [vmem:[#allocation5] sm:$0xff] %vm4193_vm8, %v4188_v11  ;;  %v7178_v11 = vld [vmem:[%s8549_s23 + $0x8] sm:$0xff] }
 0xdf1   : > { %v4179_v49 = vpop.f32.mrf.mxu0  ;;  %v4254_v10 = vld [vmem:[#allocation5 + $0x10] sm:$0xff] }
 0xdf2   : > { %4251 = vst.msk [vmem:[#allocation5 + $0x28] sm:$0xff] %vm4182_vm7, %v4179_v49  ;;  %v7167_v49 = vld [vmem:[%s8548_s0 + $0x40] sm:$0xff] }
 0xdf4   : > { %v4210_v51 = vpop.permute.xlu2 %4209 }
 0xdf9   : > { %v4257_v3 = vld [vmem:[#allocation5 + $0x28] sm:$0xff] }
 0xdfa   : > { %v4260_v13 = vpack.c.bf16 %v4257_v3, %v4254_v10  ;;  %v7160_v10 = vld [vmem:[%s8548_s0 + $0x8] sm:$0xff]  ;;  %v7159_v3 = vld [vmem:[%s8548_s0] sm:$0xff] }
 0xdfc   : > { %v4199_v12 = vpop.permute.xlu0 %4198 }
 0xdfd   : > { %4205 = vst.msk [vmem:[#allocation5] sm:$0xff] %vm4204_vm9, %v4199_v12  ;;  %v7172_v12 = vld [vmem:[%s8548_s0 + $0x68] sm:$0xff] }
 0xdfe   : > { %4216 = vst.msk [vmem:[#allocation5] sm:$0xff] %vm4215_vm10, %v4210_v51  ;;  %v7171_v51 = vld [vmem:[%s8548_s0 + $0x60] sm:$0xff] }
 0xe04   : > { %v4201_v52 = vpop.permute.xlu1 %4200 }
 0xe05   : > { %4206 = vst.msk [vmem:[#allocation5 + $0x18] sm:$0xff] %vm4204_vm9, %v4201_v52  ;;  %v4252_v8 = vld [vmem:[#allocation5] sm:$0xff]  ;;  %v7166_v52 = vld [vmem:[%s8548_s0 + $0x38] sm:$0xff] }
 0xe14   : > { %v4212_v63 = vpop.permute.xlu0 %4211 }
 0xe15   : > { %4217 = vst.msk [vmem:[#allocation5 + $0x18] sm:$0xff] %vm4215_vm10, %v4212_v63  ;;  %v7165_v63 = vld [vmem:[%s8548_s0 + $0x30] sm:$0xff] }
 0xe1c   : > { %v4255_v41 = vld [vmem:[#allocation5 + $0x18] sm:$0xff]  ;;  %v4225_v26 = vpop.permute.xlu2 %4224 }
 0xe1d   : > { %v4258_v53 = vpack.c.bf16 %v4255_v41, %v4252_v8  ;;  %4229 = vst.msk [vmem:[#allocation5 + $0x20] sm:$0xff] %vm4193_vm8, %v4225_v26  ;;  %v7170_v8 = vld [vmem:[%s8548_s0 + $0x58] sm:$0xff]  ;;  %v7169_v41 = vld [vmem:[%s8548_s0 + $0x50] sm:$0xff]  ;;  %v7164_v26 = vld [vmem:[%s8548_s0 + $0x28] sm:$0xff] }
 0xe1f   : > { %4420 = vmatmul.bf16.vlgmr.msrb.gmra.mxu1 %v4258_v53  ;;  %v7185_v53 = vld [vmem:[%s8546_s7 + $0x20] sm:$0xff] }
 0xe20   : > { %4619 = vmatpush.bf16.msrb.mxu1 %v7178_v11  ;;  %5459 = vmatpush.bf16.msrb.mxu3 %v7185_v53  ;;  %v7194_v11 = vld [vmem:[%s8546_s7 + $0x68] sm:$0xff]  ;;  %v7216_v53 = vld [vmem:[%s8546_s7 + $0x118] sm:$0xff] }
 0xe24   : > { %4620 = vmatpush.bf16.msrb.mxu1 %v7177_v4 }
 0xe2c   : > { %v4223_v25 = vpop.permute.xlu1 %4222 }
 0xe2d   : > { %4228 = vst.msk [vmem:[#allocation5 + $0x8] sm:$0xff] %vm4193_vm8, %v4223_v25  ;;  %v7163_v25 = vld [vmem:[%s8548_s0 + $0x20] sm:$0xff] }
 0xe2f   : > { %6591 = vmatmul.msk.bf16.vlgmr.msra.gmra.mxu1 %vm4182_vm7, %v4260_v13 }
 0xe30   : > { %4741 = vmatpush.bf16.msra.mxu1 %v7166_v52  ;;  %v7193_v52 = vld [vmem:[%s8546_s7 + $0x60] sm:$0xff] }
 0xe34   : > { %v4243_v15 = vpop.permute.xlu2 %4242  ;;  %4742 = vmatpush.bf16.msra.mxu1 %v7165_v63  ;;  %v7200_v63 = vld [vmem:[%s8546_s7 + $0x98] sm:$0xff] }
 0xe38   : > { %4743 = vmatpush.bf16.msra.mxu1 %v7164_v26  ;;  %v7199_v26 = vld [vmem:[%s8546_s7 + $0x90] sm:$0xff] }
 0xe3c   : > { %v4233_v14 = vpop.permute.xlu0 %4232  ;;  %4744 = vmatpush.bf16.msra.mxu1 %v7163_v25 }
 0xe3d   : > { %4238 = vst.msk [vmem:[#allocation5 + $0x8] sm:$0xff] %vm4204_vm9, %v4233_v14 }
 0xe3e   : > { %4248 = vst.msk [vmem:[#allocation5 + $0x8] sm:$0xff] %vm4215_vm10, %v4243_v15 }
 0xe40   : > { %4745 = vmatpush.bf16.msra.mxu1 %v7162_v59  ;;  %v7191_v59 = vld [vmem:[%s8546_s7 + $0x50] sm:$0xff] }
 0xe44   : > { %v4235_v16 = vpop.permute.xlu1 %4234  ;;  %4746 = vmatpush.bf16.msra.mxu1 %v7161_v43  ;;  %v7208_v43 = vld [vmem:[%s8546_s7 + $0xd8] sm:$0xff] }
 0xe45   : > { %4239 = vst.msk [vmem:[#allocation5 + $0x20] sm:$0xff] %vm4204_vm9, %v4235_v16  ;;  %v4253_v18 = vld [vmem:[#allocation5 + $0x8] sm:$0xff] }
 0xe48   : > { %4747 = vmatpush.bf16.msra.mxu1 %v7160_v10  ;;  %v7190_v10 = vld [vmem:[%s8546_s7 + $0x48] sm:$0xff] }
 0xe4c   : > { %4748 = vmatpush.bf16.msra.mxu1 %v7159_v3  ;;  %v7207_v3 = vld [vmem:[%s8546_s7 + $0xd0] sm:$0xff] }
 0xe54   : > { %v4245_v17 = vpop.permute.xlu0 %4244 }
 0xe55   : > { %4249 = vst.msk [vmem:[#allocation5 + $0x20] sm:$0xff] %vm4215_vm10, %v4245_v17 }
 0xe5c   : > { %v4256_v19 = vld [vmem:[#allocation5 + $0x20] sm:$0xff] }
 0xe5d   : > { %v4259_v20 = vpack.c.bf16 %v4256_v19, %v4253_v18 }
 0xe5f   : > { %4434 = vmatmul.bf16.vlgmr.msrb.gmra.mxu2 %v4259_v20 }
 0xe9c   : > { %v4421_v21 = vpop.f32.mrf.mxu1 }
 0xe9d   : > { %v4422_v29 = vadd.f32 %v7327_v24, %v4421_v21 }
 0xea4   : > { %v4423_v22 = vpop.f32.mrf.mxu1 }
 0xea5   : > { %v4424_v36 = vadd.f32 %v7327_v24, %v4423_v22  ;;  %v7176_v22 = vld [vmem:[%s8548_s0 + $0x88] sm:$0xff] }
 0xeac   : > { %v4449_v28 = vpop.f32.mrf.mxu1 }
 0xeb4   : > { %v4451_v45 = vpop.f32.mrf.mxu1 }
 0xee2   : > { %v4435_v27 = vpop.f32.mrf.mxu2 }
 0xee3   : > { %v4436_v30 = vadd.f32 %v4435_v27, %v4422_v29  ;;  %v7184_v27 = vld [vmem:[%s8546_s7 + $0x18] sm:$0xff] }
 0xee4   : > { %5460 = vmatpush.bf16.msrb.mxu3 %v7184_v27  ;;  %v7226_v27 = vld [vmem:[%s8546_s7 + $0x168] sm:$0xff] }
 0xee5   : > { %v4450_v37 = vadd.f32 %v4449_v28, %v4436_v30  ;;  %v7175_v28 = vld [vmem:[%s8548_s0 + $0x80] sm:$0xff] }
 0xee7   : > { %v4454_v47 = vadd.f32 %v4450_v37, %v3942_v39 }
 0xee9   : > { %v4456_v55 = vmax.f32 %v4454_v47, 0.0 }
 0xeea   : > { %v4437_v38 = vpop.f32.mrf.mxu2 }
 0xeeb   : > { %v4438_v44 = vadd.f32 %v4437_v38, %v4424_v36  ;;  %v7183_v36 = vld [vmem:[%s8546_s7 + $0x10] sm:$0xff] }
 0xeec   : > { %5461 = vmatpush.bf16.msrb.mxu3 %v7183_v36  ;;  %v7242_v36 = vld [vmem:[%s8546_s7 + $0x1e8] sm:$0xff] }
 0xeed   : > { %v4452_v48 = vadd.f32 %v4451_v45, %v4438_v44 }
 0xeef   : > { %v4455_v42 = vadd.f32 %v4452_v48, %v3944_v46 }
 0xef1   : > { %v4457_v5 = vmax.f32 %v4455_v42, 0.0 }
 0xef3   : > { %v4458_v56 = vpack.c.bf16 %v4457_v5, %v4456_v55 }
 0xef5   : > { %4493 = vmatpush.bf16.msra.mxu2 %v4458_v56 }
 0xef8   : > { %6600 = vmatmul.msk.bf16.vlgmr.msra.gmra.mxu2 %vm3178_vm14, %v7157_v57 }
 0xef9   : > { %4754 = vmatpush.bf16.msrb.mxu2 %v7174_v2  ;;  %v7219_v2 = vld [vmem:[%s8546_s7 + $0x130] sm:$0xff] }
 0xefd   : > { %4755 = vmatpush.bf16.msrb.mxu2 %v7173_v34  ;;  %v7209_v34 = vld [vmem:[%s8546_s7 + $0xe0] sm:$0xff] }
 0xf01   : > { %4756 = vmatpush.bf16.msrb.mxu2 %v7172_v12  ;;  %v7201_v12 = vld [vmem:[%s8546_s7 + $0xa0] sm:$0xff] }
 0xf05   : > { %4757 = vmatpush.bf16.msrb.mxu2 %v7171_v51  ;;  %v7218_v51 = vld [vmem:[%s8546_s7 + $0x128] sm:$0xff] }
 0xf08   : > { %6601 = vmatmul.msk.bf16.gmra.mxu2 %vm3178_vm14, %v7158_v50 }
 0xf09   : > { %4758 = vmatpush.bf16.msrb.mxu2 %v7170_v8  ;;  %v7217_v8 = vld [vmem:[%s8546_s7 + $0x120] sm:$0xff] }
 0xf0d   : > { %4759 = vmatpush.bf16.msrb.mxu2 %v7169_v41  ;;  %v7192_v41 = vld [vmem:[%s8546_s7 + $0x58] sm:$0xff] }
 0xf11   : > { %4760 = vmatpush.bf16.msrb.mxu2 %v7168_v54 }
 0xf15   : > { %4761 = vmatpush.bf16.msrb.mxu2 %v7167_v49 }
 0xf18   : > { %6602 = vmatmul.msk.bf16.gmra.mxu2 %vm3178_vm14, %v4476_v6  ;;  %vm4522_vm14 = vcmask 781824   ;;  %v7204_v6 = vld [vmem:[%s8546_s7 + $0xb8] sm:$0xff] }
 0xf7b   : > { %v4495_v35 = vpop.f32.mrf.mxu2 }
 0xf7c   : > { %4510 = vst.msk [vmem:[#allocation6] sm:$0xf] %vm4509_vm11, %v4495_v35  ;;  %v4512_v62 = vrot.slane %v4495_v35, 4  ;;  %v7182_v35 = vld [vmem:[%s8546_s7 + $0x8] sm:$0xff] }
 0xf7d   : > { %5462 = vmatpush.bf16.msrb.mxu3 %v7182_v35  ;;  %v7237_v35 = vld [vmem:[%s8546_s7 + $0x1c0] sm:$0xff] }
 0xf83   : > { %v4497_v40 = vpop.f32.mrf.mxu2 }
 0xf84   : > { %v4524_v1 = vrot.slane %v4497_v40, 4 }
 0xf8b   : > { %v4500_v60 = vpop.f32.mrf.mxu2 }
 0xf8c   : > { %4530 = vst.msk [vmem:[#allocation6 + $0x8] sm:$0xf] %vm4509_vm11, %v4500_v60  ;;  %v4532_v61 = vrot.slane %v4500_v60, 4  ;;  %v7196_v60 = vld [vmem:[%s8546_s7 + $0x78] sm:$0xff] }
 0xf8e   : > { %4533 = vrot.lane.b32.xlu1 %v4532_v61, %s7418_s28  ;;  %v7203_v61 = vld [vmem:[%s8546_s7 + $0xb0] sm:$0xff] }
 0xf93   : > { %v4502_v7 = vpop.f32.mrf.mxu2 }
 0xf94   : > { %v4542_v0 = vrot.slane %v4502_v7, 4  ;;  %4538 = vrot.lane.b32.xlu2 %v4502_v7, %s7422_s10  ;;  %v7220_v7 = vld [vmem:[%s8546_s7 + $0x138] sm:$0xff] }
 0xf96   : > { %4513 = vrot.lane.b32.xlu1 %v4512_v62, %s7418_s28  ;;  %4543 = vrot.lane.b32.xlu0 %v4542_v0, %s7423_s11  ;;  %s8550_s28 = sld [smem:[#allocation19_spill]]  ;;  %v7195_v62 = vld [vmem:[%s8546_s7 + $0x70] sm:$0xff]  ;;  %v7210_v0 = vld [vmem:[%s8546_s7 + $0xe8] sm:$0xff] }
 0xf97   : > { %5497 = vmatpush.bf16.msra.mxu0 %v7210_v0 }
 0xf9b   : > { %v4505_v15 = vpop.f32.mrf.mxu2  ;;  %5498 = vmatpush.bf16.msra.mxu0 %v7209_v34 }
 0xf9c   : > { %4519 = vrot.lane.b32.xlu2 %v4497_v40, %s7422_s10  ;;  %4547 = vst.msk [vmem:[#allocation6 + $0x10] sm:$0xf] %vm4509_vm11, %v4505_v15  ;;  %s8551_s10 = sld [smem:[#allocation13_spill]]  ;;  %v7329_v46 = vld [vmem:[%s8550_s28] ss:$0 sm:$0xff]  ;;  %v7198_v15 = vld [vmem:[%s8546_s7 + $0x88] sm:$0xff] }
 0xf9d   : > { %v7181_v40 = vld [vmem:[%s8546_s7] sm:$0xff]  ;;  %s8555_s28 = sld [smem:[#allocation25_spill]] }
 0xf9e   : > { %4525 = vrot.lane.b32.xlu0 %v4524_v1, %s7423_s11  ;;  %5463 = vmatpush.bf16.msrb.mxu3 %v7181_v40  ;;  %v7202_v1 = vld [vmem:[%s8546_s7 + $0xa8] sm:$0xff]  ;;  %s8552_s11 = sld [smem:[#allocation24_spill]] }
 0xf9f   : > { %5499 = vmatpush.bf16.msra.mxu0 %v7208_v43 }
 0xfa2   : > { %v7179_v32 = vld [vmem:[%s8551_s10] sm:$0xff]  ;;  %5508 = vmatpush.bf16.msra.mxu3 %v7220_v7  ;;  %v7180_v4 = vld [vmem:[%s8551_s10 + $0x8] sm:$0xff]  ;;  %v4786_v54 = vld [vmem:[%s8551_s10 + $0x10] sm:$0x3] }
 0xfa3   : > { %v4507_v19 = vpop.f32.mrf.mxu2  ;;  %v4550_v31 = vld [vmem:[#allocation6 + $0x10] sm:$0xf]  ;;  %v4796_v25 = vunpack.c.l.b16 %v4786_v54  ;;  %5500 = vmatpush.bf16.msra.mxu0 %v7207_v3 }
 0xfa4   : > { %v4553_v33 = vpack.c.bf16 %v4550_v31, %v4550_v31  ;;  %v7197_v19 = vld [vmem:[%s8546_s7 + $0x80] sm:$0xff] }
 0xfa5   : > { %v4799_v49 = vpack.c.b16 %v4796_v25, %v4796_v25  ;;  %v7213_v31 = vld [vmem:[%s8546_s7 + $0x100] sm:$0xff]  ;;  %v7247_v25 = vld [vmem:[%s8546_s7 + $0x210] sm:$0xff] }
 0xfa6   : > { %5509 = vmatpush.bf16.msra.mxu3 %v7219_v2 }
 0xfaa   : > { %5510 = vmatpush.bf16.msra.mxu3 %v7218_v51 }
 0xfae   : > { %5511 = vmatpush.bf16.msra.mxu3 %v7217_v8  ;;  %v7248_v8 = vld [vmem:[%s8546_s7 + $0x218] sm:$0xff] }
 0xfb2   : > { %5512 = vmatpush.bf16.msra.mxu3 %v7216_v53 }
 0xfee   : > { %v4539_v13 = vpop.permute.xlu2 %4538 }
 0xff6   : > { %v4520_v18 = vpop.permute.xlu2 %4519 }
0x1000   : > { %v4534_v14 = vpop.permute.xlu1 %4533 }
0x1001   : > { %4536 = vst.msk [vmem:[#allocation6 + $0x8] sm:$0xf] %vm4516_vm12, %v4534_v14  ;;  %v7228_v14 = vld [vmem:[%s8546_s7 + $0x178] sm:$0xff] }
0x1002   : > { %4541 = vst.msk [vmem:[#allocation6 + $0x8] sm:$0xf] %vm4522_vm14, %v4539_v13  ;;  %v7189_v13 = vld [vmem:[%s8546_s7 + $0x40] sm:$0xff] }
0x1008   : > { %v4514_v16 = vpop.permute.xlu1 %4513  ;;  %v4544_v17 = vpop.permute.xlu0 %4543 }
0x1009   : > { %4517 = vst.msk [vmem:[#allocation6] sm:$0xf] %vm4516_vm12, %v4514_v16  ;;  %v7206_v16 = vld [vmem:[%s8546_s7 + $0xc8] sm:$0xff] }
0x100a   : > { %4546 = vst.msk [vmem:[#allocation6 + $0x8] sm:$0xf] %vm4528_vm15, %v4544_v17  ;;  %v7227_v17 = vld [vmem:[%s8546_s7 + $0x170] sm:$0xff]  ;;  %5501 = vmatpush.bf16.msra.mxu0 %v7206_v16 }
0x100b   : > { %4523 = vst.msk [vmem:[#allocation6] sm:$0xf] %vm4522_vm14, %v4520_v18  ;;  %v7215_v18 = vld [vmem:[%s8546_s7 + $0x110] sm:$0xff] }
0x100c   : > { %5513 = vmatpush.bf16.msra.mxu3 %v7215_v18  ;;  %v5605_v18 = vld [vmem:[%s8552_s11 + $0x78] sm:$0xff] }
0x1010   : > { %v4526_v20 = vpop.permute.xlu0 %4525 }
0x1011   : > { %v4549_v21 = vld [vmem:[#allocation6 + $0x8] sm:$0xf]  ;;  %4529 = vst.msk [vmem:[#allocation6] sm:$0xf] %vm4528_vm15, %v4526_v20 }
0x1012   : > { %v4552_v24 = vpack.c.bf16 %v4549_v21, %v4549_v21  ;;  %v7236_v20 = vld [vmem:[%s8546_s7 + $0x1b8] sm:$0xff]  ;;  %v7214_v21 = vld [vmem:[%s8546_s7 + $0x108] sm:$0xff] }
0x1013   : > { %5514 = vmatpush.bf16.msra.mxu3 %v7214_v21  ;;  %v5602_v21 = vld [vmem:[%s8552_s11 + $0x60] sm:$0xff] }
0x1014   : > { %6611 = vmatmul.msk.bf16.vlgmr.msrb.gmra.mxu1 %vm4182_vm7, %v4552_v24  ;;  %4762 = vmatmul.bf16.vlgmr.msrb.gmra.mxu2 %v4552_v24  ;;  %v7244_v24 = vld [vmem:[%s8546_s7 + $0x1f8] sm:$0xff] }
0x1015   : > { %4773 = vmatpush.bf16.msrb.mxu1 %v7176_v22  ;;  %v7205_v22 = vld [vmem:[%s8546_s7 + $0xc0] sm:$0xff] }
0x1016   : > { %5502 = vmatpush.bf16.msra.mxu0 %v7205_v22 }
0x1017   : > { %5515 = vmatpush.bf16.msra.mxu3 %v7213_v31 }
0x1018   : > { %v4548_v29 = vld [vmem:[#allocation6] sm:$0xf] }
0x1019   : > { %4774 = vmatpush.bf16.msrb.mxu1 %v7175_v28  ;;  %v4551_v30 = vpack.c.bf16 %v4548_v29, %v4548_v29  ;;  %v7235_v28 = vld [vmem:[%s8546_s7 + $0x1b0] sm:$0xff] }
0x101a   : > { %5547 = vmatpush.bf16.msrb.mxu0 %v7244_v24  ;;  %v7243_v29 = vld [vmem:[%s8546_s7 + $0x1f0] sm:$0xff]  ;;  %v5601_v24 = vld [vmem:[%s8552_s11 + $0x58] sm:$0xff] }
0x101e   : > { %5548 = vmatpush.bf16.msrb.mxu0 %v7243_v29  ;;  %v5599_v29 = vld [vmem:[%s8552_s11 + $0x48] sm:$0xff] }
0x1022   : > { %5549 = vmatpush.bf16.msrb.mxu0 %v7242_v36  ;;  %v5598_v36 = vld [vmem:[%s8552_s11 + $0x40] sm:$0xff] }
0x1024   : > { %4749 = vmatmul.bf16.vlgmr.msra.gmra.mxu1 %v4551_v30  ;;  %v7225_v30 = vld [vmem:[%s8546_s7 + $0x160] sm:$0xff] }
0x1025   : > { %5469 = vmatpush.bf16.msra.mxu1 %v7196_v60 }
0x1029   : > { %5470 = vmatpush.bf16.msra.mxu1 %v7195_v62  ;;  %v7251_v62 = vld [vmem:[%s8546_s7 + $0x230] sm:$0xff] }
0x102d   : > { %5471 = vmatpush.bf16.msra.mxu1 %v7194_v11 }
0x1031   : > { %5472 = vmatpush.bf16.msra.mxu1 %v7193_v52 }
0x1034   : > { %6684 = vmatmul.msk.bf16.vlgmr.msrb.gmra.mxu1 %vm4182_vm7, %v4553_v33  ;;  %v7234_v33 = vld [vmem:[%s8546_s7 + $0x1a8] sm:$0xff] }
0x1035   : > { %5473 = vmatpush.bf16.msra.mxu1 %v7192_v41 }
0x1039   : > { %5474 = vmatpush.bf16.msra.mxu1 %v7191_v59  ;;  %v7246_v59 = vld [vmem:[%s8546_s7 + $0x208] sm:$0xff] }
0x103d   : > { %5475 = vmatpush.bf16.msra.mxu1 %v7190_v10 }
0x1041   : > { %5476 = vmatpush.bf16.msra.mxu1 %v7189_v13 }
0x1045   : > { %5521 = vmatpush.bf16.msrb.mxu1 %v7228_v14  ;;  %v7245_v14 = vld [vmem:[%s8546_s7 + $0x200] sm:$0xff] }
0x1049   : > { %5522 = vmatpush.bf16.msrb.mxu1 %v7227_v17 }
0x104d   : > { %5523 = vmatpush.bf16.msrb.mxu1 %v7226_v27 }
0x1051   : > { %5524 = vmatpush.bf16.msrb.mxu1 %v7225_v30 }
0x1091   : > { %v8389_v37 = vpop.f32.mrf.mxu1 }
0x1097   : > { %v4763_v38 = vpop.f32.mrf.mxu2 }
0x1099   : > { %v4624_v39 = vpop.f32.mrf.mxu1 }
0x109a   : > { %v7233_v39 = vld [vmem:[%s8546_s7 + $0x1a0] sm:$0xff] }
0x109f   : > { %v4765_v44 = vpop.f32.mrf.mxu2 }
0x10a0   : > { %v7241_v44 = vld [vmem:[%s8546_s7 + $0x1e0] sm:$0xff] }
0x10a1   : > { %v4750_v45 = vpop.f32.mrf.mxu1  ;;  %5550 = vmatpush.bf16.msrb.mxu0 %v7241_v44 }
0x10a2   : > { %v4751_v48 = vadd.f32 %v7329_v46, %v4750_v45  ;;  %v7223_v45 = vld [vmem:[%s8546_s7 + $0x150] sm:$0xff]  ;;  %v7232_v46 = vld [vmem:[%s8546_s7 + $0x198] sm:$0xff] }
0x10a4   : > { %v4764_v42 = vadd.f32 %v4763_v38, %v4751_v48  ;;  %v7224_v38 = vld [vmem:[%s8546_s7 + $0x158] sm:$0xff]  ;;  %v7222_v48 = vld [vmem:[%s8546_s7 + $0x148] sm:$0xff] }
0x10a5   : > { %5525 = vmatpush.bf16.msrb.mxu1 %v7224_v38  ;;  %v5597_v38 = vld [vmem:[%s8552_s11 + $0x38] sm:$0xff] }
0x10a9   : > { %v4752_v47 = vpop.f32.mrf.mxu1  ;;  %5526 = vmatpush.bf16.msrb.mxu1 %v7223_v45 }
0x10aa   : > { %v7240_v47 = vld [vmem:[%s8546_s7 + $0x1d8] sm:$0xff] }
0x10ab   : > { %5551 = vmatpush.bf16.msrb.mxu0 %v7240_v47  ;;  %v5595_v47 = vld [vmem:[%s8552_s11 + $0x28] sm:$0xff] }
0x10ad   : > { %5527 = vmatpush.bf16.msrb.mxu1 %v7222_v48 }
0x10b1   : > { %v4776_v55 = vpop.f32.mrf.mxu1 }
0x10b2   : > { %v4777_v5 = vadd.f32 %v4776_v55, %v4764_v42  ;;  %v7231_v42 = vld [vmem:[%s8546_s7 + $0x190] sm:$0xff] }
0x10b3   : > { %v7239_v55 = vld [vmem:[%s8546_s7 + $0x1d0] sm:$0xff] }
0x10b4   : > { %v4780_v56 = vmax.f32 %v4777_v5, 0.0  ;;  %v7221_v5 = vld [vmem:[%s8546_s7 + $0x140] sm:$0xff]  ;;  %5552 = vmatpush.bf16.msrb.mxu0 %v7239_v55 }
0x10b5   : > { %5528 = vmatpush.bf16.msrb.mxu1 %v7221_v5  ;;  %v5594_v5 = vld [vmem:[%s8552_s11 + $0x20] sm:$0xff] }
0x10b6   : > { %v4781_v57 = vpack.c.bf16 %v4780_v56, %v4780_v56  ;;  %v7230_v56 = vld [vmem:[%s8546_s7 + $0x188] sm:$0xff] }
0x10b8   : > { %v4812_v50 = vsel %vm4810_vm1, %v4781_v57, 0  ;;  %v7238_v57 = vld [vmem:[%s8546_s7 + $0x1c8] sm:$0xff] }
0x10b9   : > { %4821 = vmatpush.bf16.msra.mxu2 %v4812_v50  ;;  %v4778_v58 = vpop.f32.mrf.mxu1  ;;  %v7229_v50 = vld [vmem:[%s8546_s7 + $0x180] sm:$0xff]  ;;  %5553 = vmatpush.bf16.msrb.mxu0 %v7238_v57  ;;  %v5593_v57 = vld [vmem:[%s8552_s11 + $0x18] sm:$0xff] }
0x10bc   : > { %6693 = vmatmul.msk.bf16.vlgmr.msra.gmra.mxu2 %vm4800_vm2, %v7179_v32 }
0x10bd   : > { %5482 = vmatpush.bf16.msrb.mxu2 %v7204_v6  ;;  %5554 = vmatpush.bf16.msrb.mxu0 %v7237_v35  ;;  %v5591_v35 = vld [vmem:[%s8552_s11 + $0x8] sm:$0xff] }
0x10c1   : > { %5483 = vmatpush.bf16.msrb.mxu2 %v7203_v61 }
0x10c5   : > { %5484 = vmatpush.bf16.msrb.mxu2 %v7202_v1  ;;  %v7250_v1 = vld [vmem:[%s8546_s7 + $0x228] sm:$0xff] }
0x10c9   : > { %5485 = vmatpush.bf16.msrb.mxu2 %v7201_v12 }
0x10cc   : > { %6694 = vmatmul.msk.bf16.gmra.mxu2 %vm4800_vm2, %v7180_v4  ;;  %v7249_v4 = vld [vmem:[%s8546_s7 + $0x220] sm:$0xff] }
0x10cd   : > { %5486 = vmatpush.bf16.msrb.mxu2 %v7200_v63 }
0x10d1   : > { %5487 = vmatpush.bf16.msrb.mxu2 %v7199_v26 }
0x10d5   : > { %5488 = vmatpush.bf16.msrb.mxu2 %v7198_v15 }
0x10d9   : > { %5489 = vmatpush.bf16.msrb.mxu2 %v7197_v19  ;;  %v5604_v19 = vld [vmem:[%s8552_s11 + $0x70] sm:$0xff] }
0x10dc   : > { %6695 = vmatmul.msk.bf16.gmra.mxu2 %vm4800_vm2, %v4799_v49 }
0x10dd   : > { %5534 = vmatpush.bf16.msra.mxu2 %v7236_v20  ;;  %v5603_v20 = vld [vmem:[%s8552_s11 + $0x68] sm:$0xff] }
0x10e1   : > { %5535 = vmatpush.bf16.msra.mxu2 %v7235_v28  ;;  %v5600_v28 = vld [vmem:[%s8552_s11 + $0x50] sm:$0xff] }
0x10e5   : > { %5536 = vmatpush.bf16.msra.mxu2 %v7234_v33  ;;  %v7330_v33 = vld [vmem:[%s8553_s1] ss:$0 sm:$0xff]  ;;  %s8556_s1 = sld [smem:[#allocation26_spill]] }
0x10e9   : > { %5537 = vmatpush.bf16.msra.mxu2 %v7233_v39 }
0x10ed   : > { %5538 = vmatpush.bf16.msra.mxu2 %v7232_v46  ;;  %v5596_v46 = vld [vmem:[%s8552_s11 + $0x30] sm:$0xff] }
0x10f1   : > { %5539 = vmatpush.bf16.msra.mxu2 %v7231_v42 }
0x10f5   : > { %5540 = vmatpush.bf16.msra.mxu2 %v7230_v56 }
0x10f9   : > { %5541 = vmatpush.bf16.msra.mxu2 %v7229_v50 }
0x113f   : > { %v4823_v32 = vpop.f32.mrf.mxu2 }
0x1140   : > { %4837 = vst [vmem:[#allocation7 + $0x30] sm:$0xf] %v4823_v32  ;;  %v4839_v58 = vrot.slane %v4823_v32, 4 }
0x1142   : > { %4841 = vst [vmem:[#allocation7] sm:$0xf] %v4839_v58  ;;  %v5592_v58 = vld [vmem:[%s8552_s11 + $0x10] sm:$0xff] }
0x1147   : > { %v4825_v9 = vpop.f32.mrf.mxu2  ;;  %v4858_v6 = vld [vmem:[#allocation7 + $0x30] sm:$0xf] }
0x1148   : > { %4842 = vst [vmem:[#allocation7 + $0x18] sm:$0xf] %v4825_v9  ;;  %v4844_v40 = vrot.slane %v4825_v9, 4  ;;  %v4867_v60 = vpack.c.bf16 %v4858_v6, %v4858_v6  ;;  %v5590_v6 = vld [vmem:[%s8552_s11] sm:$0xff] }
0x1149   : > { %v4859_v61 = vld [vmem:[#allocation7] sm:$0xf] }
0x114a   : > { %4846 = vst [vmem:[#allocation7 + $0x10] sm:$0xf] %v4844_v40  ;;  %5464 = vmatmul.bf16.vlgmr.msrb.gmra.mxu3 %v4867_v60  ;;  %v4868_v7 = vpack.c.bf16 %v4859_v61, %v4859_v61  ;;  %v5634_v61 = vld [vmem:[%s7590_s4 + $0x38] sm:$0xff] }
0x114b   : > { %5560 = vmatpush.bf16.msrb.mxu3 %v7252_v23 }
0x114c   : > { %5477 = vmatmul.bf16.vlgmr.msra.gmra.mxu1 %v4868_v7  ;;  %v5633_v7 = vld [vmem:[%s7590_s4 + $0x30] sm:$0xff] }
0x114d   : > { %5607 = vmatpush.msra.mxu1 %v5605_v18 }
0x114f   : > { %v4828_v0 = vpop.f32.mrf.mxu2  ;;  %5561 = vmatpush.bf16.msrb.mxu3 %v7251_v62  ;;  %v4860_v2 = vld [vmem:[#allocation7 + $0x18] sm:$0xf]  ;;  %5608 = vmatpush.msra.mxu1 %v5604_v19 }
0x1150   : > { %4847 = vst [vmem:[#allocation7 + $0x20] sm:$0xf] %v4828_v0  ;;  %v4849_v11 = vrot.slane %v4828_v0, 4  ;;  %v4869_v34 = vpack.c.bf16 %v4860_v2, %v4860_v2  ;;  %v5632_v2 = vld [vmem:[%s7590_s4 + $0x28] sm:$0xff] }
0x1151   : > { %v4861_v12 = vld [vmem:[#allocation7 + $0x10] sm:$0xf]  ;;  %5609 = vmatpush.msra.mxu1 %v5603_v20 }
0x1152   : > { %4851 = vst [vmem:[#allocation7 + $0x28] sm:$0xf] %v4849_v11  ;;  %5490 = vmatmul.bf16.vlgmr.msrb.gmra.mxu2 %v4869_v34  ;;  %v4870_v51 = vpack.c.bf16 %v4861_v12, %v4861_v12  ;;  %v5631_v34 = vld [vmem:[%s7590_s4 + $0x20] sm:$0xff] }
0x1153   : > { %5562 = vmatpush.bf16.msrb.mxu3 %v7250_v1  ;;  %5610 = vmatpush.msra.mxu1 %v5602_v21  ;;  %v7426_v1 = vmov 4.0  }
0x1154   : > { %5503 = vmatmul.bf16.vlgmr.msra.gmra.mxu0 %v4870_v51  ;;  %5646 = vmatpush.msrb.mxu2 %v5634_v61  ;;  %7331 = vrcp.f32 %v7426_v1 }
0x1155   : > { %5611 = vmatpush.msra.mxu1 %v5601_v24  ;;  %5671 = vmatpush.msra.mxu0 %v5634_v61  ;;  %v5628_v24 = vld [vmem:[%s7590_s4 + $0x8] sm:$0xff] }
0x1156   : > { %5647 = vmatpush.msrb.mxu2 %v5633_v7 }
0x1157   : > { %v4830_v52 = vpop.f32.mrf.mxu2  ;;  %5563 = vmatpush.bf16.msrb.mxu3 %v7249_v4  ;;  %v4862_v63 = vld [vmem:[#allocation7 + $0x20] sm:$0xf]  ;;  %5612 = vmatpush.msra.mxu1 %v5600_v28  ;;  %v5630_v4 = vld [vmem:[%s7590_s4 + $0x18] sm:$0xff]  ;;  %v5606_v28 = vld [vmem:[%s8555_s28] sm:$0x1]  ;;  %s1057_s28 = scalar_lea.vmem %s7605_s8, %s8561_s18 }
0x1158   : > { %4852 = vst [vmem:[#allocation7 + $0x40] sm:$0xf] %v4830_v52  ;;  %v4854_v41 = vrot.slane %v4830_v52, 4  ;;  %v4871_v26 = vpack.c.bf16 %v4862_v63, %v4862_v63  ;;  %5672 = vmatpush.msra.mxu0 %v5633_v7  ;;  %5648 = vmatpush.msrb.mxu2 %v5632_v2  ;;  %v7328_v52 = vld [vmem:[%s8554_s2] ss:$0 sm:$0xff]  ;;  %s8557_s2 = sld [smem:[#allocation27_spill]] }
0x1159   : > { %v4863_v53 = vld [vmem:[#allocation7 + $0x28] sm:$0xf]  ;;  %5613 = vmatpush.msra.mxu1 %v5599_v29 }
0x115a   : > { %4856 = vst [vmem:[#allocation7 + $0x38] sm:$0xf] %v4854_v41  ;;  %5516 = vmatmul.bf16.vlgmr.msra.gmra.mxu3 %v4871_v26  ;;  %v4872_v54 = vpack.c.bf16 %v4863_v53, %v4863_v53  ;;  %5673 = vmatpush.msra.mxu0 %v5632_v2  ;;  %v7332_v63 = vpop.eup %7331 }
0x115b   : > { %5564 = vmatpush.bf16.msrb.mxu3 %v7248_v8  ;;  %5614 = vmatpush.msra.mxu1 %v5598_v36  ;;  %v5629_v8 = vld [vmem:[%s7590_s4 + $0x10] sm:$0xff]  ;;  %vm5587_vm3 = vweird.f32 %v7332_v63 }
0x115c   : > { %5529 = vmatmul.bf16.vlgmr.msrb.gmra.mxu1 %v4872_v54  ;;  %5649 = vmatpush.msrb.mxu2 %v5631_v34  ;;  %v4623_v54 = vadd.f32 %v7328_v52, %v8389_v37 }
0x115d   : > { %5615 = vmatpush.msra.mxu1 %v5597_v38  ;;  %5674 = vmatpush.msra.mxu0 %v5631_v34  ;;  %v5706_v38 = vld [vmem:[%s7595_s29 + $0x38] sm:$0xff] }
0x115e   : > { %5650 = vmatpush.msrb.mxu2 %v5630_v4 }
0x115f   : > { %v4833_v49 = vpop.f32.mrf.mxu2  ;;  %5565 = vmatpush.bf16.msrb.mxu3 %v7247_v25  ;;  %v4864_v43 = vld [vmem:[#allocation7 + $0x40] sm:$0xf]  ;;  %5616 = vmatpush.msra.mxu1 %v5596_v46  ;;  %v5702_v46 = vld [vmem:[%s7595_s29 + $0x18] sm:$0xff] }
0x1160   : > { %4857 = vst [vmem:[#allocation7 + $0x8] sm:$0xf] %v4833_v49  ;;  %v4873_v10 = vpack.c.bf16 %v4864_v43, %v4864_v43  ;;  %5675 = vmatpush.msra.mxu0 %v5630_v4  ;;  %v5583_v49 = vmul.f32 4.0, %v7332_v63  ;;  %5651 = vmatpush.msrb.mxu2 %v5629_v8 }
0x1161   : > { %v4865_v3 = vld [vmem:[#allocation7 + $0x38] sm:$0xf]  ;;  %5617 = vmatpush.msra.mxu1 %v5595_v47  ;;  %v5701_v47 = vld [vmem:[%s7595_s29 + $0x10] sm:$0xff] }
0x1162   : > { %5542 = vmatmul.bf16.vlgmr.msra.gmra.mxu2 %v4873_v10  ;;  %v4874_v13 = vpack.c.bf16 %v4865_v3, %v4865_v3  ;;  %5676 = vmatpush.msra.mxu0 %v5629_v8  ;;  %v5584_v10 = vsub.f32 1.0, %v5583_v49 }
0x1163   : > { %5566 = vmatpush.bf16.msrb.mxu3 %v7246_v59  ;;  %5618 = vmatpush.msra.mxu1 %v5594_v5 }
0x1164   : > { %5555 = vmatmul.bf16.vlgmr.msrb.gmra.mxu0 %v4874_v13  ;;  %5652 = vmatpush.msrb.mxu2 %v5628_v24 }
0x1165   : > { %5619 = vmatpush.msra.mxu1 %v5593_v57  ;;  %5677 = vmatpush.msra.mxu0 %v5628_v24 }
0x1167   : > { %5567 = vmatpush.bf16.msrb.mxu3 %v7245_v14  ;;  %v4866_v15 = vld [vmem:[#allocation7 + $0x8] sm:$0xf]  ;;  %v4835_v16 = vpop.f32.mrf.mxu2  ;;  %5620 = vmatpush.msra.mxu1 %v5592_v58 }
0x1168   : > { %v4875_v17 = vpack.c.bf16 %v4866_v15, %v4866_v15  ;;  %v5585_v15 = vmul.f32 %v7332_v63, %v5584_v10 }
0x1169   : > { %5621 = vmatpush.msra.mxu1 %v5591_v35 }
0x116a   : > { %5568 = vmatmul.bf16.vlgmr.msrb.gmra.mxu3 %v4875_v17  ;;  %v5586_v18 = vadd.f32 %v7332_v63, %v5585_v15 }
0x116b   : > { %5622 = vmatpush.msra.mxu1 %v5590_v6  ;;  %5719 = vmatpush.msra.mxu3 %v5706_v38  ;;  %v5694_v6 = vld [vmem:[%s8556_s1] sm:$0x1] }
0x116c   : > { %v5588_v20 = vsel %vm5587_vm3, %v7332_v63, %v5586_v18 }
0x11c9   : > { %v5478_v22 = vpop.f32.mrf.mxu1 }
0x11cd   : > { %v5465_v27 = vpop.f32.mrf.mxu3 }
0x11ce   : > { %v5466_v45 = vadd.f32 %v7330_v33, %v5465_v27  ;;  %v5627_v27 = vld [vmem:[%s7590_s4] sm:$0xff] }
0x11cf   : > { %5653 = vmatpush.msrb.mxu2 %v5627_v27  ;;  %5678 = vmatpush.msra.mxu0 %v5627_v27 }
0x11d0   : > { %v5479_v55 = vadd.f32 %v5478_v22, %v5466_v45  ;;  %v5703_v45 = vld [vmem:[%s7595_s29 + $0x20] sm:$0xff] }
0x11d1   : > { %v5504_v30 = vpop.f32.mrf.mxu0  ;;  %v5480_v31 = vpop.f32.mrf.mxu1 }
0x11d5   : > { %v5467_v39 = vpop.f32.mrf.mxu3  ;;  %v5491_v44 = vpop.f32.mrf.mxu2 }
0x11d6   : > { %v5492_v56 = vadd.f32 %v5491_v44, %v5479_v55  ;;  %v5705_v39 = vld [vmem:[%s7595_s29 + $0x30] sm:$0xff]  ;;  %v5704_v44 = vld [vmem:[%s7595_s29 + $0x28] sm:$0xff] }
0x11d7   : > { %5720 = vmatpush.msra.mxu3 %v5705_v39 }
0x11d8   : > { %v5505_v9 = vadd.f32 %v5504_v30, %v5492_v56 }
0x11d9   : > { %v5506_v48 = vpop.f32.mrf.mxu0  ;;  %v5530_v42 = vpop.f32.mrf.mxu1  ;;  %5721 = vmatpush.msra.mxu3 %v5704_v44 }
0x11da   : > { %v5700_v48 = vld [vmem:[%s7595_s29 + $0x8] sm:$0xff] }
0x11db   : > { %5722 = vmatpush.msra.mxu3 %v5703_v45 }
0x11dd   : > { %v5517_v50 = vpop.f32.mrf.mxu3  ;;  %v5493_v32 = vpop.f32.mrf.mxu2  ;;  %5723 = vmatpush.msra.mxu3 %v5702_v46 }
0x11de   : > { %v5518_v60 = vadd.f32 %v5517_v50, %v5505_v9 }
0x11df   : > { %5724 = vmatpush.msra.mxu3 %v5701_v47 }
0x11e0   : > { %v5531_v11 = vadd.f32 %v5530_v42, %v5518_v60  ;;  %v5699_v42 = vld [vmem:[%s7595_s29] sm:$0xff] }
0x11e1   : > { %v5556_v23 = vpop.f32.mrf.mxu0  ;;  %v5532_v40 = vpop.f32.mrf.mxu1  ;;  %5725 = vmatpush.msra.mxu3 %v5700_v48 }
0x11e2   : > { %v5696_v40 = vld [vmem:[%s8557_s2] sm:$0x1] }
0x11e3   : > { %5726 = vmatpush.msra.mxu3 %v5699_v42 }
0x11e5   : > { %v5519_v62 = vpop.f32.mrf.mxu3  ;;  %v5543_v0 = vpop.f32.mrf.mxu2 }
0x11e6   : > { %v5544_v12 = vadd.f32 %v5543_v0, %v5531_v11  ;;  %v5707_v62 = vld [vmem:[%s7600_s27] sm:$0x1] }
0x11e8   : > { %v5557_v41 = vadd.f32 %v5556_v23, %v5544_v12 }
0x11e9   : > { %v5558_v51 = vpop.f32.mrf.mxu0 }
0x11ed   : > { %v5569_v26 = vpop.f32.mrf.mxu3  ;;  %v5545_v53 = vpop.f32.mrf.mxu2 }
0x11ee   : > { %v5570_v25 = vadd.f32 %v5569_v26, %v5557_v41 }
0x11f0   : > { %v5573_v59 = vadd.f32 %v5570_v25, %v4623_v54 }
0x11f2   : > { %v5574_v43 = vmax.f32 %v5573_v59, 0.0 }
0x11f4   : > { %v5575_v3 = vsel %vm1167_vm0, %v5574_v43, 0.0 }
0x11f5   : > { %v5576_v13 = vrot.slane %v5575_v3, 4  ;;  %v5571_v14 = vpop.f32.mrf.mxu3 }
0x11f7   : > { %v5577_v16 = vadd.f32 %v5576_v13, %v5575_v3 }
0x11f9   : > { %v5578_v17 = vrot.slane %v5577_v16, 2 }
0x11fb   : > { %v5579_v19 = vadd.f32 %v5578_v17, %v5577_v16 }
0x11fd   : > { %v5580_v37 = vrot.slane %v5579_v19, 1 }
0x11ff   : > { %v5581_v21 = vadd.f32 %v5580_v37, %v5579_v19 }
0x1201   : > { %v5589_v22 = vmul.f32 %v5588_v20, %v5581_v21 }
0x1203   : > { %5623 = vmatmul.f32.vlgmr.msra.gmra.mxu1 %v5589_v22 }
0x1280   : > { %v5624_v29 = vpop.f32.mrf.mxu1 }
0x1281   : > { %v5625_v30 = vadd.f32 %v5624_v29, %v5606_v28 }
0x1283   : > { %6984 = vmatmul.msk.f32.vlgmr.msrb.gmra.mxu2 %vm2880_vm13, %v5625_v30 }
0x1306   : > { %v5655_v31 = vpop.f32.mrf.mxu2 }
0x1307   : > { %v5658_v33 = vsub.f32 %v5625_v30, %v5655_v31 }
0x1309   : > { %v5659_v36 = vmul.f32 %v5658_v33, %v5658_v33 }
0x130b   : > { %6985 = vmatmul.msk.f32.vlgmr.msra.gmra.mxu0 %vm2880_vm13, %v5659_v36 }
0x1388   : > { %v5680_v55 = vpop.f32.mrf.mxu0 }
0x1389   : > { %v5681_v5 = vadd.f32 1e-05, %v5680_v55 }
0x138b   : > { %7333 = vrsqrt.f32 %v5681_v5  ;;  %vm5689_vm4 = vweird.f32 %v5681_v5 }
0x1391   : > { %v7334_v56 = vpop.eup %7333 }
0x1392   : > { %v5684_v57 = vmul.f32 %v7334_v56, %v5681_v5  ;;  %vm5690_vm0 = vweird.f32 %v7334_v56 }
0x1393   : > { %vm5691_vm5 = vmor %vm5689_vm4, %vm5690_vm0 }
0x1394   : > { %v5685_v50 = vmul.f32 %v7334_v56, %v5684_v57 }
0x1396   : > { %v5686_v32 = vmul.f32 0.5, %v5685_v50 }
0x1398   : > { %v5687_v58 = vsub.f32 1.5, %v5686_v32 }
0x139a   : > { %v5688_v35 = vmul.f32 %v7334_v56, %v5687_v58 }
0x139c   : > { %v5692_v9 = vsel %vm5691_vm5, %v7334_v56, %v5688_v35 }
0x139d   : > { %v5693_v23 = vmul.f32 %v5692_v9, %v5658_v33 }
0x139f   : > { %v5695_v60 = vmul.f32 %v5694_v6, %v5693_v23 }
0x13a1   : > { %v5697_v61 = vadd.f32 %v5696_v40, %v5695_v60 }
0x13a3   : > { %v5698_v7 = vmax.f32 %v5697_v61, 0.0 }
0x13a5   : > { %6986 = vmatmul.msk.f32.vlgmr.msra.gmra.mxu3 %vm2880_vm13, %v5698_v7 }
0x1428   : > { %v5728_v0 = vpop.f32.mrf.mxu3 }
0x1429   : > { %v5729_v1 = vadd.f32 %v5728_v0, %v5707_v62 }
0x142b   : > { %5732 = vst.msk [vmem:[%s1057_s28] sm:$0x1] %vm5731_vm6, %v5729_v1 }
0x142c PF: > { %s80_s15 = sadd.s32 1, %s7375_s15  }
0x142d   : > { %p77_p2 = scmp.ge.s32.totalorder %s80_s15, 4  }
0x142f   :  { %79 = sbr.rel (!%p77_p2) target bundleno = 57 (0x39), region = 225 }
0x1434   :  { %5750 = vsyncpa [#allocation9], 1 }
0x1435   :  { %5752 = vsyncpa [#allocation9 + $0x1], 1 }

</bundles_post_ra>
